<compile_context>
chip_gen: v7x
topology: tpu7x:2x2x1
jax: 0.10.0
libtpu: 0.0.40
codegen_flags: <defaults>
</compile_context>

<pallas_src>
import functools

import jax
import jax.numpy as jnp
from jax import lax
from jax.experimental import pallas as pl
from jax.experimental.pallas import tpu as pltpu

FEATURE_NUM = 32  # args.feature_num (inferred: 2*C + 16 + 16 + 8 = 104 -> C = 32)

_VMEM_LIMIT = 32 * 1024 * 1024   # safe on v5e/v6e (128 MiB phys) and v7x (64 MiB)
_GAP_TILE_ROWS = 2048            # channel-att GAP tile (rows of HW) -> bounded VMEM


# ----------------------------------------------------------------------------
# small helpers
# ----------------------------------------------------------------------------
def _round_up(v, m):
    return ((v + m - 1) // m) * m


def _pick_tm(M):
    """M-tile: full block for tiny M, else a multiple of 8 giving >= 2 grid
    steps (v7x megacore) capped at 512 rows."""
    if M <= 128:
        return M
    return min(512, _round_up(-(-M // 2), 8))


def _pick_tile(total, cap):
    """Largest multiple-of-8 divisor of `total` that is <= cap, else `total`."""
    if total <= cap:
        return total
    t = (cap // 8) * 8
    while t >= 8:
        if total % t == 0:
            return t
        t -= 8
    # TODO(synk): ragged HW with no mult-of-8 divisor falls back to one block.
    return total


# ----------------------------------------------------------------------------
# Fused GEMM kernel: act(x @ w + b [+ skip]) -- bf16 operands, f32 accumulate
# ----------------------------------------------------------------------------
def _mm_kernel(act, act_cols, has_skip, x_ref, w_ref, b_ref, *rest):
    if has_skip:
        s_ref, o_ref = rest
    else:
        (o_ref,) = rest
    acc = jnp.dot(x_ref[...], w_ref[...], preferred_element_type=jnp.float32)
    acc = acc + b_ref[...]
    if has_skip:
        acc = acc + s_ref[...].astype(jnp.float32)
    if act == "relu":
        r = jnp.maximum(acc, 0.0)
        if act_cols is None:
            acc = r
        else:
            # per-column activation mask (used by the fused conv1|skip GEMM)
            col = lax.broadcasted_iota(jnp.int32, acc.shape, 1)
            acc = jnp.where(col < act_cols, r, acc)
    elif act == "sigmoid":
        acc = jax.nn.sigmoid(acc)
    elif act == "tanh":
        acc = jnp.tanh(acc)
    elif act == "tanh_scaled":   # fused final epilogue: tanh(x)/2 + 0.5
        acc = jnp.tanh(acc) * 0.5 + 0.5
    o_ref[...] = acc.astype(o_ref.dtype)


def matmul_bias_act(x, w, b, act="none", act_cols=None, skip=None,
                    out_dtype=jnp.bfloat16):
    """(M, K) @ (K, N) + b [+ skip], fused activation.

    Tiled over M with a "parallel" grid axis (double-buffered DMA pipeline,
    v7x megacore sharding); grid length >= 2 whenever M > 128.  Full K/N kept
    in one block (K <= 936 here).  Tiny N (< 8) is padded to 128 so the output
    store is lane-dense; bf16 output by default (intermediates)."""
    M, K = x.shape
    N = w.shape[1]

    Np = 128 if N < 8 else N
    if Np != N:
        w = jnp.pad(w, ((0, 0), (0, Np - N)))
        b = jnp.pad(b, (0, Np - N))
        if skip is not None:
            skip = jnp.pad(skip, ((0, 0), (0, Np - N)))

    xb = x.astype(jnp.bfloat16)
    wb = w.astype(jnp.bfloat16)
    bb = b.reshape(1, Np).astype(jnp.float32)

    TM = _pick_tm(M)
    grid = (pl.cdiv(M, TM),)

    in_specs = [
        pl.BlockSpec((TM, K), lambda i: (i, 0)),
        pl.BlockSpec((K, Np), lambda i: (0, 0)),
        pl.BlockSpec((1, Np), lambda i: (0, 0)),
    ]
    args = [xb, wb, bb]
    if skip is not None:
        in_specs.append(pl.BlockSpec((TM, Np), lambda i: (i, 0)))
        args.append(skip.astype(jnp.bfloat16))   # upcast to f32 inside kernel

    out = pl.pallas_call(
        functools.partial(_mm_kernel, act, act_cols, skip is not None),
        out_shape=jax.ShapeDtypeStruct((M, Np), out_dtype),
        grid=grid,
        in_specs=in_specs,
        out_specs=pl.BlockSpec((TM, Np), lambda i: (i, 0)),
        compiler_params=pltpu.CompilerParams(
            dimension_semantics=("parallel",),
            vmem_limit_bytes=_VMEM_LIMIT),
    )(*args)
    return out[:, :N] if Np != N else out


# ----------------------------------------------------------------------------
# conv / conv-transpose = im2col (XLA glue) + fused Pallas GEMM kernel
# ----------------------------------------------------------------------------
def _im2col(xp, KH, KW, Ho, Wo, stride):
    # TODO(synk): for very large images replace this HBM-materialized im2col
    # with an in-kernel 9-tap K-loop over halo'd row tiles (saves ~9x reads).
    patches = []
    for ky in range(KH):
        for kx in range(KW):
            patches.append(xp[:, ky:ky + stride * (Ho - 1) + 1:stride,
                               kx:kx + stride * (Wo - 1) + 1:stride, :])
    cols = jnp.stack(patches, axis=3)                    # (B,Ho,Wo,KH*KW,Cin)
    B, Cin = xp.shape[0], xp.shape[-1]
    return cols.reshape(B * Ho * Wo, KH * KW * Cin)


def conv2d(x, w, b, stride=1, pad=0, act="none", skip=None, act_cols=None,
           out_dtype=jnp.bfloat16):
    """x: NHWC, w: HWIO.  Optional fused residual `skip` (NHWC, Cout) + act."""
    B, H, W, Cin = x.shape
    KH, KW, _, Cout = w.shape
    xp = jnp.pad(x.astype(jnp.bfloat16), ((0, 0), (pad, pad), (pad, pad), (0, 0)))
    Ho = (H + 2 * pad - KH) // stride + 1
    Wo = (W + 2 * pad - KW) // stride + 1
    cols = _im2col(xp, KH, KW, Ho, Wo, stride)
    skip_flat = None if skip is None else skip.reshape(B * Ho * Wo, Cout)
    out = matmul_bias_act(cols, w.reshape(KH * KW * Cin, Cout), b,
                          act=act, act_cols=act_cols, skip=skip_flat,
                          out_dtype=out_dtype)
    return out.reshape(B, Ho, Wo, Cout)


def conv_transpose2d_s2(x, w, b, act="none"):
    """ConvTranspose2d(3x3, stride 2, pad 1, output_pad 1) via sub-pixel
    decomposition: one GEMM over a 2x2 window of the ORIGINAL input with a
    combined (4*Cin, 4*Cout) weight, then depth-to-space interleave.
    No zero-dilated rows -> no wasted MXU FLOPs; N = 4*Cout = 128 lane-dense.

    w is stored directly in equivalent-conv HWIO form (3,3,Cin,Cout)
    (synthetic init; see correctness note on real PyTorch weight import)."""
    B, H, W, Cin = x.shape
    Cout = w.shape[-1]

    xp = jnp.pad(x.astype(jnp.bfloat16), ((0, 0), (0, 1), (0, 1), (0, 0)))
    cols = _im2col(xp, 2, 2, H, W, 1)                 # (B*H*W, 4*Cin)

    # Combined weight: taps (dy,dx) x Cin  ->  phases (py,px) x Cout.
    wc = jnp.zeros((2, 2, Cin, 2, 2, Cout), jnp.float32)
    wc = wc.at[0, 0, :, 0, 0, :].set(w[1, 1])
    wc = wc.at[0, 0, :, 0, 1, :].set(w[1, 0])
    wc = wc.at[0, 1, :, 0, 1, :].set(w[1, 2])
    wc = wc.at[0, 0, :, 1, 0, :].set(w[0, 1])
    wc = wc.at[1, 0, :, 1, 0, :].set(w[2, 1])
    wc = wc.at[0, 0, :, 1, 1, :].set(w[0, 0])
    wc = wc.at[0, 1, :, 1, 1, :].set(w[0, 2])
    wc = wc.at[1, 0, :, 1, 1, :].set(w[2, 0])
    wc = wc.at[1, 1, :, 1, 1, :].set(w[2, 2])
    wc = wc.reshape(4 * Cin, 4 * Cout)
    bc = jnp.tile(b, 4)

    out = matmul_bias_act(cols, wc, bc, act=act)      # (B*H*W, 4*Cout) bf16
    out = out.reshape(B, H, W, 2, 2, Cout)
    out = out.transpose(0, 1, 3, 2, 4, 5).reshape(B, 2 * H, 2 * W, Cout)
    return out


# ----------------------------------------------------------------------------
# channel attention: tiled GAP(x)|GAP(y) -> fc1+ReLU -> fc2+sigmoid (1 launch)
# ----------------------------------------------------------------------------
def _channel_att_kernel(ntx, nt, inv_nx, inv_ny,
                        x_ref, y_ref, w1x_ref, w1y_ref, b1_ref, w2_ref, b2_ref,
                        o_ref, sx_ref, sy_ref):
    i = pl.program_id(1)

    @pl.when(i == 0)
    def _():
        sx_ref[...] = jnp.zeros_like(sx_ref)
        sy_ref[...] = jnp.zeros_like(sy_ref)

    if ntx == nt:
        sx_ref[...] += jnp.sum(x_ref[...].astype(jnp.float32), axis=1)
    else:
        @pl.when(i < ntx)
        def _():
            sx_ref[...] += jnp.sum(x_ref[...].astype(jnp.float32), axis=1)

    sy_ref[...] += jnp.sum(y_ref[...].astype(jnp.float32), axis=1)

    @pl.when(i == nt - 1)
    def _():
        gx = (sx_ref[...] * inv_nx).astype(jnp.bfloat16)
        gy = (sy_ref[...] * inv_ny).astype(jnp.bfloat16)
        # concat([gx, gy]) @ w1 == gx @ w1[:C] + gy @ w1[C:]   (bf16 MXU, f32 acc)
        h = (jnp.dot(gx, w1x_ref[...], preferred_element_type=jnp.float32)
             + jnp.dot(gy, w1y_ref[...], preferred_element_type=jnp.float32)
             + b1_ref[...])
        h = jnp.maximum(h, 0.0).astype(jnp.bfloat16)
        a = (jnp.dot(h, w2_ref[...], preferred_element_type=jnp.float32)
             + b2_ref[...])
        o_ref[...] = jax.nn.sigmoid(a).reshape(o_ref.shape)


def channel_att(p, x, y):
    """GAP tiled over HW (accumulating "arbitrary" axis) + parallel batch axis."""
    B, Hx, Wx, C = x.shape
    Hy, Wy = y.shape[1], y.shape[2]
    HWx, HWy = Hx * Wx, Hy * Wy
    xf = x.reshape(B, HWx, C).astype(jnp.bfloat16)
    yf = y.reshape(B, HWy, C).astype(jnp.bfloat16)

    w1 = p["fc1"]["w"].astype(jnp.bfloat16)
    b1 = p["fc1"]["b"].astype(jnp.float32)
    w2 = p["fc2"]["w"].astype(jnp.bfloat16)
    b2 = p["fc2"]["b"].astype(jnp.float32)
    Hd = w1.shape[1]

    Ty = _pick_tile(HWy, _GAP_TILE_ROWS)
    NT = HWy // Ty
    Tx = _pick_tile(HWx, Ty)
    NTx = HWx // Tx
    if NTx > NT:           # pathological tiling -> single x block
        Tx, NTx = HWx, 1

    if NTx == NT:
        x_idx = lambda b, i: (b, i, 0)
    else:
        x_idx = lambda b, i: (b, jnp.minimum(i, NTx - 1), 0)

    a = pl.pallas_call(
        functools.partial(_channel_att_kernel, NTx, NT, 1.0 / HWx, 1.0 / HWy),
        out_shape=jax.ShapeDtypeStruct((B, 1, 2 * C), jnp.float32),
        grid=(B, NT),
        in_specs=[
            pl.BlockSpec((1, Tx, C), x_idx),
            pl.BlockSpec((1, Ty, C), lambda b, i: (b, i, 0)),
            pl.BlockSpec((C, Hd), lambda b, i: (0, 0)),
            pl.BlockSpec((C, Hd), lambda b, i: (0, 0)),
            pl.BlockSpec((1, Hd), lambda b, i: (0, 0)),
            pl.BlockSpec((Hd, 2 * C), lambda b, i: (0, 0)),
            pl.BlockSpec((1, 2 * C), lambda b, i: (0, 0)),
        ],
        out_specs=pl.BlockSpec((1, 1, 2 * C), lambda b, i: (b, 0, 0)),
        scratch_shapes=[pltpu.VMEM((1, C), jnp.float32),
                        pltpu.VMEM((1, C), jnp.float32)],
        compiler_params=pltpu.CompilerParams(
            dimension_semantics=("parallel", "arbitrary"),
            vmem_limit_bytes=_VMEM_LIMIT),
    )(xf, yf, w1[:C], w1[C:], b1.reshape(1, Hd), w2, b2.reshape(1, 2 * C))
    a = a.reshape(B, 2 * C)
    return a[:, :C], a[:, C:]


# ----------------------------------------------------------------------------
# fused attention mix: up_x*cm_x*sm_x + y*cm_y*sm_y (lane-packed, bf16)
# ----------------------------------------------------------------------------
def _fusion_kernel(ux_ref, cmx_ref, smx_ref, y_ref, cmy_ref, smy_ref, o_ref):
    f32 = jnp.float32
    o_ref[...] = (ux_ref[...].astype(f32) * cmx_ref[...].astype(f32)
                  * smx_ref[...].astype(f32)
                  + y_ref[...].astype(f32) * cmy_ref[...].astype(f32)
                  * smy_ref[...].astype(f32)).astype(o_ref.dtype)


def fused_attention_mix(up_x, cm_x, sm_x, y, cm_y, sm_y):
    """Packs 4 spatial positions into the 128-lane axis (C=32 -> 4*C=128) so
    every load/store is lane-dense and unmasked."""
    B, H, W, C = y.shape
    HW = H * W
    P = 4 if HW % 4 == 0 else (2 if HW % 2 == 0 else 1)
    R, L = HW // P, P * C
    bf = jnp.bfloat16

    def pack_big(t):                    # (B,H,W,C) -> (B, HW/P, P*C)  (pure reshape)
        return t.astype(bf).reshape(B, R, L)

    def pack_cm(t):                     # (B,C) -> (B,1,P*C)
        return jnp.tile(t.astype(bf), (1, P)).reshape(B, 1, L)

    def pack_sm(t):                     # (B,H,W,1) -> (B, HW/P, P*C)
        t = t.astype(bf).reshape(B, R, P, 1)
        return jnp.broadcast_to(t, (B, R, P, C)).reshape(B, R, L)

    TR = R if R <= 1024 else 1024
    grid = (B, pl.cdiv(R, TR))
    big = lambda: pl.BlockSpec((1, TR, L), lambda b, r: (b, r, 0))
    cm = lambda: pl.BlockSpec((1, 1, L), lambda b, r: (b, 0, 0))

    out = pl.pallas_call(
        _fusion_kernel,
        out_shape=jax.ShapeDtypeStruct((B, R, L), bf),
        grid=grid,
        in_specs=[big(), cm(), big(), big(), cm(), big()],
        out_specs=big(),
        compiler_params=pltpu.CompilerParams(
            dimension_semantics=("parallel", "parallel"),
            vmem_limit_bytes=_VMEM_LIMIT),
    )(pack_big(up_x), pack_cm(cm_x), pack_sm(sm_x),
      pack_big(y), pack_cm(cm_y), pack_sm(sm_y))
    return out.reshape(B, H, W, C)


# ----------------------------------------------------------------------------
# deterministic parameter initialization (synthetic; normal(0, 0.02))
# ----------------------------------------------------------------------------
class KeyGen:
    def __init__(self, seed):
        self.key = jax.random.PRNGKey(seed)

    def __call__(self):
        self.key, sub = jax.random.split(self.key)
        return sub


def init_conv(kg, kh, kw, cin, cout):
    return {"w": 0.02 * jax.random.normal(kg(), (kh, kw, cin, cout), jnp.float32),
            "b": 0.02 * jax.random.normal(kg(), (cout,), jnp.float32)}


def init_dense(kg, cin, cout):
    return {"w": 0.02 * jax.random.normal(kg(), (cin, cout), jnp.float32),
            "b": 0.02 * jax.random.normal(kg(), (cout,), jnp.float32)}


# --- stand-ins for the missing sub-modules ----------------------------------
def init_res_down(kg, c):
    # TODO(synk): ResDown source not provided; residual downsample (conv-conv + 1x1 skip) assumed.
    return {"conv1": init_conv(kg, 3, 3, c, c),
            "conv2": init_conv(kg, 3, 3, c, c),
            "skip": init_conv(kg, 1, 1, c, c)}


def res_down(p, x, stride):
    c = p["conv1"]["w"].shape[-1]
    # Fuse conv1 (3x3, ReLU) and skip (1x1, linear) into ONE GEMM with N = 2c:
    # zero-pad the 1x1 skip weight to the center tap of a 3x3 kernel and concat.
    wsk = jnp.zeros((3, 3, c, c), jnp.float32).at[1, 1].set(p["skip"]["w"][0, 0])
    wcat = jnp.concatenate([p["conv1"]["w"], wsk], axis=-1)        # (3,3,c,2c)
    bcat = jnp.concatenate([p["conv1"]["b"], p["skip"]["b"]])
    hs = conv2d(x, wcat, bcat, stride=stride, pad=1, act="relu", act_cols=c)
    h, s = hs[..., :c], hs[..., c:]
    # residual add + ReLU fused into the second conv's GEMM epilogue
    return conv2d(h, p["conv2"]["w"], p["conv2"]["b"], stride=1, pad=1,
                  act="relu", skip=s)
    # TODO(synk): full single-pallas_call ResDown needs an in-kernel halo'd 3x3 conv.


def init_res_up(kg, cin, cout):
    # TODO(synk): ResUp source not provided; deconv(s2)+ReLU then conv3x3+ReLU assumed.
    return {"deconv": init_conv(kg, 3, 3, cin, cout),
            "conv": init_conv(kg, 3, 3, cout, cout)}


def res_up(p, x):
    h = conv_transpose2d_s2(x, p["deconv"]["w"], p["deconv"]["b"], act="relu")
    return conv2d(h, p["conv"]["w"], p["conv"]["b"], stride=1, pad=1, act="relu")


def init_channel_att(kg, c):
    # TODO(synk): ChannelAtt source not provided; GAP -> bottleneck MLP -> sigmoid gates assumed.
    return {"fc1": init_dense(kg, 2 * c, c // 2),
            "fc2": init_dense(kg, c // 2, 2 * c)}


def init_spatial_att(kg):
    # TODO(synk): SpatialAtt source not provided; channel-mean concat -> 3x3 conv -> sigmoid maps assumed.
    return {"conv": init_conv(kg, 3, 3, 2, 2)}


def spatial_att(p, x, y, upscale):
    # channel-mean first (C-fold less data), then nearest-neighbour upsample.
    mx = jnp.mean(x.astype(jnp.float32), axis=-1, keepdims=True)
    if upscale > 1:  # static Python int -> no TracerBoolConversionError
        mx = jnp.repeat(jnp.repeat(mx, upscale, axis=1), upscale, axis=2)
    my = jnp.mean(y.astype(jnp.float32), axis=-1, keepdims=True)
    m = jnp.concatenate([mx, my], axis=-1)    # (B, H, W, 2)
    a = conv2d(m, p["conv"]["w"], p["conv"]["b"], stride=1, pad=1, act="sigmoid")
    return a[..., 0:1], a[..., 1:2]


# --- FusionBlock / FusionNet --------------------------------------------------
def init_fusion_block(kg, c):
    # `self.one` (Conv2d(64,32,1)) is never used in FusionBlock.forward -> omitted.
    return {"channel_att": init_channel_att(kg, c),
            "spatial_att": init_spatial_att(kg),
            "up": init_conv(kg, 3, 3, c, c)}   # ConvTranspose2d(c,c,3,s2,p1,op1) equivalent


def fusion_block(p, x, y, upscale):
    if x.shape[1] < y.shape[1]:   # static shape check (same as torch x.shape[2] < y.shape[2])
        up_x = conv_transpose2d_s2(x, p["up"]["w"], p["up"]["b"], act="relu")
    else:
        up_x = x
    cm_x, cm_y = channel_att(p["channel_att"], x, y)
    sm_x, sm_y = spatial_att(p["spatial_att"], x, y, upscale)
    return fused_attention_mix(up_x, cm_x, sm_x, y, cm_y, sm_y)


def init_fusion_net(seed=0):
    kg = KeyGen(seed)
    c = FEATURE_NUM
    return {
        "input": init_conv(kg, 3, 3, 1, c),
        "down1x": init_res_down(kg, c),
        "down2x": init_res_down(kg, c),
        "down4x_a": init_res_down(kg, c),
        "down4x_b": init_res_down(kg, c),
        "up2x": init_res_up(kg, c, 16),
        "up4x_a": init_res_up(kg, c, c),
        "up4x_b": init_res_up(kg, c, 8),
        "fusion_1x": init_fusion_block(kg, c),
        "fusion_2x": init_fusion_block(kg, c),
        "out1": init_conv(kg, 3, 3, 104, c),
        "out2": init_conv(kg, 3, 3, c, 1),
    }


def fusion_net_forward(params, ir_nchw, vis_nchw):
    # layout: NCHW f32 at the API boundary, NHWC bf16 internally.
    to_nhwc = lambda t: jnp.transpose(t, (0, 2, 3, 1)).astype(jnp.float32)
    to_nchw = lambda t: jnp.transpose(t.astype(jnp.float32), (0, 3, 1, 2))
    ir, vis = to_nhwc(ir_nchw), to_nhwc(vis_nchw)
    B = ir.shape[0]

    # ir/vis share encoder weights -> batch them through the encoder in one pass.
    x = jnp.concatenate([ir, vis], axis=0)                    # (2B, H, W, 1)
    x_in = conv2d(x, params["input"]["w"], params["input"]["b"], stride=1, pad=1)
    x_1x = res_down(params["down1x"], x_in, 1)
    x_2x = res_down(params["down2x"], x_in, 2)
    x_4x = res_down(params["down4x_b"], res_down(params["down4x_a"], x_in, 2), 2)
    ir_1x, vis_1x = x_1x[:B], x_1x[B:]
    ir_2x, vis_2x = x_2x[:B], x_2x[B:]
    ir_4x, vis_4x = x_4x[:B], x_4x[B:]

    f_1x_1x = fusion_block(params["fusion_1x"], ir_1x, vis_1x, upscale=1)
    f_1x_2x = fusion_block(params["fusion_2x"], ir_2x, vis_1x, upscale=2)
    f_2x_2x = fusion_block(params["fusion_1x"], ir_2x, vis_2x, upscale=1)
    f_2x_4x = fusion_block(params["fusion_2x"], ir_4x, vis_2x, upscale=2)
    f_4x_4x = fusion_block(params["fusion_1x"], ir_4x, vis_4x, upscale=1)

    ir_fea = [ir_1x, ir_2x, ir_4x]
    vis_fea = [vis_1x, vis_2x, vis_4x]
    # NOTE: like the PyTorch code, fusion_fea keeps the PRE-upsample tensors.
    fusion_fea = [f_1x_1x, f_1x_2x, f_2x_2x, f_2x_4x, f_4x_4x]

    f_2x_2x_u = res_up(params["up2x"], f_2x_2x)
    f_2x_4x_u = res_up(params["up2x"], f_2x_4x)
    f_4x_4x_u = res_up(params["up4x_b"], res_up(params["up4x_a"], f_4x_4x))

    fusion = jnp.concatenate([f_1x_1x, f_1x_2x, f_2x_2x_u, f_2x_4x_u, f_4x_4x_u],
                             axis=-1)  # (B, H, W, 104)
    out = conv2d(fusion, params["out1"]["w"], params["out1"]["b"], stride=1, pad=1)
    # tanh, /2, +0.5 all fused into the out2 GEMM epilogue
    out = conv2d(out, params["out2"]["w"], params["out2"]["b"], stride=1, pad=1,
                 act="tanh_scaled", out_dtype=jnp.float32)

    return (to_nchw(out),
            [to_nchw(t) for t in ir_fea],
            [to_nchw(t) for t in vis_fea],
            [to_nchw(t) for t in fusion_fea])


if __name__ == "__main__":
    params = init_fusion_net(seed=0)
    k1, k2 = jax.random.split(jax.random.PRNGKey(0))
    ir = jax.random.uniform(k1, (2, 1, 16, 16), jnp.float32)    # NCHW, like PyTorch
    vis = jax.random.uniform(k2, (2, 1, 16, 16), jnp.float32)

    fwd = jax.jit(fusion_net_forward)
    out, ir_fea, vis_fea, fusion_fea = fwd(params, ir, vis)
    jax.block_until_ready(out)

    assert out.shape == (2, 1, 16, 16)
    assert ir_fea[0].shape == (2, 32, 16, 16) and ir_fea[2].shape == (2, 32, 4, 4)
    assert fusion_fea[0].shape == (2, 32, 16, 16)
    assert fusion_fea[-1].shape == (2, 32, 4, 4)
    assert bool(jnp.all(jnp.isfinite(out)))
    print("KERNEL_OK")
</pallas_src>

<mosaic_0001>
module attributes {stable_mosaic.version = 11 : i64} {
  func.func @_mm_kernel(%arg0: i32, %arg1: memref<512x9xbf16, #tpu.memory_space<vmem>>, %arg2: memref<9x32xbf16, #tpu.memory_space<vmem>>, %arg3: memref<1x32xf32, #tpu.memory_space<vmem>>, %arg4: memref<512x32xbf16, #tpu.memory_space<vmem>>) attributes {dimension_semantics = [#tpu.dimension_semantics<parallel>], iteration_bounds = array<i64: 2>, scalar_prefetch = 0 : i64, scratch_operands = 0 : i64, tpu.core_type = #tpu.core_type<tc>, window_params = [{transform_indices = @transform_0, window_bounds = array<i64: 512, 9>}, {pipeline_mode = #tpu.pipeline_mode<synchronous>, transform_indices = @transform_1, window_bounds = array<i64: 9, 32>}, {pipeline_mode = #tpu.pipeline_mode<synchronous>, transform_indices = @transform_2, window_bounds = array<i64: 1, 32>}, {transform_indices = @transform_3, window_bounds = array<i64: 512, 32>}]} {
    %c0 = arith.constant 0 : index
    %c0_0 = arith.constant 0 : index
    %0 = vector.load %arg1[%c0, %c0_0] : memref<512x9xbf16, #tpu.memory_space<vmem>>, vector<512x9xbf16>
    %c0_1 = arith.constant 0 : index
    %c0_2 = arith.constant 0 : index
    %1 = vector.load %arg2[%c0_1, %c0_2] : memref<9x32xbf16, #tpu.memory_space<vmem>>, vector<9x32xbf16>
    %cst = arith.constant dense<0.000000e+00> : vector<512x32xf32>
    %2 = tpu.matmul %0, %1, %cst {dimension_numbers = #tpu.dot_dimension_numbers<[1], [0], [0], [1], [0, 0, 1, 1], [], []>} : vector<512x9xbf16>, vector<9x32xbf16>, vector<512x32xf32> -> vector<512x32xf32>
    %c0_3 = arith.constant 0 : index
    %c0_4 = arith.constant 0 : index
    %3 = vector.load %arg3[%c0_3, %c0_4] : memref<1x32xf32, #tpu.memory_space<vmem>>, vector<1x32xf32>
    %4 = vector.broadcast %3 : vector<1x32xf32> to vector<512x32xf32>
    %5 = arith.addf %2, %4 : vector<512x32xf32>
    %6 = arith.truncf %5 : vector<512x32xf32> to vector<512x32xbf16>
    %c0_5 = arith.constant 0 : index
    %c0_6 = arith.constant 0 : index
    %7 = vector.load %arg4[%c0_5, %c0_6] : memref<512x32xbf16, #tpu.memory_space<vmem>>, vector<512x32xbf16>
    tpu.vector_store %arg4[%c0_5, %c0_6], %6 {strides = array<i32>} : memref<512x32xbf16, #tpu.memory_space<vmem>>, vector<512x32xbf16>,
    return
  }
  func.func @transform_0(%arg0: i32) -> (i32, i32) {
    %c0_i32 = arith.constant 0 : i32
    %c0_i32_0 = arith.constant 0 : i32
    return %arg0, %c0_i32 : i32, i32
  }
  func.func @transform_1(%arg0: i32) -> (i32, i32) {
    %c0_i32 = arith.constant 0 : i32
    %c0_i32_0 = arith.constant 0 : i32
    %c0_i32_1 = arith.constant 0 : i32
    return %c0_i32, %c0_i32_0 : i32, i32
  }
  func.func @transform_2(%arg0: i32) -> (i32, i32) {
    %c0_i32 = arith.constant 0 : i32
    %c0_i32_0 = arith.constant 0 : i32
    %c0_i32_1 = arith.constant 0 : i32
    return %c0_i32, %c0_i32_0 : i32, i32
  }
  func.func @transform_3(%arg0: i32) -> (i32, i32) {
    %c0_i32 = arith.constant 0 : i32
    %c0_i32_0 = arith.constant 0 : i32
    return %arg0, %c0_i32 : i32, i32
  }
}

module attributes {stable_mosaic.version = 11 : i64} {
  func.func @_mm_kernel(%arg0: i32, %arg1: memref<512x288xbf16, #tpu.memory_space<vmem>>, %arg2: memref<288x64xbf16, #tpu.memory_space<vmem>>, %arg3: memref<1x64xf32, #tpu.memory_space<vmem>>, %arg4: memref<512x64xbf16, #tpu.memory_space<vmem>>) attributes {dimension_semantics = [#tpu.dimension_semantics<parallel>], iteration_bounds = array<i64: 2>, scalar_prefetch = 0 : i64, scratch_operands = 0 : i64, tpu.core_type = #tpu.core_type<tc>, window_params = [{transform_indices = @transform_0, window_bounds = array<i64: 512, 288>}, {pipeline_mode = #tpu.pipeline_mode<synchronous>, transform_indices = @transform_1, window_bounds = array<i64: 288, 64>}, {pipeline_mode = #tpu.pipeline_mode<synchronous>, transform_indices = @transform_2, window_bounds = array<i64: 1, 64>}, {transform_indices = @transform_3, window_bounds = array<i64: 512, 64>}]} {
    %c0 = arith.constant 0 : index
    %c0_0 = arith.constant 0 : index
    %0 = vector.load %arg1[%c0, %c0_0] : memref<512x288xbf16, #tpu.memory_space<vmem>>, vector<512x288xbf16>
    %c0_1 = arith.constant 0 : index
    %c0_2 = arith.constant 0 : index
    %1 = vector.load %arg2[%c0_1, %c0_2] : memref<288x64xbf16, #tpu.memory_space<vmem>>, vector<288x64xbf16>
    %cst = arith.constant dense<0.000000e+00> : vector<512x64xf32>
    %2 = tpu.matmul %0, %1, %cst {dimension_numbers = #tpu.dot_dimension_numbers<[1], [0], [0], [1], [0, 0, 1, 1], [], []>} : vector<512x288xbf16>, vector<288x64xbf16>, vector<512x64xf32> -> vector<512x64xf32>
    %c0_3 = arith.constant 0 : index
    %c0_4 = arith.constant 0 : index
    %3 = vector.load %arg3[%c0_3, %c0_4] : memref<1x64xf32, #tpu.memory_space<vmem>>, vector<1x64xf32>
    %4 = vector.broadcast %3 : vector<1x64xf32> to vector<512x64xf32>
    %5 = arith.addf %2, %4 : vector<512x64xf32>
    %cst_5 = arith.constant 0.000000e+00 : f32
    %6 = vector.broadcast %cst_5 : f32 to vector<512x64xf32>
    %7 = arith.maximumf %5, %6 : vector<512x64xf32>
    %8 = tpu.iota {dimensions = array<i32: 1>} : vector<512x64xi32>
    %c32_i32 = arith.constant 32 : i32
    %9 = vector.broadcast %c32_i32 : i32 to vector<512x64xi32>
    %10 = arith.cmpi slt, %8, %9 : vector<512x64xi32>
    %11 = arith.select %10, %7, %5 : vector<512x64xi1>, vector<512x64xf32>
    %12 = arith.truncf %11 : vector<512x64xf32> to vector<512x64xbf16>
    %c0_6 = arith.constant 0 : index
    %c0_7 = arith.constant 0 : index
    %13 = vector.load %arg4[%c0_6, %c0_7] : memref<512x64xbf16, #tpu.memory_space<vmem>>, vector<512x64xbf16>
    tpu.vector_store %arg4[%c0_6, %c0_7], %12 {strides = array<i32>} : memref<512x64xbf16, #tpu.memory_space<vmem>>, vector<512x64xbf16>,
    return
  }
  func.func @transform_0(%arg0: i32) -> (i32, i32) {
    %c0_i32 = arith.constant 0 : i32
    %c0_i32_0 = arith.constant 0 : i32
    return %arg0, %c0_i32 : i32, i32
  }
  func.func @transform_1(%arg0: i32) -> (i32, i32) {
    %c0_i32 = arith.constant 0 : i32
    %c0_i32_0 = arith.constant 0 : i32
    %c0_i32_1 = arith.constant 0 : i32
    return %c0_i32, %c0_i32_0 : i32, i32
  }
  func.func @transform_2(%arg0: i32) -> (i32, i32) {
    %c0_i32 = arith.constant 0 : i32
    %c0_i32_0 = arith.constant 0 : i32
    %c0_i32_1 = arith.constant 0 : i32
    return %c0_i32, %c0_i32_0 : i32, i32
  }
  func.func @transform_3(%arg0: i32) -> (i32, i32) {
    %c0_i32 = arith.constant 0 : i32
    %c0_i32_0 = arith.constant 0 : i32
    return %arg0, %c0_i32 : i32, i32
  }
}

module attributes {stable_mosaic.version = 11 : i64} {
  func.func @_mm_kernel(%arg0: i32, %arg1: memref<512x288xbf16, #tpu.memory_space<vmem>>, %arg2: memref<288x32xbf16, #tpu.memory_space<vmem>>, %arg3: memref<1x32xf32, #tpu.memory_space<vmem>>, %arg4: memref<512x32xbf16, #tpu.memory_space<vmem>>, %arg5: memref<512x32xbf16, #tpu.memory_space<vmem>>) attributes {dimension_semantics = [#tpu.dimension_semantics<parallel>], iteration_bounds = array<i64: 2>, scalar_prefetch = 0 : i64, scratch_operands = 0 : i64, tpu.core_type = #tpu.core_type<tc>, window_params = [{transform_indices = @transform_0, window_bounds = array<i64: 512, 288>}, {pipeline_mode = #tpu.pipeline_mode<synchronous>, transform_indices = @transform_1, window_bounds = array<i64: 288, 32>}, {pipeline_mode = #tpu.pipeline_mode<synchronous>, transform_indices = @transform_2, window_bounds = array<i64: 1, 32>}, {transform_indices = @transform_3, window_bounds = array<i64: 512, 32>}, {transform_indices = @transform_4, window_bounds = array<i64: 512, 32>}]} {
    %c0 = arith.constant 0 : index
    %c0_0 = arith.constant 0 : index
    %0 = vector.load %arg1[%c0, %c0_0] : memref<512x288xbf16, #tpu.memory_space<vmem>>, vector<512x288xbf16>
    %c0_1 = arith.constant 0 : index
    %c0_2 = arith.constant 0 : index
    %1 = vector.load %arg2[%c0_1, %c0_2] : memref<288x32xbf16, #tpu.memory_space<vmem>>, vector<288x32xbf16>
    %cst = arith.constant dense<0.000000e+00> : vector<512x32xf32>
    %2 = tpu.matmul %0, %1, %cst {dimension_numbers = #tpu.dot_dimension_numbers<[1], [0], [0], [1], [0, 0, 1, 1], [], []>} : vector<512x288xbf16>, vector<288x32xbf16>, vector<512x32xf32> -> vector<512x32xf32>
    %c0_3 = arith.constant 0 : index
    %c0_4 = arith.constant 0 : index
    %3 = vector.load %arg3[%c0_3, %c0_4] : memref<1x32xf32, #tpu.memory_space<vmem>>, vector<1x32xf32>
    %4 = vector.broadcast %3 : vector<1x32xf32> to vector<512x32xf32>
    %5 = arith.addf %2, %4 : vector<512x32xf32>
    %c0_5 = arith.constant 0 : index
    %c0_6 = arith.constant 0 : index
    %6 = vector.load %arg4[%c0_5, %c0_6] : memref<512x32xbf16, #tpu.memory_space<vmem>>, vector<512x32xbf16>
    %7 = arith.extf %6 : vector<512x32xbf16> to vector<512x32xf32>
    %8 = arith.addf %5, %7 : vector<512x32xf32>
    %cst_7 = arith.constant 0.000000e+00 : f32
    %9 = vector.broadcast %cst_7 : f32 to vector<512x32xf32>
    %10 = arith.maximumf %8, %9 : vector<512x32xf32>
    %11 = arith.truncf %10 : vector<512x32xf32> to vector<512x32xbf16>
    %c0_8 = arith.constant 0 : index
    %c0_9 = arith.constant 0 : index
    %12 = vector.load %arg5[%c0_8, %c0_9] : memref<512x32xbf16, #tpu.memory_space<vmem>>, vector<512x32xbf16>
    tpu.vector_store %arg5[%c0_8, %c0_9], %11 {strides = array<i32>} : memref<512x32xbf16, #tpu.memory_space<vmem>>, vector<512x32xbf16>,
    return
  }
  func.func @transform_0(%arg0: i32) -> (i32, i32) {
    %c0_i32 = arith.constant 0 : i32
    %c0_i32_0 = arith.constant 0 : i32
    return %arg0, %c0_i32 : i32, i32
  }
  func.func @transform_1(%arg0: i32) -> (i32, i32) {
    %c0_i32 = arith.constant 0 : i32
    %c0_i32_0 = arith.constant 0 : i32
    %c0_i32_1 = arith.constant 0 : i32
    return %c0_i32, %c0_i32_0 : i32, i32
  }
  func.func @transform_2(%arg0: i32) -> (i32, i32) {
    %c0_i32 = arith.constant 0 : i32
    %c0_i32_0 = arith.constant 0 : i32
    %c0_i32_1 = arith.constant 0 : i32
    return %c0_i32, %c0_i32_0 : i32, i32
  }
  func.func @transform_3(%arg0: i32) -> (i32, i32) {
    %c0_i32 = arith.constant 0 : i32
    %c0_i32_0 = arith.constant 0 : i32
    return %arg0, %c0_i32 : i32, i32
  }
  func.func @transform_4(%arg0: i32) -> (i32, i32) {
    %c0_i32 = arith.constant 0 : i32
    %c0_i32_0 = arith.constant 0 : i32
    return %arg0, %c0_i32 : i32, i32
  }
}

module attributes {stable_mosaic.version = 11 : i64} {
  func.func @_channel_att_kernel(%arg0: i32, %arg1: i32, %arg2: memref<1x256x32xbf16, #tpu.memory_space<vmem>>, %arg3: memref<1x256x32xbf16, #tpu.memory_space<vmem>>, %arg4: memref<32x16xbf16, #tpu.memory_space<vmem>>, %arg5: memref<32x16xbf16, #tpu.memory_space<vmem>>, %arg6: memref<1x16xf32, #tpu.memory_space<vmem>>, %arg7: memref<16x64xbf16, #tpu.memory_space<vmem>>, %arg8: memref<1x64xf32, #tpu.memory_space<vmem>>, %arg9: memref<1x1x64xf32, #tpu.memory_space<vmem>>, %arg10: memref<1x32xf32, #tpu.memory_space<vmem>>, %arg11: memref<1x32xf32, #tpu.memory_space<vmem>>) attributes {dimension_semantics = [#tpu.dimension_semantics<parallel>, #tpu.dimension_semantics<arbitrary>], iteration_bounds = array<i64: 2, 1>, scalar_prefetch = 0 : i64, scratch_operands = 2 : i64, tpu.core_type = #tpu.core_type<tc>, window_params = [{transform_indices = @transform_0, window_bounds = array<i64: 1, 256, 32>}, {transform_indices = @transform_1, window_bounds = array<i64: 1, 256, 32>}, {pipeline_mode = #tpu.pipeline_mode<synchronous>, transform_indices = @transform_2, window_bounds = array<i64: 32, 16>}, {pipeline_mode = #tpu.pipeline_mode<synchronous>, transform_indices = @transform_3, window_bounds = array<i64: 32, 16>}, {pipeline_mode = #tpu.pipeline_mode<synchronous>, transform_indices = @transform_4, window_bounds = array<i64: 1, 16>}, {pipeline_mode = #tpu.pipeline_mode<synchronous>, transform_indices = @transform_5, window_bounds = array<i64: 16, 64>}, {pipeline_mode = #tpu.pipeline_mode<synchronous>, transform_indices = @transform_6, window_bounds = array<i64: 1, 64>}, {transform_indices = @transform_7, window_bounds = array<i64: 1, 1, 64>}]} {
    %c0_i32 = arith.constant 0 : i32
    %0 = arith.cmpi eq, %arg1, %c0_i32 : i32
    %1 = arith.extui %0 : i1 to i32
    %c0_i32_0 = arith.constant 0 : i32
    %2 = arith.cmpi ne, %1, %c0_i32_0 : i32
    scf.if %2 {
      %cst_17 = arith.constant 0.000000e+00 : f32
      %18 = vector.broadcast %cst_17 : f32 to vector<1x32xf32>
      %c0_18 = arith.constant 0 : index
      %c0_19 = arith.constant 0 : index
      %19 = vector.load %arg10[%c0_18, %c0_19] : memref<1x32xf32, #tpu.memory_space<vmem>>, vector<1x32xf32>
      tpu.vector_store %arg10[%c0_18, %c0_19], %18 {strides = array<i32>} : memref<1x32xf32, #tpu.memory_space<vmem>>, vector<1x32xf32>,
      %cst_20 = arith.constant 0.000000e+00 : f32
      %20 = vector.broadcast %cst_20 : f32 to vector<1x32xf32>
      %c0_21 = arith.constant 0 : index
      %c0_22 = arith.constant 0 : index
      %21 = vector.load %arg11[%c0_21, %c0_22] : memref<1x32xf32, #tpu.memory_space<vmem>>, vector<1x32xf32>
      tpu.vector_store %arg11[%c0_21, %c0_22], %20 {strides = array<i32>} : memref<1x32xf32, #tpu.memory_space<vmem>>, vector<1x32xf32>,
    } else {
    }
    %c0 = arith.constant 0 : index
    %c0_1 = arith.constant 0 : index
    %3 = vector.load %arg10[%c0, %c0_1] : memref<1x32xf32, #tpu.memory_space<vmem>>, vector<1x32xf32>
    %c0_2 = arith.constant 0 : index
    %c0_3 = arith.constant 0 : index
    %c0_4 = arith.constant 0 : index
    %4 = vector.load %arg2[%c0_2, %c0_3, %c0_4] : memref<1x256x32xbf16, #tpu.memory_space<vmem>>, vector<1x256x32xbf16>
    %5 = arith.extf %4 : vector<1x256x32xbf16> to vector<1x256x32xf32>
    %cst = arith.constant dense<0.000000e+00> : vector<1x32xf32>
    %6 = vector.multi_reduction <add>, %5, %cst [1] : vector<1x256x32xf32> to vector<1x32xf32>
    %7 = arith.addf %3, %6 : vector<1x32xf32>
    %c0_5 = arith.constant 0 : index
    %c0_6 = arith.constant 0 : index
    %8 = vector.load %arg10[%c0_5, %c0_6] : memref<1x32xf32, #tpu.memory_space<vmem>>, vector<1x32xf32>
    tpu.vector_store %arg10[%c0_5, %c0_6], %7 {strides = array<i32>} : memref<1x32xf32, #tpu.memory_space<vmem>>, vector<1x32xf32>,
    %c0_7 = arith.constant 0 : index
    %c0_8 = arith.constant 0 : index
    %9 = vector.load %arg11[%c0_7, %c0_8] : memref<1x32xf32, #tpu.memory_space<vmem>>, vector<1x32xf32>
    %c0_9 = arith.constant 0 : index
    %c0_10 = arith.constant 0 : index
    %c0_11 = arith.constant 0 : index
    %10 = vector.load %arg3[%c0_9, %c0_10, %c0_11] : memref<1x256x32xbf16, #tpu.memory_space<vmem>>, vector<1x256x32xbf16>
    %11 = arith.extf %10 : vector<1x256x32xbf16> to vector<1x256x32xf32>
    %cst_12 = arith.constant dense<0.000000e+00> : vector<1x32xf32>
    %12 = vector.multi_reduction <add>, %11, %cst_12 [1] : vector<1x256x32xf32> to vector<1x32xf32>
    %13 = arith.addf %9, %12 : vector<1x32xf32>
    %c0_13 = arith.constant 0 : index
    %c0_14 = arith.constant 0 : index
    %14 = vector.load %arg11[%c0_13, %c0_14] : memref<1x32xf32, #tpu.memory_space<vmem>>, vector<1x32xf32>
    tpu.vector_store %arg11[%c0_13, %c0_14], %13 {strides = array<i32>} : memref<1x32xf32, #tpu.memory_space<vmem>>, vector<1x32xf32>,
    %c0_i32_15 = arith.constant 0 : i32
    %15 = arith.cmpi eq, %arg1, %c0_i32_15 : i32
    %16 = arith.extui %15 : i1 to i32
    %c0_i32_16 = arith.constant 0 : i32
    %17 = arith.cmpi ne, %16, %c0_i32_16 : i32
    scf.if %17 {
      %c0_17 = arith.constant 0 : index
      %c0_18 = arith.constant 0 : index
      %18 = vector.load %arg10[%c0_17, %c0_18] : memref<1x32xf32, #tpu.memory_space<vmem>>, vector<1x32xf32>
      %cst_19 = arith.constant 3.906250e-03 : f32
      %19 = vector.broadcast %cst_19 : f32 to vector<1x32xf32>
      %20 = arith.mulf %18, %19 : vector<1x32xf32>
      %21 = arith.truncf %20 : vector<1x32xf32> to vector<1x32xbf16>
      %c0_20 = arith.constant 0 : index
      %c0_21 = arith.constant 0 : index
      %22 = vector.load %arg11[%c0_20, %c0_21] : memref<1x32xf32, #tpu.memory_space<vmem>>, vector<1x32xf32>
      %cst_22 = arith.constant 3.906250e-03 : f32
      %23 = vector.broadcast %cst_22 : f32 to vector<1x32xf32>
      %24 = arith.mulf %22, %23 : vector<1x32xf32>
      %25 = arith.truncf %24 : vector<1x32xf32> to vector<1x32xbf16>
      %c0_23 = arith.constant 0 : index
      %c0_24 = arith.constant 0 : index
      %26 = vector.load %arg4[%c0_23, %c0_24] : memref<32x16xbf16, #tpu.memory_space<vmem>>, vector<32x16xbf16>
      %cst_25 = arith.constant dense<0.000000e+00> : vector<1x16xf32>
      %27 = tpu.matmul %21, %26, %cst_25 {dimension_numbers = #tpu.dot_dimension_numbers<[1], [0], [0], [1], [0, 0, 1, 1], [], []>} : vector<1x32xbf16>, vector<32x16xbf16>, vector<1x16xf32> -> vector<1x16xf32>
      %c0_26 = arith.constant 0 : index
      %c0_27 = arith.constant 0 : index
      %28 = vector.load %arg5[%c0_26, %c0_27] : memref<32x16xbf16, #tpu.memory_space<vmem>>, vector<32x16xbf16>
      %cst_28 = arith.constant dense<0.000000e+00> : vector<1x16xf32>
      %29 = tpu.matmul %25, %28, %cst_28 {dimension_numbers = #tpu.dot_dimension_numbers<[1], [0], [0], [1], [0, 0, 1, 1], [], []>} : vector<1x32xbf16>, vector<32x16xbf16>, vector<1x16xf32> -> vector<1x16xf32>
      %30 = arith.addf %27, %29 : vector<1x16xf32>
      %c0_29 = arith.constant 0 : index
      %c0_30 = arith.constant 0 : index
      %31 = vector.load %arg6[%c0_29, %c0_30] : memref<1x16xf32, #tpu.memory_space<vmem>>, vector<1x16xf32>
      %32 = arith.addf %30, %31 : vector<1x16xf32>
      %cst_31 = arith.constant 0.000000e+00 : f32
      %33 = vector.broadcast %cst_31 : f32 to vector<1x16xf32>
      %34 = arith.maximumf %32, %33 : vector<1x16xf32>
      %35 = arith.truncf %34 : vector<1x16xf32> to vector<1x16xbf16>
      %c0_32 = arith.constant 0 : index
      %c0_33 = arith.constant 0 : index
      %36 = vector.load %arg7[%c0_32, %c0_33] : memref<16x64xbf16, #tpu.memory_space<vmem>>, vector<16x64xbf16>
      %cst_34 = arith.constant dense<0.000000e+00> : vector<1x64xf32>
      %37 = tpu.matmul %35, %36, %cst_34 {dimension_numbers = #tpu.dot_dimension_numbers<[1], [0], [0], [1], [0, 0, 1, 1], [], []>} : vector<1x16xbf16>, vector<16x64xbf16>, vector<1x64xf32> -> vector<1x64xf32>
      %c0_35 = arith.constant 0 : index
      %c0_36 = arith.constant 0 : index
      %38 = vector.load %arg8[%c0_35, %c0_36] : memref<1x64xf32, #tpu.memory_space<vmem>>, vector<1x64xf32>
      %39 = arith.addf %37, %38 : vector<1x64xf32>
      %40 = arith.negf %39 : vector<1x64xf32>
      %41 = math.exp %40 : vector<1x64xf32>
      %cst_37 = arith.constant 1.000000e+00 : f32
      %42 = vector.broadcast %cst_37 : f32 to vector<1x64xf32>
      %43 = arith.addf %42, %41 : vector<1x64xf32>
      %44 = arith.divf %42, %43 : vector<1x64xf32>
      %45 = vector.shape_cast %44 : vector<1x64xf32> to vector<1x1x64xf32>
      %c0_38 = arith.constant 0 : index
      %c0_39 = arith.constant 0 : index
      %c0_40 = arith.constant 0 : index
      %46 = vector.load %arg9[%c0_38, %c0_39, %c0_40] : memref<1x1x64xf32, #tpu.memory_space<vmem>>, vector<1x1x64xf32>
      tpu.vector_store %arg9[%c0_38, %c0_39, %c0_40], %45 {strides = array<i32>} : memref<1x1x64xf32, #tpu.memory_space<vmem>>, vector<1x1x64xf32>,
    } else {
    }
    return
  }
  func.func @transform_0(%arg0: i32, %arg1: i32) -> (i32, i32, i32) {
    %c0_i32 = arith.constant 0 : i32
    %c0_i32_0 = arith.constant 0 : i32
    return %arg0, %arg1, %c0_i32 : i32, i32, i32
  }
  func.func @transform_1(%arg0: i32, %arg1: i32) -> (i32, i32, i32) {
    %c0_i32 = arith.constant 0 : i32
    %c0_i32_0 = arith.constant 0 : i32
    return %arg0, %arg1, %c0_i32 : i32, i32, i32
  }
  func.func @transform_2(%arg0: i32, %arg1: i32) -> (i32, i32) {
    %c0_i32 = arith.constant 0 : i32
    %c0_i32_0 = arith.constant 0 : i32
    %c0_i32_1 = arith.constant 0 : i32
    return %c0_i32, %c0_i32_0 : i32, i32
  }
  func.func @transform_3(%arg0: i32, %arg1: i32) -> (i32, i32) {
    %c0_i32 = arith.constant 0 : i32
    %c0_i32_0 = arith.constant 0 : i32
    %c0_i32_1 = arith.constant 0 : i32
    return %c0_i32, %c0_i32_0 : i32, i32
  }
  func.func @transform_4(%arg0: i32, %arg1: i32) -> (i32, i32) {
    %c0_i32 = arith.constant 0 : i32
    %c0_i32_0 = arith.constant 0 : i32
    %c0_i32_1 = arith.constant 0 : i32
    return %c0_i32, %c0_i32_0 : i32, i32
  }
  func.func @transform_5(%arg0: i32, %arg1: i32) -> (i32, i32) {
    %c0_i32 = arith.constant 0 : i32
    %c0_i32_0 = arith.constant 0 : i32
    %c0_i32_1 = arith.constant 0 : i32
    return %c0_i32, %c0_i32_0 : i32, i32
  }
  func.func @transform_6(%arg0: i32, %arg1: i32) -> (i32, i32) {
    %c0_i32 = arith.constant 0 : i32
    %c0_i32_0 = arith.constant 0 : i32
    %c0_i32_1 = arith.constant 0 : i32
    return %c0_i32, %c0_i32_0 : i32, i32
  }
  func.func @transform_7(%arg0: i32, %arg1: i32) -> (i32, i32, i32) {
    %c0_i32 = arith.constant 0 : i32
    %c0_i32_0 = arith.constant 0 : i32
    %c0_i32_1 = arith.constant 0 : i32
    return %arg0, %c0_i32, %c0_i32_0 : i32, i32, i32
  }
}

module attributes {stable_mosaic.version = 11 : i64} {
  func.func @_mm_kernel(%arg0: i32, %arg1: memref<128x288xbf16, #tpu.memory_space<vmem>>, %arg2: memref<288x64xbf16, #tpu.memory_space<vmem>>, %arg3: memref<1x64xf32, #tpu.memory_space<vmem>>, %arg4: memref<128x64xbf16, #tpu.memory_space<vmem>>) attributes {dimension_semantics = [#tpu.dimension_semantics<parallel>], iteration_bounds = array<i64: 2>, scalar_prefetch = 0 : i64, scratch_operands = 0 : i64, tpu.core_type = #tpu.core_type<tc>, window_params = [{transform_indices = @transform_0, window_bounds = array<i64: 128, 288>}, {pipeline_mode = #tpu.pipeline_mode<synchronous>, transform_indices = @transform_1, window_bounds = array<i64: 288, 64>}, {pipeline_mode = #tpu.pipeline_mode<synchronous>, transform_indices = @transform_2, window_bounds = array<i64: 1, 64>}, {transform_indices = @transform_3, window_bounds = array<i64: 128, 64>}]} {
    %c0 = arith.constant 0 : index
    %c0_0 = arith.constant 0 : index
    %0 = vector.load %arg1[%c0, %c0_0] : memref<128x288xbf16, #tpu.memory_space<vmem>>, vector<128x288xbf16>
    %c0_1 = arith.constant 0 : index
    %c0_2 = arith.constant 0 : index
    %1 = vector.load %arg2[%c0_1, %c0_2] : memref<288x64xbf16, #tpu.memory_space<vmem>>, vector<288x64xbf16>
    %cst = arith.constant dense<0.000000e+00> : vector<128x64xf32>
    %2 = tpu.matmul %0, %1, %cst {dimension_numbers = #tpu.dot_dimension_numbers<[1], [0], [0], [1], [0, 0, 1, 1], [], []>} : vector<128x288xbf16>, vector<288x64xbf16>, vector<128x64xf32> -> vector<128x64xf32>
    %c0_3 = arith.constant 0 : index
    %c0_4 = arith.constant 0 : index
    %3 = vector.load %arg3[%c0_3, %c0_4] : memref<1x64xf32, #tpu.memory_space<vmem>>, vector<1x64xf32>
    %4 = vector.broadcast %3 : vector<1x64xf32> to vector<128x64xf32>
    %5 = arith.addf %2, %4 : vector<128x64xf32>
    %cst_5 = arith.constant 0.000000e+00 : f32
    %6 = vector.broadcast %cst_5 : f32 to vector<128x64xf32>
    %7 = arith.maximumf %5, %6 : vector<128x64xf32>
    %8 = tpu.iota {dimensions = array<i32: 1>} : vector<128x64xi32>
    %c32_i32 = arith.constant 32 : i32
    %9 = vector.broadcast %c32_i32 : i32 to vector<128x64xi32>
    %10 = arith.cmpi slt, %8, %9 : vector<128x64xi32>
    %11 = arith.select %10, %7, %5 : vector<128x64xi1>, vector<128x64xf32>
    %12 = arith.truncf %11 : vector<128x64xf32> to vector<128x64xbf16>
    %c0_6 = arith.constant 0 : index
    %c0_7 = arith.constant 0 : index
    %13 = vector.load %arg4[%c0_6, %c0_7] : memref<128x64xbf16, #tpu.memory_space<vmem>>, vector<128x64xbf16>
    tpu.vector_store %arg4[%c0_6, %c0_7], %12 {strides = array<i32>} : memref<128x64xbf16, #tpu.memory_space<vmem>>, vector<128x64xbf16>,
    return
  }
  func.func @transform_0(%arg0: i32) -> (i32, i32) {
    %c0_i32 = arith.constant 0 : i32
    %c0_i32_0 = arith.constant 0 : i32
    return %arg0, %c0_i32 : i32, i32
  }
  func.func @transform_1(%arg0: i32) -> (i32, i32) {
    %c0_i32 = arith.constant 0 : i32
    %c0_i32_0 = arith.constant 0 : i32
    %c0_i32_1 = arith.constant 0 : i32
    return %c0_i32, %c0_i32_0 : i32, i32
  }
  func.func @transform_2(%arg0: i32) -> (i32, i32) {
    %c0_i32 = arith.constant 0 : i32
    %c0_i32_0 = arith.constant 0 : i32
    %c0_i32_1 = arith.constant 0 : i32
    return %c0_i32, %c0_i32_0 : i32, i32
  }
  func.func @transform_3(%arg0: i32) -> (i32, i32) {
    %c0_i32 = arith.constant 0 : i32
    %c0_i32_0 = arith.constant 0 : i32
    return %arg0, %c0_i32 : i32, i32
  }
}

module attributes {stable_mosaic.version = 11 : i64} {
  func.func @_mm_kernel(%arg0: i32, %arg1: memref<128x288xbf16, #tpu.memory_space<vmem>>, %arg2: memref<288x32xbf16, #tpu.memory_space<vmem>>, %arg3: memref<1x32xf32, #tpu.memory_space<vmem>>, %arg4: memref<128x32xbf16, #tpu.memory_space<vmem>>, %arg5: memref<128x32xbf16, #tpu.memory_space<vmem>>) attributes {dimension_semantics = [#tpu.dimension_semantics<parallel>], iteration_bounds = array<i64: 2>, scalar_prefetch = 0 : i64, scratch_operands = 0 : i64, tpu.core_type = #tpu.core_type<tc>, window_params = [{transform_indices = @transform_0, window_bounds = array<i64: 128, 288>}, {pipeline_mode = #tpu.pipeline_mode<synchronous>, transform_indices = @transform_1, window_bounds = array<i64: 288, 32>}, {pipeline_mode = #tpu.pipeline_mode<synchronous>, transform_indices = @transform_2, window_bounds = array<i64: 1, 32>}, {transform_indices = @transform_3, window_bounds = array<i64: 128, 32>}, {transform_indices = @transform_4, window_bounds = array<i64: 128, 32>}]} {
    %c0 = arith.constant 0 : index
    %c0_0 = arith.constant 0 : index
    %0 = vector.load %arg1[%c0, %c0_0] : memref<128x288xbf16, #tpu.memory_space<vmem>>, vector<128x288xbf16>
    %c0_1 = arith.constant 0 : index
    %c0_2 = arith.constant 0 : index
    %1 = vector.load %arg2[%c0_1, %c0_2] : memref<288x32xbf16, #tpu.memory_space<vmem>>, vector<288x32xbf16>
    %cst = arith.constant dense<0.000000e+00> : vector<128x32xf32>
    %2 = tpu.matmul %0, %1, %cst {dimension_numbers = #tpu.dot_dimension_numbers<[1], [0], [0], [1], [0, 0, 1, 1], [], []>} : vector<128x288xbf16>, vector<288x32xbf16>, vector<128x32xf32> -> vector<128x32xf32>
    %c0_3 = arith.constant 0 : index
    %c0_4 = arith.constant 0 : index
    %3 = vector.load %arg3[%c0_3, %c0_4] : memref<1x32xf32, #tpu.memory_space<vmem>>, vector<1x32xf32>
    %4 = vector.broadcast %3 : vector<1x32xf32> to vector<128x32xf32>
    %5 = arith.addf %2, %4 : vector<128x32xf32>
    %c0_5 = arith.constant 0 : index
    %c0_6 = arith.constant 0 : index
    %6 = vector.load %arg4[%c0_5, %c0_6] : memref<128x32xbf16, #tpu.memory_space<vmem>>, vector<128x32xbf16>
    %7 = arith.extf %6 : vector<128x32xbf16> to vector<128x32xf32>
    %8 = arith.addf %5, %7 : vector<128x32xf32>
    %cst_7 = arith.constant 0.000000e+00 : f32
    %9 = vector.broadcast %cst_7 : f32 to vector<128x32xf32>
    %10 = arith.maximumf %8, %9 : vector<128x32xf32>
    %11 = arith.truncf %10 : vector<128x32xf32> to vector<128x32xbf16>
    %c0_8 = arith.constant 0 : index
    %c0_9 = arith.constant 0 : index
    %12 = vector.load %arg5[%c0_8, %c0_9] : memref<128x32xbf16, #tpu.memory_space<vmem>>, vector<128x32xbf16>
    tpu.vector_store %arg5[%c0_8, %c0_9], %11 {strides = array<i32>} : memref<128x32xbf16, #tpu.memory_space<vmem>>, vector<128x32xbf16>,
    return
  }
  func.func @transform_0(%arg0: i32) -> (i32, i32) {
    %c0_i32 = arith.constant 0 : i32
    %c0_i32_0 = arith.constant 0 : i32
    return %arg0, %c0_i32 : i32, i32
  }
  func.func @transform_1(%arg0: i32) -> (i32, i32) {
    %c0_i32 = arith.constant 0 : i32
    %c0_i32_0 = arith.constant 0 : i32
    %c0_i32_1 = arith.constant 0 : i32
    return %c0_i32, %c0_i32_0 : i32, i32
  }
  func.func @transform_2(%arg0: i32) -> (i32, i32) {
    %c0_i32 = arith.constant 0 : i32
    %c0_i32_0 = arith.constant 0 : i32
    %c0_i32_1 = arith.constant 0 : i32
    return %c0_i32, %c0_i32_0 : i32, i32
  }
  func.func @transform_3(%arg0: i32) -> (i32, i32) {
    %c0_i32 = arith.constant 0 : i32
    %c0_i32_0 = arith.constant 0 : i32
    return %arg0, %c0_i32 : i32, i32
  }
  func.func @transform_4(%arg0: i32) -> (i32, i32) {
    %c0_i32 = arith.constant 0 : i32
    %c0_i32_0 = arith.constant 0 : i32
    return %arg0, %c0_i32 : i32, i32
  }
}

module attributes {stable_mosaic.version = 11 : i64} {
  func.func @_mm_kernel(%arg0: i32, %arg1: memref<256x18xbf16, #tpu.memory_space<vmem>>, %arg2: memref<18x128xbf16, #tpu.memory_space<vmem>>, %arg3: memref<1x128xf32, #tpu.memory_space<vmem>>, %arg4: memref<256x128xbf16, #tpu.memory_space<vmem>>) attributes {dimension_semantics = [#tpu.dimension_semantics<parallel>], iteration_bounds = array<i64: 2>, scalar_prefetch = 0 : i64, scratch_operands = 0 : i64, tpu.core_type = #tpu.core_type<tc>, window_params = [{transform_indices = @transform_0, window_bounds = array<i64: 256, 18>}, {pipeline_mode = #tpu.pipeline_mode<synchronous>, transform_indices = @transform_1, window_bounds = array<i64: 18, 128>}, {pipeline_mode = #tpu.pipeline_mode<synchronous>, transform_indices = @transform_2, window_bounds = array<i64: 1, 128>}, {transform_indices = @transform_3, window_bounds = array<i64: 256, 128>}]} {
    %c0 = arith.constant 0 : index
    %c0_0 = arith.constant 0 : index
    %0 = vector.load %arg1[%c0, %c0_0] : memref<256x18xbf16, #tpu.memory_space<vmem>>, vector<256x18xbf16>
    %c0_1 = arith.constant 0 : index
    %c0_2 = arith.constant 0 : index
    %1 = vector.load %arg2[%c0_1, %c0_2] : memref<18x128xbf16, #tpu.memory_space<vmem>>, vector<18x128xbf16>
    %cst = arith.constant dense<0.000000e+00> : vector<256x128xf32>
    %2 = tpu.matmul %0, %1, %cst {dimension_numbers = #tpu.dot_dimension_numbers<[1], [0], [0], [1], [0, 0, 1, 1], [], []>} : vector<256x18xbf16>, vector<18x128xbf16>, vector<256x128xf32> -> vector<256x128xf32>
    %c0_3 = arith.constant 0 : index
    %c0_4 = arith.constant 0 : index
    %3 = vector.load %arg3[%c0_3, %c0_4] : memref<1x128xf32, #tpu.memory_space<vmem>>, vector<1x128xf32>
    %4 = vector.broadcast %3 : vector<1x128xf32> to vector<256x128xf32>
    %5 = arith.addf %2, %4 : vector<256x128xf32>
    %6 = arith.negf %5 : vector<256x128xf32>
    %7 = math.exp %6 : vector<256x128xf32>
    %cst_5 = arith.constant 1.000000e+00 : f32
    %8 = vector.broadcast %cst_5 : f32 to vector<256x128xf32>
    %9 = arith.addf %8, %7 : vector<256x128xf32>
    %10 = arith.divf %8, %9 : vector<256x128xf32>
    %11 = arith.truncf %10 : vector<256x128xf32> to vector<256x128xbf16>
    %c0_6 = arith.constant 0 : index
    %c0_7 = arith.constant 0 : index
    %12 = vector.load %arg4[%c0_6, %c0_7] : memref<256x128xbf16, #tpu.memory_space<vmem>>, vector<256x128xbf16>
    tpu.vector_store %arg4[%c0_6, %c0_7], %11 {strides = array<i32>} : memref<256x128xbf16, #tpu.memory_space<vmem>>, vector<256x128xbf16>,
    return
  }
  func.func @transform_0(%arg0: i32) -> (i32, i32) {
    %c0_i32 = arith.constant 0 : i32
    %c0_i32_0 = arith.constant 0 : i32
    return %arg0, %c0_i32 : i32, i32
  }
  func.func @transform_1(%arg0: i32) -> (i32, i32) {
    %c0_i32 = arith.constant 0 : i32
    %c0_i32_0 = arith.constant 0 : i32
    %c0_i32_1 = arith.constant 0 : i32
    return %c0_i32, %c0_i32_0 : i32, i32
  }
  func.func @transform_2(%arg0: i32) -> (i32, i32) {
    %c0_i32 = arith.constant 0 : i32
    %c0_i32_0 = arith.constant 0 : i32
    %c0_i32_1 = arith.constant 0 : i32
    return %c0_i32, %c0_i32_0 : i32, i32
  }
  func.func @transform_3(%arg0: i32) -> (i32, i32) {
    %c0_i32 = arith.constant 0 : i32
    %c0_i32_0 = arith.constant 0 : i32
    return %arg0, %c0_i32 : i32, i32
  }
}

module attributes {stable_mosaic.version = 11 : i64} {
  func.func @_fusion_kernel(%arg0: i32, %arg1: i32, %arg2: memref<1x64x128xbf16, #tpu.memory_space<vmem>>, %arg3: memref<1x1x128xbf16, #tpu.memory_space<vmem>>, %arg4: memref<1x64x128xbf16, #tpu.memory_space<vmem>>, %arg5: memref<1x64x128xbf16, #tpu.memory_space<vmem>>, %arg6: memref<1x1x128xbf16, #tpu.memory_space<vmem>>, %arg7: memref<1x64x128xbf16, #tpu.memory_space<vmem>>, %arg8: memref<1x64x128xbf16, #tpu.memory_space<vmem>>) attributes {dimension_semantics = [#tpu.dimension_semantics<parallel>, #tpu.dimension_semantics<parallel>], iteration_bounds = array<i64: 2, 1>, scalar_prefetch = 0 : i64, scratch_operands = 0 : i64, tpu.core_type = #tpu.core_type<tc>, window_params = [{transform_indices = @transform_0, window_bounds = array<i64: 1, 64, 128>}, {transform_indices = @transform_1, window_bounds = array<i64: 1, 1, 128>}, {transform_indices = @transform_2, window_bounds = array<i64: 1, 64, 128>}, {transform_indices = @transform_3, window_bounds = array<i64: 1, 64, 128>}, {transform_indices = @transform_4, window_bounds = array<i64: 1, 1, 128>}, {transform_indices = @transform_5, window_bounds = array<i64: 1, 64, 128>}, {transform_indices = @transform_6, window_bounds = array<i64: 1, 64, 128>}]} {
    %c0 = arith.constant 0 : index
    %c0_0 = arith.constant 0 : index
    %c0_1 = arith.constant 0 : index
    %0 = vector.load %arg2[%c0, %c0_0, %c0_1] : memref<1x64x128xbf16, #tpu.memory_space<vmem>>, vector<1x64x128xbf16>
    %1 = arith.extf %0 : vector<1x64x128xbf16> to vector<1x64x128xf32>
    %c0_2 = arith.constant 0 : index
    %c0_3 = arith.constant 0 : index
    %c0_4 = arith.constant 0 : index
    %2 = vector.load %arg3[%c0_2, %c0_3, %c0_4] : memref<1x1x128xbf16, #tpu.memory_space<vmem>>, vector<1x1x128xbf16>
    %3 = arith.extf %2 : vector<1x1x128xbf16> to vector<1x1x128xf32>
    %4 = vector.broadcast %3 : vector<1x1x128xf32> to vector<1x64x128xf32>
    %5 = arith.mulf %1, %4 : vector<1x64x128xf32>
    %c0_5 = arith.constant 0 : index
    %c0_6 = arith.constant 0 : index
    %c0_7 = arith.constant 0 : index
    %6 = vector.load %arg4[%c0_5, %c0_6, %c0_7] : memref<1x64x128xbf16, #tpu.memory_space<vmem>>, vector<1x64x128xbf16>
    %7 = arith.extf %6 : vector<1x64x128xbf16> to vector<1x64x128xf32>
    %8 = arith.mulf %5, %7 : vector<1x64x128xf32>
    %c0_8 = arith.constant 0 : index
    %c0_9 = arith.constant 0 : index
    %c0_10 = arith.constant 0 : index
    %9 = vector.load %arg5[%c0_8, %c0_9, %c0_10] : memref<1x64x128xbf16, #tpu.memory_space<vmem>>, vector<1x64x128xbf16>
    %10 = arith.extf %9 : vector<1x64x128xbf16> to vector<1x64x128xf32>
    %c0_11 = arith.constant 0 : index
    %c0_12 = arith.constant 0 : index
    %c0_13 = arith.constant 0 : index
    %11 = vector.load %arg6[%c0_11, %c0_12, %c0_13] : memref<1x1x128xbf16, #tpu.memory_space<vmem>>, vector<1x1x128xbf16>
    %12 = arith.extf %11 : vector<1x1x128xbf16> to vector<1x1x128xf32>
    %13 = vector.broadcast %12 : vector<1x1x128xf32> to vector<1x64x128xf32>
    %14 = arith.mulf %10, %13 : vector<1x64x128xf32>
    %c0_14 = arith.constant 0 : index
    %c0_15 = arith.constant 0 : index
    %c0_16 = arith.constant 0 : index
    %15 = vector.load %arg7[%c0_14, %c0_15, %c0_16] : memref<1x64x128xbf16, #tpu.memory_space<vmem>>, vector<1x64x128xbf16>
    %16 = arith.extf %15 : vector<1x64x128xbf16> to vector<1x64x128xf32>
    %17 = arith.mulf %14, %16 : vector<1x64x128xf32>
    %18 = arith.addf %8, %17 : vector<1x64x128xf32>
    %19 = arith.truncf %18 : vector<1x64x128xf32> to vector<1x64x128xbf16>
    %c0_17 = arith.constant 0 : index
    %c0_18 = arith.constant 0 : index
    %c0_19 = arith.constant 0 : index
    %20 = vector.load %arg8[%c0_17, %c0_18, %c0_19] : memref<1x64x128xbf16, #tpu.memory_space<vmem>>, vector<1x64x128xbf16>
    tpu.vector_store %arg8[%c0_17, %c0_18, %c0_19], %19 {strides = array<i32>} : memref<1x64x128xbf16, #tpu.memory_space<vmem>>, vector<1x64x128xbf16>,
    return
  }
  func.func @transform_0(%arg0: i32, %arg1: i32) -> (i32, i32, i32) {
    %c0_i32 = arith.constant 0 : i32
    %c0_i32_0 = arith.constant 0 : i32
    return %arg0, %arg1, %c0_i32 : i32, i32, i32
  }
  func.func @transform_1(%arg0: i32, %arg1: i32) -> (i32, i32, i32) {
    %c0_i32 = arith.constant 0 : i32
    %c0_i32_0 = arith.constant 0 : i32
    %c0_i32_1 = arith.constant 0 : i32
    return %arg0, %c0_i32, %c0_i32_0 : i32, i32, i32
  }
  func.func @transform_2(%arg0: i32, %arg1: i32) -> (i32, i32, i32) {
    %c0_i32 = arith.constant 0 : i32
    %c0_i32_0 = arith.constant 0 : i32
    return %arg0, %arg1, %c0_i32 : i32, i32, i32
  }
  func.func @transform_3(%arg0: i32, %arg1: i32) -> (i32, i32, i32) {
    %c0_i32 = arith.constant 0 : i32
    %c0_i32_0 = arith.constant 0 : i32
    return %arg0, %arg1, %c0_i32 : i32, i32, i32
  }
  func.func @transform_4(%arg0: i32, %arg1: i32) -> (i32, i32, i32) {
    %c0_i32 = arith.constant 0 : i32
    %c0_i32_0 = arith.constant 0 : i32
    %c0_i32_1 = arith.constant 0 : i32
    return %arg0, %c0_i32, %c0_i32_0 : i32, i32, i32
  }
  func.func @transform_5(%arg0: i32, %arg1: i32) -> (i32, i32, i32) {
    %c0_i32 = arith.constant 0 : i32
    %c0_i32_0 = arith.constant 0 : i32
    return %arg0, %arg1, %c0_i32 : i32, i32, i32
  }
  func.func @transform_6(%arg0: i32, %arg1: i32) -> (i32, i32, i32) {
    %c0_i32 = arith.constant 0 : i32
    %c0_i32_0 = arith.constant 0 : i32
    return %arg0, %arg1, %c0_i32 : i32, i32, i32
  }
}

module attributes {stable_mosaic.version = 11 : i64} {
  func.func @_mm_kernel(%arg0: i32, %arg1: memref<128x128xbf16, #tpu.memory_space<vmem>>, %arg2: memref<128x128xbf16, #tpu.memory_space<vmem>>, %arg3: memref<1x128xf32, #tpu.memory_space<vmem>>, %arg4: memref<128x128xbf16, #tpu.memory_space<vmem>>) attributes {dimension_semantics = [#tpu.dimension_semantics<parallel>], iteration_bounds = array<i64: 1>, scalar_prefetch = 0 : i64, scratch_operands = 0 : i64, tpu.core_type = #tpu.core_type<tc>, window_params = [{transform_indices = @transform_0, window_bounds = array<i64: 128, 128>}, {pipeline_mode = #tpu.pipeline_mode<synchronous>, transform_indices = @transform_1, window_bounds = array<i64: 128, 128>}, {pipeline_mode = #tpu.pipeline_mode<synchronous>, transform_indices = @transform_2, window_bounds = array<i64: 1, 128>}, {transform_indices = @transform_3, window_bounds = array<i64: 128, 128>}]} {
    %c0 = arith.constant 0 : index
    %c0_0 = arith.constant 0 : index
    %0 = vector.load %arg1[%c0, %c0_0] : memref<128x128xbf16, #tpu.memory_space<vmem>>, vector<128x128xbf16>
    %c0_1 = arith.constant 0 : index
    %c0_2 = arith.constant 0 : index
    %1 = vector.load %arg2[%c0_1, %c0_2] : memref<128x128xbf16, #tpu.memory_space<vmem>>, vector<128x128xbf16>
    %cst = arith.constant dense<0.000000e+00> : vector<128x128xf32>
    %2 = tpu.matmul %0, %1, %cst {dimension_numbers = #tpu.dot_dimension_numbers<[1], [0], [0], [1], [0, 0, 1, 1], [], []>} : vector<128x128xbf16>, vector<128x128xbf16>, vector<128x128xf32> -> vector<128x128xf32>
    %c0_3 = arith.constant 0 : index
    %c0_4 = arith.constant 0 : index
    %3 = vector.load %arg3[%c0_3, %c0_4] : memref<1x128xf32, #tpu.memory_space<vmem>>, vector<1x128xf32>
    %4 = vector.broadcast %3 : vector<1x128xf32> to vector<128x128xf32>
    %5 = arith.addf %2, %4 : vector<128x128xf32>
    %cst_5 = arith.constant 0.000000e+00 : f32
    %6 = vector.broadcast %cst_5 : f32 to vector<128x128xf32>
    %7 = arith.maximumf %5, %6 : vector<128x128xf32>
    %8 = arith.truncf %7 : vector<128x128xf32> to vector<128x128xbf16>
    %c0_6 = arith.constant 0 : index
    %c0_7 = arith.constant 0 : index
    %9 = vector.load %arg4[%c0_6, %c0_7] : memref<128x128xbf16, #tpu.memory_space<vmem>>, vector<128x128xbf16>
    tpu.vector_store %arg4[%c0_6, %c0_7], %8 {strides = array<i32>} : memref<128x128xbf16, #tpu.memory_space<vmem>>, vector<128x128xbf16>,
    return
  }
  func.func @transform_0(%arg0: i32) -> (i32, i32) {
    %c0_i32 = arith.constant 0 : i32
    %c0_i32_0 = arith.constant 0 : i32
    return %arg0, %c0_i32 : i32, i32
  }
  func.func @transform_1(%arg0: i32) -> (i32, i32) {
    %c0_i32 = arith.constant 0 : i32
    %c0_i32_0 = arith.constant 0 : i32
    %c0_i32_1 = arith.constant 0 : i32
    return %c0_i32, %c0_i32_0 : i32, i32
  }
  func.func @transform_2(%arg0: i32) -> (i32, i32) {
    %c0_i32 = arith.constant 0 : i32
    %c0_i32_0 = arith.constant 0 : i32
    %c0_i32_1 = arith.constant 0 : i32
    return %c0_i32, %c0_i32_0 : i32, i32
  }
  func.func @transform_3(%arg0: i32) -> (i32, i32) {
    %c0_i32 = arith.constant 0 : i32
    %c0_i32_0 = arith.constant 0 : i32
    return %arg0, %c0_i32 : i32, i32
  }
}

module attributes {stable_mosaic.version = 11 : i64} {
  func.func @_channel_att_kernel(%arg0: i32, %arg1: i32, %arg2: memref<1x64x32xbf16, #tpu.memory_space<vmem>>, %arg3: memref<1x256x32xbf16, #tpu.memory_space<vmem>>, %arg4: memref<32x16xbf16, #tpu.memory_space<vmem>>, %arg5: memref<32x16xbf16, #tpu.memory_space<vmem>>, %arg6: memref<1x16xf32, #tpu.memory_space<vmem>>, %arg7: memref<16x64xbf16, #tpu.memory_space<vmem>>, %arg8: memref<1x64xf32, #tpu.memory_space<vmem>>, %arg9: memref<1x1x64xf32, #tpu.memory_space<vmem>>, %arg10: memref<1x32xf32, #tpu.memory_space<vmem>>, %arg11: memref<1x32xf32, #tpu.memory_space<vmem>>) attributes {dimension_semantics = [#tpu.dimension_semantics<parallel>, #tpu.dimension_semantics<arbitrary>], iteration_bounds = array<i64: 2, 1>, scalar_prefetch = 0 : i64, scratch_operands = 2 : i64, tpu.core_type = #tpu.core_type<tc>, window_params = [{transform_indices = @transform_0, window_bounds = array<i64: 1, 64, 32>}, {transform_indices = @transform_1, window_bounds = array<i64: 1, 256, 32>}, {pipeline_mode = #tpu.pipeline_mode<synchronous>, transform_indices = @transform_2, window_bounds = array<i64: 32, 16>}, {pipeline_mode = #tpu.pipeline_mode<synchronous>, transform_indices = @transform_3, window_bounds = array<i64: 32, 16>}, {pipeline_mode = #tpu.pipeline_mode<synchronous>, transform_indices = @transform_4, window_bounds = array<i64: 1, 16>}, {pipeline_mode = #tpu.pipeline_mode<synchronous>, transform_indices = @transform_5, window_bounds = array<i64: 16, 64>}, {pipeline_mode = #tpu.pipeline_mode<synchronous>, transform_indices = @transform_6, window_bounds = array<i64: 1, 64>}, {transform_indices = @transform_7, window_bounds = array<i64: 1, 1, 64>}]} {
    %c0_i32 = arith.constant 0 : i32
    %0 = arith.cmpi eq, %arg1, %c0_i32 : i32
    %1 = arith.extui %0 : i1 to i32
    %c0_i32_0 = arith.constant 0 : i32
    %2 = arith.cmpi ne, %1, %c0_i32_0 : i32
    scf.if %2 {
      %cst_17 = arith.constant 0.000000e+00 : f32
      %18 = vector.broadcast %cst_17 : f32 to vector<1x32xf32>
      %c0_18 = arith.constant 0 : index
      %c0_19 = arith.constant 0 : index
      %19 = vector.load %arg10[%c0_18, %c0_19] : memref<1x32xf32, #tpu.memory_space<vmem>>, vector<1x32xf32>
      tpu.vector_store %arg10[%c0_18, %c0_19], %18 {strides = array<i32>} : memref<1x32xf32, #tpu.memory_space<vmem>>, vector<1x32xf32>,
      %cst_20 = arith.constant 0.000000e+00 : f32
      %20 = vector.broadcast %cst_20 : f32 to vector<1x32xf32>
      %c0_21 = arith.constant 0 : index
      %c0_22 = arith.constant 0 : index
      %21 = vector.load %arg11[%c0_21, %c0_22] : memref<1x32xf32, #tpu.memory_space<vmem>>, vector<1x32xf32>
      tpu.vector_store %arg11[%c0_21, %c0_22], %20 {strides = array<i32>} : memref<1x32xf32, #tpu.memory_space<vmem>>, vector<1x32xf32>,
    } else {
    }
    %c0 = arith.constant 0 : index
    %c0_1 = arith.constant 0 : index
    %3 = vector.load %arg10[%c0, %c0_1] : memref<1x32xf32, #tpu.memory_space<vmem>>, vector<1x32xf32>
    %c0_2 = arith.constant 0 : index
    %c0_3 = arith.constant 0 : index
    %c0_4 = arith.constant 0 : index
    %4 = vector.load %arg2[%c0_2, %c0_3, %c0_4] : memref<1x64x32xbf16, #tpu.memory_space<vmem>>, vector<1x64x32xbf16>
    %5 = arith.extf %4 : vector<1x64x32xbf16> to vector<1x64x32xf32>
    %cst = arith.constant dense<0.000000e+00> : vector<1x32xf32>
    %6 = vector.multi_reduction <add>, %5, %cst [1] : vector<1x64x32xf32> to vector<1x32xf32>
    %7 = arith.addf %3, %6 : vector<1x32xf32>
    %c0_5 = arith.constant 0 : index
    %c0_6 = arith.constant 0 : index
    %8 = vector.load %arg10[%c0_5, %c0_6] : memref<1x32xf32, #tpu.memory_space<vmem>>, vector<1x32xf32>
    tpu.vector_store %arg10[%c0_5, %c0_6], %7 {strides = array<i32>} : memref<1x32xf32, #tpu.memory_space<vmem>>, vector<1x32xf32>,
    %c0_7 = arith.constant 0 : index
    %c0_8 = arith.constant 0 : index
    %9 = vector.load %arg11[%c0_7, %c0_8] : memref<1x32xf32, #tpu.memory_space<vmem>>, vector<1x32xf32>
    %c0_9 = arith.constant 0 : index
    %c0_10 = arith.constant 0 : index
    %c0_11 = arith.constant 0 : index
    %10 = vector.load %arg3[%c0_9, %c0_10, %c0_11] : memref<1x256x32xbf16, #tpu.memory_space<vmem>>, vector<1x256x32xbf16>
    %11 = arith.extf %10 : vector<1x256x32xbf16> to vector<1x256x32xf32>
    %cst_12 = arith.constant dense<0.000000e+00> : vector<1x32xf32>
    %12 = vector.multi_reduction <add>, %11, %cst_12 [1] : vector<1x256x32xf32> to vector<1x32xf32>
    %13 = arith.addf %9, %12 : vector<1x32xf32>
    %c0_13 = arith.constant 0 : index
    %c0_14 = arith.constant 0 : index
    %14 = vector.load %arg11[%c0_13, %c0_14] : memref<1x32xf32, #tpu.memory_space<vmem>>, vector<1x32xf32>
    tpu.vector_store %arg11[%c0_13, %c0_14], %13 {strides = array<i32>} : memref<1x32xf32, #tpu.memory_space<vmem>>, vector<1x32xf32>,
    %c0_i32_15 = arith.constant 0 : i32
    %15 = arith.cmpi eq, %arg1, %c0_i32_15 : i32
    %16 = arith.extui %15 : i1 to i32
    %c0_i32_16 = arith.constant 0 : i32
    %17 = arith.cmpi ne, %16, %c0_i32_16 : i32
    scf.if %17 {
      %c0_17 = arith.constant 0 : index
      %c0_18 = arith.constant 0 : index
      %18 = vector.load %arg10[%c0_17, %c0_18] : memref<1x32xf32, #tpu.memory_space<vmem>>, vector<1x32xf32>
      %cst_19 = arith.constant 1.562500e-02 : f32
      %19 = vector.broadcast %cst_19 : f32 to vector<1x32xf32>
      %20 = arith.mulf %18, %19 : vector<1x32xf32>
      %21 = arith.truncf %20 : vector<1x32xf32> to vector<1x32xbf16>
      %c0_20 = arith.constant 0 : index
      %c0_21 = arith.constant 0 : index
      %22 = vector.load %arg11[%c0_20, %c0_21] : memref<1x32xf32, #tpu.memory_space<vmem>>, vector<1x32xf32>
      %cst_22 = arith.constant 3.906250e-03 : f32
      %23 = vector.broadcast %cst_22 : f32 to vector<1x32xf32>
      %24 = arith.mulf %22, %23 : vector<1x32xf32>
      %25 = arith.truncf %24 : vector<1x32xf32> to vector<1x32xbf16>
      %c0_23 = arith.constant 0 : index
      %c0_24 = arith.constant 0 : index
      %26 = vector.load %arg4[%c0_23, %c0_24] : memref<32x16xbf16, #tpu.memory_space<vmem>>, vector<32x16xbf16>
      %cst_25 = arith.constant dense<0.000000e+00> : vector<1x16xf32>
      %27 = tpu.matmul %21, %26, %cst_25 {dimension_numbers = #tpu.dot_dimension_numbers<[1], [0], [0], [1], [0, 0, 1, 1], [], []>} : vector<1x32xbf16>, vector<32x16xbf16>, vector<1x16xf32> -> vector<1x16xf32>
      %c0_26 = arith.constant 0 : index
      %c0_27 = arith.constant 0 : index
      %28 = vector.load %arg5[%c0_26, %c0_27] : memref<32x16xbf16, #tpu.memory_space<vmem>>, vector<32x16xbf16>
      %cst_28 = arith.constant dense<0.000000e+00> : vector<1x16xf32>
      %29 = tpu.matmul %25, %28, %cst_28 {dimension_numbers = #tpu.dot_dimension_numbers<[1], [0], [0], [1], [0, 0, 1, 1], [], []>} : vector<1x32xbf16>, vector<32x16xbf16>, vector<1x16xf32> -> vector<1x16xf32>
      %30 = arith.addf %27, %29 : vector<1x16xf32>
      %c0_29 = arith.constant 0 : index
      %c0_30 = arith.constant 0 : index
      %31 = vector.load %arg6[%c0_29, %c0_30] : memref<1x16xf32, #tpu.memory_space<vmem>>, vector<1x16xf32>
      %32 = arith.addf %30, %31 : vector<1x16xf32>
      %cst_31 = arith.constant 0.000000e+00 : f32
      %33 = vector.broadcast %cst_31 : f32 to vector<1x16xf32>
      %34 = arith.maximumf %32, %33 : vector<1x16xf32>
      %35 = arith.truncf %34 : vector<1x16xf32> to vector<1x16xbf16>
      %c0_32 = arith.constant 0 : index
      %c0_33 = arith.constant 0 : index
      %36 = vector.load %arg7[%c0_32, %c0_33] : memref<16x64xbf16, #tpu.memory_space<vmem>>, vector<16x64xbf16>
      %cst_34 = arith.constant dense<0.000000e+00> : vector<1x64xf32>
      %37 = tpu.matmul %35, %36, %cst_34 {dimension_numbers = #tpu.dot_dimension_numbers<[1], [0], [0], [1], [0, 0, 1, 1], [], []>} : vector<1x16xbf16>, vector<16x64xbf16>, vector<1x64xf32> -> vector<1x64xf32>
      %c0_35 = arith.constant 0 : index
      %c0_36 = arith.constant 0 : index
      %38 = vector.load %arg8[%c0_35, %c0_36] : memref<1x64xf32, #tpu.memory_space<vmem>>, vector<1x64xf32>
      %39 = arith.addf %37, %38 : vector<1x64xf32>
      %40 = arith.negf %39 : vector<1x64xf32>
      %41 = math.exp %40 : vector<1x64xf32>
      %cst_37 = arith.constant 1.000000e+00 : f32
      %42 = vector.broadcast %cst_37 : f32 to vector<1x64xf32>
      %43 = arith.addf %42, %41 : vector<1x64xf32>
      %44 = arith.divf %42, %43 : vector<1x64xf32>
      %45 = vector.shape_cast %44 : vector<1x64xf32> to vector<1x1x64xf32>
      %c0_38 = arith.constant 0 : index
      %c0_39 = arith.constant 0 : index
      %c0_40 = arith.constant 0 : index
      %46 = vector.load %arg9[%c0_38, %c0_39, %c0_40] : memref<1x1x64xf32, #tpu.memory_space<vmem>>, vector<1x1x64xf32>
      tpu.vector_store %arg9[%c0_38, %c0_39, %c0_40], %45 {strides = array<i32>} : memref<1x1x64xf32, #tpu.memory_space<vmem>>, vector<1x1x64xf32>,
    } else {
    }
    return
  }
  func.func @transform_0(%arg0: i32, %arg1: i32) -> (i32, i32, i32) {
    %c0_i32 = arith.constant 0 : i32
    %c0_i32_0 = arith.constant 0 : i32
    return %arg0, %arg1, %c0_i32 : i32, i32, i32
  }
  func.func @transform_1(%arg0: i32, %arg1: i32) -> (i32, i32, i32) {
    %c0_i32 = arith.constant 0 : i32
    %c0_i32_0 = arith.constant 0 : i32
    return %arg0, %arg1, %c0_i32 : i32, i32, i32
  }
  func.func @transform_2(%arg0: i32, %arg1: i32) -> (i32, i32) {
    %c0_i32 = arith.constant 0 : i32
    %c0_i32_0 = arith.constant 0 : i32
    %c0_i32_1 = arith.constant 0 : i32
    return %c0_i32, %c0_i32_0 : i32, i32
  }
  func.func @transform_3(%arg0: i32, %arg1: i32) -> (i32, i32) {
    %c0_i32 = arith.constant 0 : i32
    %c0_i32_0 = arith.constant 0 : i32
    %c0_i32_1 = arith.constant 0 : i32
    return %c0_i32, %c0_i32_0 : i32, i32
  }
  func.func @transform_4(%arg0: i32, %arg1: i32) -> (i32, i32) {
    %c0_i32 = arith.constant 0 : i32
    %c0_i32_0 = arith.constant 0 : i32
    %c0_i32_1 = arith.constant 0 : i32
    return %c0_i32, %c0_i32_0 : i32, i32
  }
  func.func @transform_5(%arg0: i32, %arg1: i32) -> (i32, i32) {
    %c0_i32 = arith.constant 0 : i32
    %c0_i32_0 = arith.constant 0 : i32
    %c0_i32_1 = arith.constant 0 : i32
    return %c0_i32, %c0_i32_0 : i32, i32
  }
  func.func @transform_6(%arg0: i32, %arg1: i32) -> (i32, i32) {
    %c0_i32 = arith.constant 0 : i32
    %c0_i32_0 = arith.constant 0 : i32
    %c0_i32_1 = arith.constant 0 : i32
    return %c0_i32, %c0_i32_0 : i32, i32
  }
  func.func @transform_7(%arg0: i32, %arg1: i32) -> (i32, i32, i32) {
    %c0_i32 = arith.constant 0 : i32
    %c0_i32_0 = arith.constant 0 : i32
    %c0_i32_1 = arith.constant 0 : i32
    return %arg0, %c0_i32, %c0_i32_0 : i32, i32, i32
  }
}

module attributes {stable_mosaic.version = 11 : i64} {
  func.func @_channel_att_kernel(%arg0: i32, %arg1: i32, %arg2: memref<1x64x32xbf16, #tpu.memory_space<vmem>>, %arg3: memref<1x64x32xbf16, #tpu.memory_space<vmem>>, %arg4: memref<32x16xbf16, #tpu.memory_space<vmem>>, %arg5: memref<32x16xbf16, #tpu.memory_space<vmem>>, %arg6: memref<1x16xf32, #tpu.memory_space<vmem>>, %arg7: memref<16x64xbf16, #tpu.memory_space<vmem>>, %arg8: memref<1x64xf32, #tpu.memory_space<vmem>>, %arg9: memref<1x1x64xf32, #tpu.memory_space<vmem>>, %arg10: memref<1x32xf32, #tpu.memory_space<vmem>>, %arg11: memref<1x32xf32, #tpu.memory_space<vmem>>) attributes {dimension_semantics = [#tpu.dimension_semantics<parallel>, #tpu.dimension_semantics<arbitrary>], iteration_bounds = array<i64: 2, 1>, scalar_prefetch = 0 : i64, scratch_operands = 2 : i64, tpu.core_type = #tpu.core_type<tc>, window_params = [{transform_indices = @transform_0, window_bounds = array<i64: 1, 64, 32>}, {transform_indices = @transform_1, window_bounds = array<i64: 1, 64, 32>}, {pipeline_mode = #tpu.pipeline_mode<synchronous>, transform_indices = @transform_2, window_bounds = array<i64: 32, 16>}, {pipeline_mode = #tpu.pipeline_mode<synchronous>, transform_indices = @transform_3, window_bounds = array<i64: 32, 16>}, {pipeline_mode = #tpu.pipeline_mode<synchronous>, transform_indices = @transform_4, window_bounds = array<i64: 1, 16>}, {pipeline_mode = #tpu.pipeline_mode<synchronous>, transform_indices = @transform_5, window_bounds = array<i64: 16, 64>}, {pipeline_mode = #tpu.pipeline_mode<synchronous>, transform_indices = @transform_6, window_bounds = array<i64: 1, 64>}, {transform_indices = @transform_7, window_bounds = array<i64: 1, 1, 64>}]} {
    %c0_i32 = arith.constant 0 : i32
    %0 = arith.cmpi eq, %arg1, %c0_i32 : i32
    %1 = arith.extui %0 : i1 to i32
    %c0_i32_0 = arith.constant 0 : i32
    %2 = arith.cmpi ne, %1, %c0_i32_0 : i32
    scf.if %2 {
      %cst_17 = arith.constant 0.000000e+00 : f32
      %18 = vector.broadcast %cst_17 : f32 to vector<1x32xf32>
      %c0_18 = arith.constant 0 : index
      %c0_19 = arith.constant 0 : index
      %19 = vector.load %arg10[%c0_18, %c0_19] : memref<1x32xf32, #tpu.memory_space<vmem>>, vector<1x32xf32>
      tpu.vector_store %arg10[%c0_18, %c0_19], %18 {strides = array<i32>} : memref<1x32xf32, #tpu.memory_space<vmem>>, vector<1x32xf32>,
      %cst_20 = arith.constant 0.000000e+00 : f32
      %20 = vector.broadcast %cst_20 : f32 to vector<1x32xf32>
      %c0_21 = arith.constant 0 : index
      %c0_22 = arith.constant 0 : index
      %21 = vector.load %arg11[%c0_21, %c0_22] : memref<1x32xf32, #tpu.memory_space<vmem>>, vector<1x32xf32>
      tpu.vector_store %arg11[%c0_21, %c0_22], %20 {strides = array<i32>} : memref<1x32xf32, #tpu.memory_space<vmem>>, vector<1x32xf32>,
    } else {
    }
    %c0 = arith.constant 0 : index
    %c0_1 = arith.constant 0 : index
    %3 = vector.load %arg10[%c0, %c0_1] : memref<1x32xf32, #tpu.memory_space<vmem>>, vector<1x32xf32>
    %c0_2 = arith.constant 0 : index
    %c0_3 = arith.constant 0 : index
    %c0_4 = arith.constant 0 : index
    %4 = vector.load %arg2[%c0_2, %c0_3, %c0_4] : memref<1x64x32xbf16, #tpu.memory_space<vmem>>, vector<1x64x32xbf16>
    %5 = arith.extf %4 : vector<1x64x32xbf16> to vector<1x64x32xf32>
    %cst = arith.constant dense<0.000000e+00> : vector<1x32xf32>
    %6 = vector.multi_reduction <add>, %5, %cst [1] : vector<1x64x32xf32> to vector<1x32xf32>
    %7 = arith.addf %3, %6 : vector<1x32xf32>
    %c0_5 = arith.constant 0 : index
    %c0_6 = arith.constant 0 : index
    %8 = vector.load %arg10[%c0_5, %c0_6] : memref<1x32xf32, #tpu.memory_space<vmem>>, vector<1x32xf32>
    tpu.vector_store %arg10[%c0_5, %c0_6], %7 {strides = array<i32>} : memref<1x32xf32, #tpu.memory_space<vmem>>, vector<1x32xf32>,
    %c0_7 = arith.constant 0 : index
    %c0_8 = arith.constant 0 : index
    %9 = vector.load %arg11[%c0_7, %c0_8] : memref<1x32xf32, #tpu.memory_space<vmem>>, vector<1x32xf32>
    %c0_9 = arith.constant 0 : index
    %c0_10 = arith.constant 0 : index
    %c0_11 = arith.constant 0 : index
    %10 = vector.load %arg3[%c0_9, %c0_10, %c0_11] : memref<1x64x32xbf16, #tpu.memory_space<vmem>>, vector<1x64x32xbf16>
    %11 = arith.extf %10 : vector<1x64x32xbf16> to vector<1x64x32xf32>
    %cst_12 = arith.constant dense<0.000000e+00> : vector<1x32xf32>
    %12 = vector.multi_reduction <add>, %11, %cst_12 [1] : vector<1x64x32xf32> to vector<1x32xf32>
    %13 = arith.addf %9, %12 : vector<1x32xf32>
    %c0_13 = arith.constant 0 : index
    %c0_14 = arith.constant 0 : index
    %14 = vector.load %arg11[%c0_13, %c0_14] : memref<1x32xf32, #tpu.memory_space<vmem>>, vector<1x32xf32>
    tpu.vector_store %arg11[%c0_13, %c0_14], %13 {strides = array<i32>} : memref<1x32xf32, #tpu.memory_space<vmem>>, vector<1x32xf32>,
    %c0_i32_15 = arith.constant 0 : i32
    %15 = arith.cmpi eq, %arg1, %c0_i32_15 : i32
    %16 = arith.extui %15 : i1 to i32
    %c0_i32_16 = arith.constant 0 : i32
    %17 = arith.cmpi ne, %16, %c0_i32_16 : i32
    scf.if %17 {
      %c0_17 = arith.constant 0 : index
      %c0_18 = arith.constant 0 : index
      %18 = vector.load %arg10[%c0_17, %c0_18] : memref<1x32xf32, #tpu.memory_space<vmem>>, vector<1x32xf32>
      %cst_19 = arith.constant 1.562500e-02 : f32
      %19 = vector.broadcast %cst_19 : f32 to vector<1x32xf32>
      %20 = arith.mulf %18, %19 : vector<1x32xf32>
      %21 = arith.truncf %20 : vector<1x32xf32> to vector<1x32xbf16>
      %c0_20 = arith.constant 0 : index
      %c0_21 = arith.constant 0 : index
      %22 = vector.load %arg11[%c0_20, %c0_21] : memref<1x32xf32, #tpu.memory_space<vmem>>, vector<1x32xf32>
      %cst_22 = arith.constant 1.562500e-02 : f32
      %23 = vector.broadcast %cst_22 : f32 to vector<1x32xf32>
      %24 = arith.mulf %22, %23 : vector<1x32xf32>
      %25 = arith.truncf %24 : vector<1x32xf32> to vector<1x32xbf16>
      %c0_23 = arith.constant 0 : index
      %c0_24 = arith.constant 0 : index
      %26 = vector.load %arg4[%c0_23, %c0_24] : memref<32x16xbf16, #tpu.memory_space<vmem>>, vector<32x16xbf16>
      %cst_25 = arith.constant dense<0.000000e+00> : vector<1x16xf32>
      %27 = tpu.matmul %21, %26, %cst_25 {dimension_numbers = #tpu.dot_dimension_numbers<[1], [0], [0], [1], [0, 0, 1, 1], [], []>} : vector<1x32xbf16>, vector<32x16xbf16>, vector<1x16xf32> -> vector<1x16xf32>
      %c0_26 = arith.constant 0 : index
      %c0_27 = arith.constant 0 : index
      %28 = vector.load %arg5[%c0_26, %c0_27] : memref<32x16xbf16, #tpu.memory_space<vmem>>, vector<32x16xbf16>
      %cst_28 = arith.constant dense<0.000000e+00> : vector<1x16xf32>
      %29 = tpu.matmul %25, %28, %cst_28 {dimension_numbers = #tpu.dot_dimension_numbers<[1], [0], [0], [1], [0, 0, 1, 1], [], []>} : vector<1x32xbf16>, vector<32x16xbf16>, vector<1x16xf32> -> vector<1x16xf32>
      %30 = arith.addf %27, %29 : vector<1x16xf32>
      %c0_29 = arith.constant 0 : index
      %c0_30 = arith.constant 0 : index
      %31 = vector.load %arg6[%c0_29, %c0_30] : memref<1x16xf32, #tpu.memory_space<vmem>>, vector<1x16xf32>
      %32 = arith.addf %30, %31 : vector<1x16xf32>
      %cst_31 = arith.constant 0.000000e+00 : f32
      %33 = vector.broadcast %cst_31 : f32 to vector<1x16xf32>
      %34 = arith.maximumf %32, %33 : vector<1x16xf32>
      %35 = arith.truncf %34 : vector<1x16xf32> to vector<1x16xbf16>
      %c0_32 = arith.constant 0 : index
      %c0_33 = arith.constant 0 : index
      %36 = vector.load %arg7[%c0_32, %c0_33] : memref<16x64xbf16, #tpu.memory_space<vmem>>, vector<16x64xbf16>
      %cst_34 = arith.constant dense<0.000000e+00> : vector<1x64xf32>
      %37 = tpu.matmul %35, %36, %cst_34 {dimension_numbers = #tpu.dot_dimension_numbers<[1], [0], [0], [1], [0, 0, 1, 1], [], []>} : vector<1x16xbf16>, vector<16x64xbf16>, vector<1x64xf32> -> vector<1x64xf32>
      %c0_35 = arith.constant 0 : index
      %c0_36 = arith.constant 0 : index
      %38 = vector.load %arg8[%c0_35, %c0_36] : memref<1x64xf32, #tpu.memory_space<vmem>>, vector<1x64xf32>
      %39 = arith.addf %37, %38 : vector<1x64xf32>
      %40 = arith.negf %39 : vector<1x64xf32>
      %41 = math.exp %40 : vector<1x64xf32>
      %cst_37 = arith.constant 1.000000e+00 : f32
      %42 = vector.broadcast %cst_37 : f32 to vector<1x64xf32>
      %43 = arith.addf %42, %41 : vector<1x64xf32>
      %44 = arith.divf %42, %43 : vector<1x64xf32>
      %45 = vector.shape_cast %44 : vector<1x64xf32> to vector<1x1x64xf32>
      %c0_38 = arith.constant 0 : index
      %c0_39 = arith.constant 0 : index
      %c0_40 = arith.constant 0 : index
      %46 = vector.load %arg9[%c0_38, %c0_39, %c0_40] : memref<1x1x64xf32, #tpu.memory_space<vmem>>, vector<1x1x64xf32>
      tpu.vector_store %arg9[%c0_38, %c0_39, %c0_40], %45 {strides = array<i32>} : memref<1x1x64xf32, #tpu.memory_space<vmem>>, vector<1x1x64xf32>,
    } else {
    }
    return
  }
  func.func @transform_0(%arg0: i32, %arg1: i32) -> (i32, i32, i32) {
    %c0_i32 = arith.constant 0 : i32
    %c0_i32_0 = arith.constant 0 : i32
    return %arg0, %arg1, %c0_i32 : i32, i32, i32
  }
  func.func @transform_1(%arg0: i32, %arg1: i32) -> (i32, i32, i32) {
    %c0_i32 = arith.constant 0 : i32
    %c0_i32_0 = arith.constant 0 : i32
    return %arg0, %arg1, %c0_i32 : i32, i32, i32
  }
  func.func @transform_2(%arg0: i32, %arg1: i32) -> (i32, i32) {
    %c0_i32 = arith.constant 0 : i32
    %c0_i32_0 = arith.constant 0 : i32
    %c0_i32_1 = arith.constant 0 : i32
    return %c0_i32, %c0_i32_0 : i32, i32
  }
  func.func @transform_3(%arg0: i32, %arg1: i32) -> (i32, i32) {
    %c0_i32 = arith.constant 0 : i32
    %c0_i32_0 = arith.constant 0 : i32
    %c0_i32_1 = arith.constant 0 : i32
    return %c0_i32, %c0_i32_0 : i32, i32
  }
  func.func @transform_4(%arg0: i32, %arg1: i32) -> (i32, i32) {
    %c0_i32 = arith.constant 0 : i32
    %c0_i32_0 = arith.constant 0 : i32
    %c0_i32_1 = arith.constant 0 : i32
    return %c0_i32, %c0_i32_0 : i32, i32
  }
  func.func @transform_5(%arg0: i32, %arg1: i32) -> (i32, i32) {
    %c0_i32 = arith.constant 0 : i32
    %c0_i32_0 = arith.constant 0 : i32
    %c0_i32_1 = arith.constant 0 : i32
    return %c0_i32, %c0_i32_0 : i32, i32
  }
  func.func @transform_6(%arg0: i32, %arg1: i32) -> (i32, i32) {
    %c0_i32 = arith.constant 0 : i32
    %c0_i32_0 = arith.constant 0 : i32
    %c0_i32_1 = arith.constant 0 : i32
    return %c0_i32, %c0_i32_0 : i32, i32
  }
  func.func @transform_7(%arg0: i32, %arg1: i32) -> (i32, i32, i32) {
    %c0_i32 = arith.constant 0 : i32
    %c0_i32_0 = arith.constant 0 : i32
    %c0_i32_1 = arith.constant 0 : i32
    return %arg0, %c0_i32, %c0_i32_0 : i32, i32, i32
  }
}

module attributes {stable_mosaic.version = 11 : i64} {
  func.func @_mm_kernel(%arg0: i32, %arg1: memref<64x288xbf16, #tpu.memory_space<vmem>>, %arg2: memref<288x64xbf16, #tpu.memory_space<vmem>>, %arg3: memref<1x64xf32, #tpu.memory_space<vmem>>, %arg4: memref<64x64xbf16, #tpu.memory_space<vmem>>) attributes {dimension_semantics = [#tpu.dimension_semantics<parallel>], iteration_bounds = array<i64: 1>, scalar_prefetch = 0 : i64, scratch_operands = 0 : i64, tpu.core_type = #tpu.core_type<tc>, window_params = [{transform_indices = @transform_0, window_bounds = array<i64: 64, 288>}, {pipeline_mode = #tpu.pipeline_mode<synchronous>, transform_indices = @transform_1, window_bounds = array<i64: 288, 64>}, {pipeline_mode = #tpu.pipeline_mode<synchronous>, transform_indices = @transform_2, window_bounds = array<i64: 1, 64>}, {transform_indices = @transform_3, window_bounds = array<i64: 64, 64>}]} {
    %c0 = arith.constant 0 : index
    %c0_0 = arith.constant 0 : index
    %0 = vector.load %arg1[%c0, %c0_0] : memref<64x288xbf16, #tpu.memory_space<vmem>>, vector<64x288xbf16>
    %c0_1 = arith.constant 0 : index
    %c0_2 = arith.constant 0 : index
    %1 = vector.load %arg2[%c0_1, %c0_2] : memref<288x64xbf16, #tpu.memory_space<vmem>>, vector<288x64xbf16>
    %cst = arith.constant dense<0.000000e+00> : vector<64x64xf32>
    %2 = tpu.matmul %0, %1, %cst {dimension_numbers = #tpu.dot_dimension_numbers<[1], [0], [0], [1], [0, 0, 1, 1], [], []>} : vector<64x288xbf16>, vector<288x64xbf16>, vector<64x64xf32> -> vector<64x64xf32>
    %c0_3 = arith.constant 0 : index
    %c0_4 = arith.constant 0 : index
    %3 = vector.load %arg3[%c0_3, %c0_4] : memref<1x64xf32, #tpu.memory_space<vmem>>, vector<1x64xf32>
    %4 = vector.broadcast %3 : vector<1x64xf32> to vector<64x64xf32>
    %5 = arith.addf %2, %4 : vector<64x64xf32>
    %cst_5 = arith.constant 0.000000e+00 : f32
    %6 = vector.broadcast %cst_5 : f32 to vector<64x64xf32>
    %7 = arith.maximumf %5, %6 : vector<64x64xf32>
    %8 = tpu.iota {dimensions = array<i32: 1>} : vector<64x64xi32>
    %c32_i32 = arith.constant 32 : i32
    %9 = vector.broadcast %c32_i32 : i32 to vector<64x64xi32>
    %10 = arith.cmpi slt, %8, %9 : vector<64x64xi32>
    %11 = arith.select %10, %7, %5 : vector<64x64xi1>, vector<64x64xf32>
    %12 = arith.truncf %11 : vector<64x64xf32> to vector<64x64xbf16>
    %c0_6 = arith.constant 0 : index
    %c0_7 = arith.constant 0 : index
    %13 = vector.load %arg4[%c0_6, %c0_7] : memref<64x64xbf16, #tpu.memory_space<vmem>>, vector<64x64xbf16>
    tpu.vector_store %arg4[%c0_6, %c0_7], %12 {strides = array<i32>} : memref<64x64xbf16, #tpu.memory_space<vmem>>, vector<64x64xbf16>,
    return
  }
  func.func @transform_0(%arg0: i32) -> (i32, i32) {
    %c0_i32 = arith.constant 0 : i32
    %c0_i32_0 = arith.constant 0 : i32
    return %arg0, %c0_i32 : i32, i32
  }
  func.func @transform_1(%arg0: i32) -> (i32, i32) {
    %c0_i32 = arith.constant 0 : i32
    %c0_i32_0 = arith.constant 0 : i32
    %c0_i32_1 = arith.constant 0 : i32
    return %c0_i32, %c0_i32_0 : i32, i32
  }
  func.func @transform_2(%arg0: i32) -> (i32, i32) {
    %c0_i32 = arith.constant 0 : i32
    %c0_i32_0 = arith.constant 0 : i32
    %c0_i32_1 = arith.constant 0 : i32
    return %c0_i32, %c0_i32_0 : i32, i32
  }
  func.func @transform_3(%arg0: i32) -> (i32, i32) {
    %c0_i32 = arith.constant 0 : i32
    %c0_i32_0 = arith.constant 0 : i32
    return %arg0, %c0_i32 : i32, i32
  }
}

module attributes {stable_mosaic.version = 11 : i64} {
  func.func @_mm_kernel(%arg0: i32, %arg1: memref<64x288xbf16, #tpu.memory_space<vmem>>, %arg2: memref<288x32xbf16, #tpu.memory_space<vmem>>, %arg3: memref<1x32xf32, #tpu.memory_space<vmem>>, %arg4: memref<64x32xbf16, #tpu.memory_space<vmem>>, %arg5: memref<64x32xbf16, #tpu.memory_space<vmem>>) attributes {dimension_semantics = [#tpu.dimension_semantics<parallel>], iteration_bounds = array<i64: 1>, scalar_prefetch = 0 : i64, scratch_operands = 0 : i64, tpu.core_type = #tpu.core_type<tc>, window_params = [{transform_indices = @transform_0, window_bounds = array<i64: 64, 288>}, {pipeline_mode = #tpu.pipeline_mode<synchronous>, transform_indices = @transform_1, window_bounds = array<i64: 288, 32>}, {pipeline_mode = #tpu.pipeline_mode<synchronous>, transform_indices = @transform_2, window_bounds = array<i64: 1, 32>}, {transform_indices = @transform_3, window_bounds = array<i64: 64, 32>}, {transform_indices = @transform_4, window_bounds = array<i64: 64, 32>}]} {
    %c0 = arith.constant 0 : index
    %c0_0 = arith.constant 0 : index
    %0 = vector.load %arg1[%c0, %c0_0] : memref<64x288xbf16, #tpu.memory_space<vmem>>, vector<64x288xbf16>
    %c0_1 = arith.constant 0 : index
    %c0_2 = arith.constant 0 : index
    %1 = vector.load %arg2[%c0_1, %c0_2] : memref<288x32xbf16, #tpu.memory_space<vmem>>, vector<288x32xbf16>
    %cst = arith.constant dense<0.000000e+00> : vector<64x32xf32>
    %2 = tpu.matmul %0, %1, %cst {dimension_numbers = #tpu.dot_dimension_numbers<[1], [0], [0], [1], [0, 0, 1, 1], [], []>} : vector<64x288xbf16>, vector<288x32xbf16>, vector<64x32xf32> -> vector<64x32xf32>
    %c0_3 = arith.constant 0 : index
    %c0_4 = arith.constant 0 : index
    %3 = vector.load %arg3[%c0_3, %c0_4] : memref<1x32xf32, #tpu.memory_space<vmem>>, vector<1x32xf32>
    %4 = vector.broadcast %3 : vector<1x32xf32> to vector<64x32xf32>
    %5 = arith.addf %2, %4 : vector<64x32xf32>
    %c0_5 = arith.constant 0 : index
    %c0_6 = arith.constant 0 : index
    %6 = vector.load %arg4[%c0_5, %c0_6] : memref<64x32xbf16, #tpu.memory_space<vmem>>, vector<64x32xbf16>
    %7 = arith.extf %6 : vector<64x32xbf16> to vector<64x32xf32>
    %8 = arith.addf %5, %7 : vector<64x32xf32>
    %cst_7 = arith.constant 0.000000e+00 : f32
    %9 = vector.broadcast %cst_7 : f32 to vector<64x32xf32>
    %10 = arith.maximumf %8, %9 : vector<64x32xf32>
    %11 = arith.truncf %10 : vector<64x32xf32> to vector<64x32xbf16>
    %c0_8 = arith.constant 0 : index
    %c0_9 = arith.constant 0 : index
    %12 = vector.load %arg5[%c0_8, %c0_9] : memref<64x32xbf16, #tpu.memory_space<vmem>>, vector<64x32xbf16>
    tpu.vector_store %arg5[%c0_8, %c0_9], %11 {strides = array<i32>} : memref<64x32xbf16, #tpu.memory_space<vmem>>, vector<64x32xbf16>,
    return
  }
  func.func @transform_0(%arg0: i32) -> (i32, i32) {
    %c0_i32 = arith.constant 0 : i32
    %c0_i32_0 = arith.constant 0 : i32
    return %arg0, %c0_i32 : i32, i32
  }
  func.func @transform_1(%arg0: i32) -> (i32, i32) {
    %c0_i32 = arith.constant 0 : i32
    %c0_i32_0 = arith.constant 0 : i32
    %c0_i32_1 = arith.constant 0 : i32
    return %c0_i32, %c0_i32_0 : i32, i32
  }
  func.func @transform_2(%arg0: i32) -> (i32, i32) {
    %c0_i32 = arith.constant 0 : i32
    %c0_i32_0 = arith.constant 0 : i32
    %c0_i32_1 = arith.constant 0 : i32
    return %c0_i32, %c0_i32_0 : i32, i32
  }
  func.func @transform_3(%arg0: i32) -> (i32, i32) {
    %c0_i32 = arith.constant 0 : i32
    %c0_i32_0 = arith.constant 0 : i32
    return %arg0, %c0_i32 : i32, i32
  }
  func.func @transform_4(%arg0: i32) -> (i32, i32) {
    %c0_i32 = arith.constant 0 : i32
    %c0_i32_0 = arith.constant 0 : i32
    return %arg0, %c0_i32 : i32, i32
  }
}

module attributes {stable_mosaic.version = 11 : i64} {
  func.func @_mm_kernel(%arg0: i32, %arg1: memref<128x18xbf16, #tpu.memory_space<vmem>>, %arg2: memref<18x128xbf16, #tpu.memory_space<vmem>>, %arg3: memref<1x128xf32, #tpu.memory_space<vmem>>, %arg4: memref<128x128xbf16, #tpu.memory_space<vmem>>) attributes {dimension_semantics = [#tpu.dimension_semantics<parallel>], iteration_bounds = array<i64: 1>, scalar_prefetch = 0 : i64, scratch_operands = 0 : i64, tpu.core_type = #tpu.core_type<tc>, window_params = [{transform_indices = @transform_0, window_bounds = array<i64: 128, 18>}, {pipeline_mode = #tpu.pipeline_mode<synchronous>, transform_indices = @transform_1, window_bounds = array<i64: 18, 128>}, {pipeline_mode = #tpu.pipeline_mode<synchronous>, transform_indices = @transform_2, window_bounds = array<i64: 1, 128>}, {transform_indices = @transform_3, window_bounds = array<i64: 128, 128>}]} {
    %c0 = arith.constant 0 : index
    %c0_0 = arith.constant 0 : index
    %0 = vector.load %arg1[%c0, %c0_0] : memref<128x18xbf16, #tpu.memory_space<vmem>>, vector<128x18xbf16>
    %c0_1 = arith.constant 0 : index
    %c0_2 = arith.constant 0 : index
    %1 = vector.load %arg2[%c0_1, %c0_2] : memref<18x128xbf16, #tpu.memory_space<vmem>>, vector<18x128xbf16>
    %cst = arith.constant dense<0.000000e+00> : vector<128x128xf32>
    %2 = tpu.matmul %0, %1, %cst {dimension_numbers = #tpu.dot_dimension_numbers<[1], [0], [0], [1], [0, 0, 1, 1], [], []>} : vector<128x18xbf16>, vector<18x128xbf16>, vector<128x128xf32> -> vector<128x128xf32>
    %c0_3 = arith.constant 0 : index
    %c0_4 = arith.constant 0 : index
    %3 = vector.load %arg3[%c0_3, %c0_4] : memref<1x128xf32, #tpu.memory_space<vmem>>, vector<1x128xf32>
    %4 = vector.broadcast %3 : vector<1x128xf32> to vector<128x128xf32>
    %5 = arith.addf %2, %4 : vector<128x128xf32>
    %6 = arith.negf %5 : vector<128x128xf32>
    %7 = math.exp %6 : vector<128x128xf32>
    %cst_5 = arith.constant 1.000000e+00 : f32
    %8 = vector.broadcast %cst_5 : f32 to vector<128x128xf32>
    %9 = arith.addf %8, %7 : vector<128x128xf32>
    %10 = arith.divf %8, %9 : vector<128x128xf32>
    %11 = arith.truncf %10 : vector<128x128xf32> to vector<128x128xbf16>
    %c0_6 = arith.constant 0 : index
    %c0_7 = arith.constant 0 : index
    %12 = vector.load %arg4[%c0_6, %c0_7] : memref<128x128xbf16, #tpu.memory_space<vmem>>, vector<128x128xbf16>
    tpu.vector_store %arg4[%c0_6, %c0_7], %11 {strides = array<i32>} : memref<128x128xbf16, #tpu.memory_space<vmem>>, vector<128x128xbf16>,
    return
  }
  func.func @transform_0(%arg0: i32) -> (i32, i32) {
    %c0_i32 = arith.constant 0 : i32
    %c0_i32_0 = arith.constant 0 : i32
    return %arg0, %c0_i32 : i32, i32
  }
  func.func @transform_1(%arg0: i32) -> (i32, i32) {
    %c0_i32 = arith.constant 0 : i32
    %c0_i32_0 = arith.constant 0 : i32
    %c0_i32_1 = arith.constant 0 : i32
    return %c0_i32, %c0_i32_0 : i32, i32
  }
  func.func @transform_2(%arg0: i32) -> (i32, i32) {
    %c0_i32 = arith.constant 0 : i32
    %c0_i32_0 = arith.constant 0 : i32
    %c0_i32_1 = arith.constant 0 : i32
    return %c0_i32, %c0_i32_0 : i32, i32
  }
  func.func @transform_3(%arg0: i32) -> (i32, i32) {
    %c0_i32 = arith.constant 0 : i32
    %c0_i32_0 = arith.constant 0 : i32
    return %arg0, %c0_i32 : i32, i32
  }
}

module attributes {stable_mosaic.version = 11 : i64} {
  func.func @_fusion_kernel(%arg0: i32, %arg1: i32, %arg2: memref<1x16x128xbf16, #tpu.memory_space<vmem>>, %arg3: memref<1x1x128xbf16, #tpu.memory_space<vmem>>, %arg4: memref<1x16x128xbf16, #tpu.memory_space<vmem>>, %arg5: memref<1x16x128xbf16, #tpu.memory_space<vmem>>, %arg6: memref<1x1x128xbf16, #tpu.memory_space<vmem>>, %arg7: memref<1x16x128xbf16, #tpu.memory_space<vmem>>, %arg8: memref<1x16x128xbf16, #tpu.memory_space<vmem>>) attributes {dimension_semantics = [#tpu.dimension_semantics<parallel>, #tpu.dimension_semantics<parallel>], iteration_bounds = array<i64: 2, 1>, scalar_prefetch = 0 : i64, scratch_operands = 0 : i64, tpu.core_type = #tpu.core_type<tc>, window_params = [{transform_indices = @transform_0, window_bounds = array<i64: 1, 16, 128>}, {transform_indices = @transform_1, window_bounds = array<i64: 1, 1, 128>}, {transform_indices = @transform_2, window_bounds = array<i64: 1, 16, 128>}, {transform_indices = @transform_3, window_bounds = array<i64: 1, 16, 128>}, {transform_indices = @transform_4, window_bounds = array<i64: 1, 1, 128>}, {transform_indices = @transform_5, window_bounds = array<i64: 1, 16, 128>}, {transform_indices = @transform_6, window_bounds = array<i64: 1, 16, 128>}]} {
    %c0 = arith.constant 0 : index
    %c0_0 = arith.constant 0 : index
    %c0_1 = arith.constant 0 : index
    %0 = vector.load %arg2[%c0, %c0_0, %c0_1] : memref<1x16x128xbf16, #tpu.memory_space<vmem>>, vector<1x16x128xbf16>
    %1 = arith.extf %0 : vector<1x16x128xbf16> to vector<1x16x128xf32>
    %c0_2 = arith.constant 0 : index
    %c0_3 = arith.constant 0 : index
    %c0_4 = arith.constant 0 : index
    %2 = vector.load %arg3[%c0_2, %c0_3, %c0_4] : memref<1x1x128xbf16, #tpu.memory_space<vmem>>, vector<1x1x128xbf16>
    %3 = arith.extf %2 : vector<1x1x128xbf16> to vector<1x1x128xf32>
    %4 = vector.broadcast %3 : vector<1x1x128xf32> to vector<1x16x128xf32>
    %5 = arith.mulf %1, %4 : vector<1x16x128xf32>
    %c0_5 = arith.constant 0 : index
    %c0_6 = arith.constant 0 : index
    %c0_7 = arith.constant 0 : index
    %6 = vector.load %arg4[%c0_5, %c0_6, %c0_7] : memref<1x16x128xbf16, #tpu.memory_space<vmem>>, vector<1x16x128xbf16>
    %7 = arith.extf %6 : vector<1x16x128xbf16> to vector<1x16x128xf32>
    %8 = arith.mulf %5, %7 : vector<1x16x128xf32>
    %c0_8 = arith.constant 0 : index
    %c0_9 = arith.constant 0 : index
    %c0_10 = arith.constant 0 : index
    %9 = vector.load %arg5[%c0_8, %c0_9, %c0_10] : memref<1x16x128xbf16, #tpu.memory_space<vmem>>, vector<1x16x128xbf16>
    %10 = arith.extf %9 : vector<1x16x128xbf16> to vector<1x16x128xf32>
    %c0_11 = arith.constant 0 : index
    %c0_12 = arith.constant 0 : index
    %c0_13 = arith.constant 0 : index
    %11 = vector.load %arg6[%c0_11, %c0_12, %c0_13] : memref<1x1x128xbf16, #tpu.memory_space<vmem>>, vector<1x1x128xbf16>
    %12 = arith.extf %11 : vector<1x1x128xbf16> to vector<1x1x128xf32>
    %13 = vector.broadcast %12 : vector<1x1x128xf32> to vector<1x16x128xf32>
    %14 = arith.mulf %10, %13 : vector<1x16x128xf32>
    %c0_14 = arith.constant 0 : index
    %c0_15 = arith.constant 0 : index
    %c0_16 = arith.constant 0 : index
    %15 = vector.load %arg7[%c0_14, %c0_15, %c0_16] : memref<1x16x128xbf16, #tpu.memory_space<vmem>>, vector<1x16x128xbf16>
    %16 = arith.extf %15 : vector<1x16x128xbf16> to vector<1x16x128xf32>
    %17 = arith.mulf %14, %16 : vector<1x16x128xf32>
    %18 = arith.addf %8, %17 : vector<1x16x128xf32>
    %19 = arith.truncf %18 : vector<1x16x128xf32> to vector<1x16x128xbf16>
    %c0_17 = arith.constant 0 : index
    %c0_18 = arith.constant 0 : index
    %c0_19 = arith.constant 0 : index
    %20 = vector.load %arg8[%c0_17, %c0_18, %c0_19] : memref<1x16x128xbf16, #tpu.memory_space<vmem>>, vector<1x16x128xbf16>
    tpu.vector_store %arg8[%c0_17, %c0_18, %c0_19], %19 {strides = array<i32>} : memref<1x16x128xbf16, #tpu.memory_space<vmem>>, vector<1x16x128xbf16>,
    return
  }
  func.func @transform_0(%arg0: i32, %arg1: i32) -> (i32, i32, i32) {
    %c0_i32 = arith.constant 0 : i32
    %c0_i32_0 = arith.constant 0 : i32
    return %arg0, %arg1, %c0_i32 : i32, i32, i32
  }
  func.func @transform_1(%arg0: i32, %arg1: i32) -> (i32, i32, i32) {
    %c0_i32 = arith.constant 0 : i32
    %c0_i32_0 = arith.constant 0 : i32
    %c0_i32_1 = arith.constant 0 : i32
    return %arg0, %c0_i32, %c0_i32_0 : i32, i32, i32
  }
  func.func @transform_2(%arg0: i32, %arg1: i32) -> (i32, i32, i32) {
    %c0_i32 = arith.constant 0 : i32
    %c0_i32_0 = arith.constant 0 : i32
    return %arg0, %arg1, %c0_i32 : i32, i32, i32
  }
  func.func @transform_3(%arg0: i32, %arg1: i32) -> (i32, i32, i32) {
    %c0_i32 = arith.constant 0 : i32
    %c0_i32_0 = arith.constant 0 : i32
    return %arg0, %arg1, %c0_i32 : i32, i32, i32
  }
  func.func @transform_4(%arg0: i32, %arg1: i32) -> (i32, i32, i32) {
    %c0_i32 = arith.constant 0 : i32
    %c0_i32_0 = arith.constant 0 : i32
    %c0_i32_1 = arith.constant 0 : i32
    return %arg0, %c0_i32, %c0_i32_0 : i32, i32, i32
  }
  func.func @transform_5(%arg0: i32, %arg1: i32) -> (i32, i32, i32) {
    %c0_i32 = arith.constant 0 : i32
    %c0_i32_0 = arith.constant 0 : i32
    return %arg0, %arg1, %c0_i32 : i32, i32, i32
  }
  func.func @transform_6(%arg0: i32, %arg1: i32) -> (i32, i32, i32) {
    %c0_i32 = arith.constant 0 : i32
    %c0_i32_0 = arith.constant 0 : i32
    return %arg0, %arg1, %c0_i32 : i32, i32, i32
  }
}

module attributes {stable_mosaic.version = 11 : i64} {
  func.func @_mm_kernel(%arg0: i32, %arg1: memref<128x128xbf16, #tpu.memory_space<vmem>>, %arg2: memref<128x64xbf16, #tpu.memory_space<vmem>>, %arg3: memref<1x64xf32, #tpu.memory_space<vmem>>, %arg4: memref<128x64xbf16, #tpu.memory_space<vmem>>) attributes {dimension_semantics = [#tpu.dimension_semantics<parallel>], iteration_bounds = array<i64: 1>, scalar_prefetch = 0 : i64, scratch_operands = 0 : i64, tpu.core_type = #tpu.core_type<tc>, window_params = [{transform_indices = @transform_0, window_bounds = array<i64: 128, 128>}, {pipeline_mode = #tpu.pipeline_mode<synchronous>, transform_indices = @transform_1, window_bounds = array<i64: 128, 64>}, {pipeline_mode = #tpu.pipeline_mode<synchronous>, transform_indices = @transform_2, window_bounds = array<i64: 1, 64>}, {transform_indices = @transform_3, window_bounds = array<i64: 128, 64>}]} {
    %c0 = arith.constant 0 : index
    %c0_0 = arith.constant 0 : index
    %0 = vector.load %arg1[%c0, %c0_0] : memref<128x128xbf16, #tpu.memory_space<vmem>>, vector<128x128xbf16>
    %c0_1 = arith.constant 0 : index
    %c0_2 = arith.constant 0 : index
    %1 = vector.load %arg2[%c0_1, %c0_2] : memref<128x64xbf16, #tpu.memory_space<vmem>>, vector<128x64xbf16>
    %cst = arith.constant dense<0.000000e+00> : vector<128x64xf32>
    %2 = tpu.matmul %0, %1, %cst {dimension_numbers = #tpu.dot_dimension_numbers<[1], [0], [0], [1], [0, 0, 1, 1], [], []>} : vector<128x128xbf16>, vector<128x64xbf16>, vector<128x64xf32> -> vector<128x64xf32>
    %c0_3 = arith.constant 0 : index
    %c0_4 = arith.constant 0 : index
    %3 = vector.load %arg3[%c0_3, %c0_4] : memref<1x64xf32, #tpu.memory_space<vmem>>, vector<1x64xf32>
    %4 = vector.broadcast %3 : vector<1x64xf32> to vector<128x64xf32>
    %5 = arith.addf %2, %4 : vector<128x64xf32>
    %cst_5 = arith.constant 0.000000e+00 : f32
    %6 = vector.broadcast %cst_5 : f32 to vector<128x64xf32>
    %7 = arith.maximumf %5, %6 : vector<128x64xf32>
    %8 = arith.truncf %7 : vector<128x64xf32> to vector<128x64xbf16>
    %c0_6 = arith.constant 0 : index
    %c0_7 = arith.constant 0 : index
    %9 = vector.load %arg4[%c0_6, %c0_7] : memref<128x64xbf16, #tpu.memory_space<vmem>>, vector<128x64xbf16>
    tpu.vector_store %arg4[%c0_6, %c0_7], %8 {strides = array<i32>} : memref<128x64xbf16, #tpu.memory_space<vmem>>, vector<128x64xbf16>,
    return
  }
  func.func @transform_0(%arg0: i32) -> (i32, i32) {
    %c0_i32 = arith.constant 0 : i32
    %c0_i32_0 = arith.constant 0 : i32
    return %arg0, %c0_i32 : i32, i32
  }
  func.func @transform_1(%arg0: i32) -> (i32, i32) {
    %c0_i32 = arith.constant 0 : i32
    %c0_i32_0 = arith.constant 0 : i32
    %c0_i32_1 = arith.constant 0 : i32
    return %c0_i32, %c0_i32_0 : i32, i32
  }
  func.func @transform_2(%arg0: i32) -> (i32, i32) {
    %c0_i32 = arith.constant 0 : i32
    %c0_i32_0 = arith.constant 0 : i32
    %c0_i32_1 = arith.constant 0 : i32
    return %c0_i32, %c0_i32_0 : i32, i32
  }
  func.func @transform_3(%arg0: i32) -> (i32, i32) {
    %c0_i32 = arith.constant 0 : i32
    %c0_i32_0 = arith.constant 0 : i32
    return %arg0, %c0_i32 : i32, i32
  }
}

module attributes {stable_mosaic.version = 11 : i64} {
  func.func @_mm_kernel(%arg0: i32, %arg1: memref<256x144xbf16, #tpu.memory_space<vmem>>, %arg2: memref<144x16xbf16, #tpu.memory_space<vmem>>, %arg3: memref<1x16xf32, #tpu.memory_space<vmem>>, %arg4: memref<256x16xbf16, #tpu.memory_space<vmem>>) attributes {dimension_semantics = [#tpu.dimension_semantics<parallel>], iteration_bounds = array<i64: 2>, scalar_prefetch = 0 : i64, scratch_operands = 0 : i64, tpu.core_type = #tpu.core_type<tc>, window_params = [{transform_indices = @transform_0, window_bounds = array<i64: 256, 144>}, {pipeline_mode = #tpu.pipeline_mode<synchronous>, transform_indices = @transform_1, window_bounds = array<i64: 144, 16>}, {pipeline_mode = #tpu.pipeline_mode<synchronous>, transform_indices = @transform_2, window_bounds = array<i64: 1, 16>}, {transform_indices = @transform_3, window_bounds = array<i64: 256, 16>}]} {
    %c0 = arith.constant 0 : index
    %c0_0 = arith.constant 0 : index
    %0 = vector.load %arg1[%c0, %c0_0] : memref<256x144xbf16, #tpu.memory_space<vmem>>, vector<256x144xbf16>
    %c0_1 = arith.constant 0 : index
    %c0_2 = arith.constant 0 : index
    %1 = vector.load %arg2[%c0_1, %c0_2] : memref<144x16xbf16, #tpu.memory_space<vmem>>, vector<144x16xbf16>
    %cst = arith.constant dense<0.000000e+00> : vector<256x16xf32>
    %2 = tpu.matmul %0, %1, %cst {dimension_numbers = #tpu.dot_dimension_numbers<[1], [0], [0], [1], [0, 0, 1, 1], [], []>} : vector<256x144xbf16>, vector<144x16xbf16>, vector<256x16xf32> -> vector<256x16xf32>
    %c0_3 = arith.constant 0 : index
    %c0_4 = arith.constant 0 : index
    %3 = vector.load %arg3[%c0_3, %c0_4] : memref<1x16xf32, #tpu.memory_space<vmem>>, vector<1x16xf32>
    %4 = vector.broadcast %3 : vector<1x16xf32> to vector<256x16xf32>
    %5 = arith.addf %2, %4 : vector<256x16xf32>
    %cst_5 = arith.constant 0.000000e+00 : f32
    %6 = vector.broadcast %cst_5 : f32 to vector<256x16xf32>
    %7 = arith.maximumf %5, %6 : vector<256x16xf32>
    %8 = arith.truncf %7 : vector<256x16xf32> to vector<256x16xbf16>
    %c0_6 = arith.constant 0 : index
    %c0_7 = arith.constant 0 : index
    %9 = vector.load %arg4[%c0_6, %c0_7] : memref<256x16xbf16, #tpu.memory_space<vmem>>, vector<256x16xbf16>
    tpu.vector_store %arg4[%c0_6, %c0_7], %8 {strides = array<i32>} : memref<256x16xbf16, #tpu.memory_space<vmem>>, vector<256x16xbf16>,
    return
  }
  func.func @transform_0(%arg0: i32) -> (i32, i32) {
    %c0_i32 = arith.constant 0 : i32
    %c0_i32_0 = arith.constant 0 : i32
    return %arg0, %c0_i32 : i32, i32
  }
  func.func @transform_1(%arg0: i32) -> (i32, i32) {
    %c0_i32 = arith.constant 0 : i32
    %c0_i32_0 = arith.constant 0 : i32
    %c0_i32_1 = arith.constant 0 : i32
    return %c0_i32, %c0_i32_0 : i32, i32
  }
  func.func @transform_2(%arg0: i32) -> (i32, i32) {
    %c0_i32 = arith.constant 0 : i32
    %c0_i32_0 = arith.constant 0 : i32
    %c0_i32_1 = arith.constant 0 : i32
    return %c0_i32, %c0_i32_0 : i32, i32
  }
  func.func @transform_3(%arg0: i32) -> (i32, i32) {
    %c0_i32 = arith.constant 0 : i32
    %c0_i32_0 = arith.constant 0 : i32
    return %arg0, %c0_i32 : i32, i32
  }
}

module attributes {stable_mosaic.version = 11 : i64} {
  func.func @_mm_kernel(%arg0: i32, %arg1: memref<32x128xbf16, #tpu.memory_space<vmem>>, %arg2: memref<128x128xbf16, #tpu.memory_space<vmem>>, %arg3: memref<1x128xf32, #tpu.memory_space<vmem>>, %arg4: memref<32x128xbf16, #tpu.memory_space<vmem>>) attributes {dimension_semantics = [#tpu.dimension_semantics<parallel>], iteration_bounds = array<i64: 1>, scalar_prefetch = 0 : i64, scratch_operands = 0 : i64, tpu.core_type = #tpu.core_type<tc>, window_params = [{transform_indices = @transform_0, window_bounds = array<i64: 32, 128>}, {pipeline_mode = #tpu.pipeline_mode<synchronous>, transform_indices = @transform_1, window_bounds = array<i64: 128, 128>}, {pipeline_mode = #tpu.pipeline_mode<synchronous>, transform_indices = @transform_2, window_bounds = array<i64: 1, 128>}, {transform_indices = @transform_3, window_bounds = array<i64: 32, 128>}]} {
    %c0 = arith.constant 0 : index
    %c0_0 = arith.constant 0 : index
    %0 = vector.load %arg1[%c0, %c0_0] : memref<32x128xbf16, #tpu.memory_space<vmem>>, vector<32x128xbf16>
    %c0_1 = arith.constant 0 : index
    %c0_2 = arith.constant 0 : index
    %1 = vector.load %arg2[%c0_1, %c0_2] : memref<128x128xbf16, #tpu.memory_space<vmem>>, vector<128x128xbf16>
    %cst = arith.constant dense<0.000000e+00> : vector<32x128xf32>
    %2 = tpu.matmul %0, %1, %cst {dimension_numbers = #tpu.dot_dimension_numbers<[1], [0], [0], [1], [0, 0, 1, 1], [], []>} : vector<32x128xbf16>, vector<128x128xbf16>, vector<32x128xf32> -> vector<32x128xf32>
    %c0_3 = arith.constant 0 : index
    %c0_4 = arith.constant 0 : index
    %3 = vector.load %arg3[%c0_3, %c0_4] : memref<1x128xf32, #tpu.memory_space<vmem>>, vector<1x128xf32>
    %4 = vector.broadcast %3 : vector<1x128xf32> to vector<32x128xf32>
    %5 = arith.addf %2, %4 : vector<32x128xf32>
    %cst_5 = arith.constant 0.000000e+00 : f32
    %6 = vector.broadcast %cst_5 : f32 to vector<32x128xf32>
    %7 = arith.maximumf %5, %6 : vector<32x128xf32>
    %8 = arith.truncf %7 : vector<32x128xf32> to vector<32x128xbf16>
    %c0_6 = arith.constant 0 : index
    %c0_7 = arith.constant 0 : index
    %9 = vector.load %arg4[%c0_6, %c0_7] : memref<32x128xbf16, #tpu.memory_space<vmem>>, vector<32x128xbf16>
    tpu.vector_store %arg4[%c0_6, %c0_7], %8 {strides = array<i32>} : memref<32x128xbf16, #tpu.memory_space<vmem>>, vector<32x128xbf16>,
    return
  }
  func.func @transform_0(%arg0: i32) -> (i32, i32) {
    %c0_i32 = arith.constant 0 : i32
    %c0_i32_0 = arith.constant 0 : i32
    return %arg0, %c0_i32 : i32, i32
  }
  func.func @transform_1(%arg0: i32) -> (i32, i32) {
    %c0_i32 = arith.constant 0 : i32
    %c0_i32_0 = arith.constant 0 : i32
    %c0_i32_1 = arith.constant 0 : i32
    return %c0_i32, %c0_i32_0 : i32, i32
  }
  func.func @transform_2(%arg0: i32) -> (i32, i32) {
    %c0_i32 = arith.constant 0 : i32
    %c0_i32_0 = arith.constant 0 : i32
    %c0_i32_1 = arith.constant 0 : i32
    return %c0_i32, %c0_i32_0 : i32, i32
  }
  func.func @transform_3(%arg0: i32) -> (i32, i32) {
    %c0_i32 = arith.constant 0 : i32
    %c0_i32_0 = arith.constant 0 : i32
    return %arg0, %c0_i32 : i32, i32
  }
}

module attributes {stable_mosaic.version = 11 : i64} {
  func.func @_channel_att_kernel(%arg0: i32, %arg1: i32, %arg2: memref<1x16x32xbf16, #tpu.memory_space<vmem>>, %arg3: memref<1x16x32xbf16, #tpu.memory_space<vmem>>, %arg4: memref<32x16xbf16, #tpu.memory_space<vmem>>, %arg5: memref<32x16xbf16, #tpu.memory_space<vmem>>, %arg6: memref<1x16xf32, #tpu.memory_space<vmem>>, %arg7: memref<16x64xbf16, #tpu.memory_space<vmem>>, %arg8: memref<1x64xf32, #tpu.memory_space<vmem>>, %arg9: memref<1x1x64xf32, #tpu.memory_space<vmem>>, %arg10: memref<1x32xf32, #tpu.memory_space<vmem>>, %arg11: memref<1x32xf32, #tpu.memory_space<vmem>>) attributes {dimension_semantics = [#tpu.dimension_semantics<parallel>, #tpu.dimension_semantics<arbitrary>], iteration_bounds = array<i64: 2, 1>, scalar_prefetch = 0 : i64, scratch_operands = 2 : i64, tpu.core_type = #tpu.core_type<tc>, window_params = [{transform_indices = @transform_0, window_bounds = array<i64: 1, 16, 32>}, {transform_indices = @transform_1, window_bounds = array<i64: 1, 16, 32>}, {pipeline_mode = #tpu.pipeline_mode<synchronous>, transform_indices = @transform_2, window_bounds = array<i64: 32, 16>}, {pipeline_mode = #tpu.pipeline_mode<synchronous>, transform_indices = @transform_3, window_bounds = array<i64: 32, 16>}, {pipeline_mode = #tpu.pipeline_mode<synchronous>, transform_indices = @transform_4, window_bounds = array<i64: 1, 16>}, {pipeline_mode = #tpu.pipeline_mode<synchronous>, transform_indices = @transform_5, window_bounds = array<i64: 16, 64>}, {pipeline_mode = #tpu.pipeline_mode<synchronous>, transform_indices = @transform_6, window_bounds = array<i64: 1, 64>}, {transform_indices = @transform_7, window_bounds = array<i64: 1, 1, 64>}]} {
    %c0_i32 = arith.constant 0 : i32
    %0 = arith.cmpi eq, %arg1, %c0_i32 : i32
    %1 = arith.extui %0 : i1 to i32
    %c0_i32_0 = arith.constant 0 : i32
    %2 = arith.cmpi ne, %1, %c0_i32_0 : i32
    scf.if %2 {
      %cst_17 = arith.constant 0.000000e+00 : f32
      %18 = vector.broadcast %cst_17 : f32 to vector<1x32xf32>
      %c0_18 = arith.constant 0 : index
      %c0_19 = arith.constant 0 : index
      %19 = vector.load %arg10[%c0_18, %c0_19] : memref<1x32xf32, #tpu.memory_space<vmem>>, vector<1x32xf32>
      tpu.vector_store %arg10[%c0_18, %c0_19], %18 {strides = array<i32>} : memref<1x32xf32, #tpu.memory_space<vmem>>, vector<1x32xf32>,
      %cst_20 = arith.constant 0.000000e+00 : f32
      %20 = vector.broadcast %cst_20 : f32 to vector<1x32xf32>
      %c0_21 = arith.constant 0 : index
      %c0_22 = arith.constant 0 : index
      %21 = vector.load %arg11[%c0_21, %c0_22] : memref<1x32xf32, #tpu.memory_space<vmem>>, vector<1x32xf32>
      tpu.vector_store %arg11[%c0_21, %c0_22], %20 {strides = array<i32>} : memref<1x32xf32, #tpu.memory_space<vmem>>, vector<1x32xf32>,
    } else {
    }
    %c0 = arith.constant 0 : index
    %c0_1 = arith.constant 0 : index
    %3 = vector.load %arg10[%c0, %c0_1] : memref<1x32xf32, #tpu.memory_space<vmem>>, vector<1x32xf32>
    %c0_2 = arith.constant 0 : index
    %c0_3 = arith.constant 0 : index
    %c0_4 = arith.constant 0 : index
    %4 = vector.load %arg2[%c0_2, %c0_3, %c0_4] : memref<1x16x32xbf16, #tpu.memory_space<vmem>>, vector<1x16x32xbf16>
    %5 = arith.extf %4 : vector<1x16x32xbf16> to vector<1x16x32xf32>
    %cst = arith.constant dense<0.000000e+00> : vector<1x32xf32>
    %6 = vector.multi_reduction <add>, %5, %cst [1] : vector<1x16x32xf32> to vector<1x32xf32>
    %7 = arith.addf %3, %6 : vector<1x32xf32>
    %c0_5 = arith.constant 0 : index
    %c0_6 = arith.constant 0 : index
    %8 = vector.load %arg10[%c0_5, %c0_6] : memref<1x32xf32, #tpu.memory_space<vmem>>, vector<1x32xf32>
    tpu.vector_store %arg10[%c0_5, %c0_6], %7 {strides = array<i32>} : memref<1x32xf32, #tpu.memory_space<vmem>>, vector<1x32xf32>,
    %c0_7 = arith.constant 0 : index
    %c0_8 = arith.constant 0 : index
    %9 = vector.load %arg11[%c0_7, %c0_8] : memref<1x32xf32, #tpu.memory_space<vmem>>, vector<1x32xf32>
    %c0_9 = arith.constant 0 : index
    %c0_10 = arith.constant 0 : index
    %c0_11 = arith.constant 0 : index
    %10 = vector.load %arg3[%c0_9, %c0_10, %c0_11] : memref<1x16x32xbf16, #tpu.memory_space<vmem>>, vector<1x16x32xbf16>
    %11 = arith.extf %10 : vector<1x16x32xbf16> to vector<1x16x32xf32>
    %cst_12 = arith.constant dense<0.000000e+00> : vector<1x32xf32>
    %12 = vector.multi_reduction <add>, %11, %cst_12 [1] : vector<1x16x32xf32> to vector<1x32xf32>
    %13 = arith.addf %9, %12 : vector<1x32xf32>
    %c0_13 = arith.constant 0 : index
    %c0_14 = arith.constant 0 : index
    %14 = vector.load %arg11[%c0_13, %c0_14] : memref<1x32xf32, #tpu.memory_space<vmem>>, vector<1x32xf32>
    tpu.vector_store %arg11[%c0_13, %c0_14], %13 {strides = array<i32>} : memref<1x32xf32, #tpu.memory_space<vmem>>, vector<1x32xf32>,
    %c0_i32_15 = arith.constant 0 : i32
    %15 = arith.cmpi eq, %arg1, %c0_i32_15 : i32
    %16 = arith.extui %15 : i1 to i32
    %c0_i32_16 = arith.constant 0 : i32
    %17 = arith.cmpi ne, %16, %c0_i32_16 : i32
    scf.if %17 {
      %c0_17 = arith.constant 0 : index
      %c0_18 = arith.constant 0 : index
      %18 = vector.load %arg10[%c0_17, %c0_18] : memref<1x32xf32, #tpu.memory_space<vmem>>, vector<1x32xf32>
      %cst_19 = arith.constant 6.250000e-02 : f32
      %19 = vector.broadcast %cst_19 : f32 to vector<1x32xf32>
      %20 = arith.mulf %18, %19 : vector<1x32xf32>
      %21 = arith.truncf %20 : vector<1x32xf32> to vector<1x32xbf16>
      %c0_20 = arith.constant 0 : index
      %c0_21 = arith.constant 0 : index
      %22 = vector.load %arg11[%c0_20, %c0_21] : memref<1x32xf32, #tpu.memory_space<vmem>>, vector<1x32xf32>
      %cst_22 = arith.constant 6.250000e-02 : f32
      %23 = vector.broadcast %cst_22 : f32 to vector<1x32xf32>
      %24 = arith.mulf %22, %23 : vector<1x32xf32>
      %25 = arith.truncf %24 : vector<1x32xf32> to vector<1x32xbf16>
      %c0_23 = arith.constant 0 : index
      %c0_24 = arith.constant 0 : index
      %26 = vector.load %arg4[%c0_23, %c0_24] : memref<32x16xbf16, #tpu.memory_space<vmem>>, vector<32x16xbf16>
      %cst_25 = arith.constant dense<0.000000e+00> : vector<1x16xf32>
      %27 = tpu.matmul %21, %26, %cst_25 {dimension_numbers = #tpu.dot_dimension_numbers<[1], [0], [0], [1], [0, 0, 1, 1], [], []>} : vector<1x32xbf16>, vector<32x16xbf16>, vector<1x16xf32> -> vector<1x16xf32>
      %c0_26 = arith.constant 0 : index
      %c0_27 = arith.constant 0 : index
      %28 = vector.load %arg5[%c0_26, %c0_27] : memref<32x16xbf16, #tpu.memory_space<vmem>>, vector<32x16xbf16>
      %cst_28 = arith.constant dense<0.000000e+00> : vector<1x16xf32>
      %29 = tpu.matmul %25, %28, %cst_28 {dimension_numbers = #tpu.dot_dimension_numbers<[1], [0], [0], [1], [0, 0, 1, 1], [], []>} : vector<1x32xbf16>, vector<32x16xbf16>, vector<1x16xf32> -> vector<1x16xf32>
      %30 = arith.addf %27, %29 : vector<1x16xf32>
      %c0_29 = arith.constant 0 : index
      %c0_30 = arith.constant 0 : index
      %31 = vector.load %arg6[%c0_29, %c0_30] : memref<1x16xf32, #tpu.memory_space<vmem>>, vector<1x16xf32>
      %32 = arith.addf %30, %31 : vector<1x16xf32>
      %cst_31 = arith.constant 0.000000e+00 : f32
      %33 = vector.broadcast %cst_31 : f32 to vector<1x16xf32>
      %34 = arith.maximumf %32, %33 : vector<1x16xf32>
      %35 = arith.truncf %34 : vector<1x16xf32> to vector<1x16xbf16>
      %c0_32 = arith.constant 0 : index
      %c0_33 = arith.constant 0 : index
      %36 = vector.load %arg7[%c0_32, %c0_33] : memref<16x64xbf16, #tpu.memory_space<vmem>>, vector<16x64xbf16>
      %cst_34 = arith.constant dense<0.000000e+00> : vector<1x64xf32>
      %37 = tpu.matmul %35, %36, %cst_34 {dimension_numbers = #tpu.dot_dimension_numbers<[1], [0], [0], [1], [0, 0, 1, 1], [], []>} : vector<1x16xbf16>, vector<16x64xbf16>, vector<1x64xf32> -> vector<1x64xf32>
      %c0_35 = arith.constant 0 : index
      %c0_36 = arith.constant 0 : index
      %38 = vector.load %arg8[%c0_35, %c0_36] : memref<1x64xf32, #tpu.memory_space<vmem>>, vector<1x64xf32>
      %39 = arith.addf %37, %38 : vector<1x64xf32>
      %40 = arith.negf %39 : vector<1x64xf32>
      %41 = math.exp %40 : vector<1x64xf32>
      %cst_37 = arith.constant 1.000000e+00 : f32
      %42 = vector.broadcast %cst_37 : f32 to vector<1x64xf32>
      %43 = arith.addf %42, %41 : vector<1x64xf32>
      %44 = arith.divf %42, %43 : vector<1x64xf32>
      %45 = vector.shape_cast %44 : vector<1x64xf32> to vector<1x1x64xf32>
      %c0_38 = arith.constant 0 : index
      %c0_39 = arith.constant 0 : index
      %c0_40 = arith.constant 0 : index
      %46 = vector.load %arg9[%c0_38, %c0_39, %c0_40] : memref<1x1x64xf32, #tpu.memory_space<vmem>>, vector<1x1x64xf32>
      tpu.vector_store %arg9[%c0_38, %c0_39, %c0_40], %45 {strides = array<i32>} : memref<1x1x64xf32, #tpu.memory_space<vmem>>, vector<1x1x64xf32>,
    } else {
    }
    return
  }
  func.func @transform_0(%arg0: i32, %arg1: i32) -> (i32, i32, i32) {
    %c0_i32 = arith.constant 0 : i32
    %c0_i32_0 = arith.constant 0 : i32
    return %arg0, %arg1, %c0_i32 : i32, i32, i32
  }
  func.func @transform_1(%arg0: i32, %arg1: i32) -> (i32, i32, i32) {
    %c0_i32 = arith.constant 0 : i32
    %c0_i32_0 = arith.constant 0 : i32
    return %arg0, %arg1, %c0_i32 : i32, i32, i32
  }
  func.func @transform_2(%arg0: i32, %arg1: i32) -> (i32, i32) {
    %c0_i32 = arith.constant 0 : i32
    %c0_i32_0 = arith.constant 0 : i32
    %c0_i32_1 = arith.constant 0 : i32
    return %c0_i32, %c0_i32_0 : i32, i32
  }
  func.func @transform_3(%arg0: i32, %arg1: i32) -> (i32, i32) {
    %c0_i32 = arith.constant 0 : i32
    %c0_i32_0 = arith.constant 0 : i32
    %c0_i32_1 = arith.constant 0 : i32
    return %c0_i32, %c0_i32_0 : i32, i32
  }
  func.func @transform_4(%arg0: i32, %arg1: i32) -> (i32, i32) {
    %c0_i32 = arith.constant 0 : i32
    %c0_i32_0 = arith.constant 0 : i32
    %c0_i32_1 = arith.constant 0 : i32
    return %c0_i32, %c0_i32_0 : i32, i32
  }
  func.func @transform_5(%arg0: i32, %arg1: i32) -> (i32, i32) {
    %c0_i32 = arith.constant 0 : i32
    %c0_i32_0 = arith.constant 0 : i32
    %c0_i32_1 = arith.constant 0 : i32
    return %c0_i32, %c0_i32_0 : i32, i32
  }
  func.func @transform_6(%arg0: i32, %arg1: i32) -> (i32, i32) {
    %c0_i32 = arith.constant 0 : i32
    %c0_i32_0 = arith.constant 0 : i32
    %c0_i32_1 = arith.constant 0 : i32
    return %c0_i32, %c0_i32_0 : i32, i32
  }
  func.func @transform_7(%arg0: i32, %arg1: i32) -> (i32, i32, i32) {
    %c0_i32 = arith.constant 0 : i32
    %c0_i32_0 = arith.constant 0 : i32
    %c0_i32_1 = arith.constant 0 : i32
    return %arg0, %c0_i32, %c0_i32_0 : i32, i32, i32
  }
}

module attributes {stable_mosaic.version = 11 : i64} {
  func.func @_channel_att_kernel(%arg0: i32, %arg1: i32, %arg2: memref<1x16x32xbf16, #tpu.memory_space<vmem>>, %arg3: memref<1x64x32xbf16, #tpu.memory_space<vmem>>, %arg4: memref<32x16xbf16, #tpu.memory_space<vmem>>, %arg5: memref<32x16xbf16, #tpu.memory_space<vmem>>, %arg6: memref<1x16xf32, #tpu.memory_space<vmem>>, %arg7: memref<16x64xbf16, #tpu.memory_space<vmem>>, %arg8: memref<1x64xf32, #tpu.memory_space<vmem>>, %arg9: memref<1x1x64xf32, #tpu.memory_space<vmem>>, %arg10: memref<1x32xf32, #tpu.memory_space<vmem>>, %arg11: memref<1x32xf32, #tpu.memory_space<vmem>>) attributes {dimension_semantics = [#tpu.dimension_semantics<parallel>, #tpu.dimension_semantics<arbitrary>], iteration_bounds = array<i64: 2, 1>, scalar_prefetch = 0 : i64, scratch_operands = 2 : i64, tpu.core_type = #tpu.core_type<tc>, window_params = [{transform_indices = @transform_0, window_bounds = array<i64: 1, 16, 32>}, {transform_indices = @transform_1, window_bounds = array<i64: 1, 64, 32>}, {pipeline_mode = #tpu.pipeline_mode<synchronous>, transform_indices = @transform_2, window_bounds = array<i64: 32, 16>}, {pipeline_mode = #tpu.pipeline_mode<synchronous>, transform_indices = @transform_3, window_bounds = array<i64: 32, 16>}, {pipeline_mode = #tpu.pipeline_mode<synchronous>, transform_indices = @transform_4, window_bounds = array<i64: 1, 16>}, {pipeline_mode = #tpu.pipeline_mode<synchronous>, transform_indices = @transform_5, window_bounds = array<i64: 16, 64>}, {pipeline_mode = #tpu.pipeline_mode<synchronous>, transform_indices = @transform_6, window_bounds = array<i64: 1, 64>}, {transform_indices = @transform_7, window_bounds = array<i64: 1, 1, 64>}]} {
    %c0_i32 = arith.constant 0 : i32
    %0 = arith.cmpi eq, %arg1, %c0_i32 : i32
    %1 = arith.extui %0 : i1 to i32
    %c0_i32_0 = arith.constant 0 : i32
    %2 = arith.cmpi ne, %1, %c0_i32_0 : i32
    scf.if %2 {
      %cst_17 = arith.constant 0.000000e+00 : f32
      %18 = vector.broadcast %cst_17 : f32 to vector<1x32xf32>
      %c0_18 = arith.constant 0 : index
      %c0_19 = arith.constant 0 : index
      %19 = vector.load %arg10[%c0_18, %c0_19] : memref<1x32xf32, #tpu.memory_space<vmem>>, vector<1x32xf32>
      tpu.vector_store %arg10[%c0_18, %c0_19], %18 {strides = array<i32>} : memref<1x32xf32, #tpu.memory_space<vmem>>, vector<1x32xf32>,
      %cst_20 = arith.constant 0.000000e+00 : f32
      %20 = vector.broadcast %cst_20 : f32 to vector<1x32xf32>
      %c0_21 = arith.constant 0 : index
      %c0_22 = arith.constant 0 : index
      %21 = vector.load %arg11[%c0_21, %c0_22] : memref<1x32xf32, #tpu.memory_space<vmem>>, vector<1x32xf32>
      tpu.vector_store %arg11[%c0_21, %c0_22], %20 {strides = array<i32>} : memref<1x32xf32, #tpu.memory_space<vmem>>, vector<1x32xf32>,
    } else {
    }
    %c0 = arith.constant 0 : index
    %c0_1 = arith.constant 0 : index
    %3 = vector.load %arg10[%c0, %c0_1] : memref<1x32xf32, #tpu.memory_space<vmem>>, vector<1x32xf32>
    %c0_2 = arith.constant 0 : index
    %c0_3 = arith.constant 0 : index
    %c0_4 = arith.constant 0 : index
    %4 = vector.load %arg2[%c0_2, %c0_3, %c0_4] : memref<1x16x32xbf16, #tpu.memory_space<vmem>>, vector<1x16x32xbf16>
    %5 = arith.extf %4 : vector<1x16x32xbf16> to vector<1x16x32xf32>
    %cst = arith.constant dense<0.000000e+00> : vector<1x32xf32>
    %6 = vector.multi_reduction <add>, %5, %cst [1] : vector<1x16x32xf32> to vector<1x32xf32>
    %7 = arith.addf %3, %6 : vector<1x32xf32>
    %c0_5 = arith.constant 0 : index
    %c0_6 = arith.constant 0 : index
    %8 = vector.load %arg10[%c0_5, %c0_6] : memref<1x32xf32, #tpu.memory_space<vmem>>, vector<1x32xf32>
    tpu.vector_store %arg10[%c0_5, %c0_6], %7 {strides = array<i32>} : memref<1x32xf32, #tpu.memory_space<vmem>>, vector<1x32xf32>,
    %c0_7 = arith.constant 0 : index
    %c0_8 = arith.constant 0 : index
    %9 = vector.load %arg11[%c0_7, %c0_8] : memref<1x32xf32, #tpu.memory_space<vmem>>, vector<1x32xf32>
    %c0_9 = arith.constant 0 : index
    %c0_10 = arith.constant 0 : index
    %c0_11 = arith.constant 0 : index
    %10 = vector.load %arg3[%c0_9, %c0_10, %c0_11] : memref<1x64x32xbf16, #tpu.memory_space<vmem>>, vector<1x64x32xbf16>
    %11 = arith.extf %10 : vector<1x64x32xbf16> to vector<1x64x32xf32>
    %cst_12 = arith.constant dense<0.000000e+00> : vector<1x32xf32>
    %12 = vector.multi_reduction <add>, %11, %cst_12 [1] : vector<1x64x32xf32> to vector<1x32xf32>
    %13 = arith.addf %9, %12 : vector<1x32xf32>
    %c0_13 = arith.constant 0 : index
    %c0_14 = arith.constant 0 : index
    %14 = vector.load %arg11[%c0_13, %c0_14] : memref<1x32xf32, #tpu.memory_space<vmem>>, vector<1x32xf32>
    tpu.vector_store %arg11[%c0_13, %c0_14], %13 {strides = array<i32>} : memref<1x32xf32, #tpu.memory_space<vmem>>, vector<1x32xf32>,
    %c0_i32_15 = arith.constant 0 : i32
    %15 = arith.cmpi eq, %arg1, %c0_i32_15 : i32
    %16 = arith.extui %15 : i1 to i32
    %c0_i32_16 = arith.constant 0 : i32
    %17 = arith.cmpi ne, %16, %c0_i32_16 : i32
    scf.if %17 {
      %c0_17 = arith.constant 0 : index
      %c0_18 = arith.constant 0 : index
      %18 = vector.load %arg10[%c0_17, %c0_18] : memref<1x32xf32, #tpu.memory_space<vmem>>, vector<1x32xf32>
      %cst_19 = arith.constant 6.250000e-02 : f32
      %19 = vector.broadcast %cst_19 : f32 to vector<1x32xf32>
      %20 = arith.mulf %18, %19 : vector<1x32xf32>
      %21 = arith.truncf %20 : vector<1x32xf32> to vector<1x32xbf16>
      %c0_20 = arith.constant 0 : index
      %c0_21 = arith.constant 0 : index
      %22 = vector.load %arg11[%c0_20, %c0_21] : memref<1x32xf32, #tpu.memory_space<vmem>>, vector<1x32xf32>
      %cst_22 = arith.constant 1.562500e-02 : f32
      %23 = vector.broadcast %cst_22 : f32 to vector<1x32xf32>
      %24 = arith.mulf %22, %23 : vector<1x32xf32>
      %25 = arith.truncf %24 : vector<1x32xf32> to vector<1x32xbf16>
      %c0_23 = arith.constant 0 : index
      %c0_24 = arith.constant 0 : index
      %26 = vector.load %arg4[%c0_23, %c0_24] : memref<32x16xbf16, #tpu.memory_space<vmem>>, vector<32x16xbf16>
      %cst_25 = arith.constant dense<0.000000e+00> : vector<1x16xf32>
      %27 = tpu.matmul %21, %26, %cst_25 {dimension_numbers = #tpu.dot_dimension_numbers<[1], [0], [0], [1], [0, 0, 1, 1], [], []>} : vector<1x32xbf16>, vector<32x16xbf16>, vector<1x16xf32> -> vector<1x16xf32>
      %c0_26 = arith.constant 0 : index
      %c0_27 = arith.constant 0 : index
      %28 = vector.load %arg5[%c0_26, %c0_27] : memref<32x16xbf16, #tpu.memory_space<vmem>>, vector<32x16xbf16>
      %cst_28 = arith.constant dense<0.000000e+00> : vector<1x16xf32>
      %29 = tpu.matmul %25, %28, %cst_28 {dimension_numbers = #tpu.dot_dimension_numbers<[1], [0], [0], [1], [0, 0, 1, 1], [], []>} : vector<1x32xbf16>, vector<32x16xbf16>, vector<1x16xf32> -> vector<1x16xf32>
      %30 = arith.addf %27, %29 : vector<1x16xf32>
      %c0_29 = arith.constant 0 : index
      %c0_30 = arith.constant 0 : index
      %31 = vector.load %arg6[%c0_29, %c0_30] : memref<1x16xf32, #tpu.memory_space<vmem>>, vector<1x16xf32>
      %32 = arith.addf %30, %31 : vector<1x16xf32>
      %cst_31 = arith.constant 0.000000e+00 : f32
      %33 = vector.broadcast %cst_31 : f32 to vector<1x16xf32>
      %34 = arith.maximumf %32, %33 : vector<1x16xf32>
      %35 = arith.truncf %34 : vector<1x16xf32> to vector<1x16xbf16>
      %c0_32 = arith.constant 0 : index
      %c0_33 = arith.constant 0 : index
      %36 = vector.load %arg7[%c0_32, %c0_33] : memref<16x64xbf16, #tpu.memory_space<vmem>>, vector<16x64xbf16>
      %cst_34 = arith.constant dense<0.000000e+00> : vector<1x64xf32>
      %37 = tpu.matmul %35, %36, %cst_34 {dimension_numbers = #tpu.dot_dimension_numbers<[1], [0], [0], [1], [0, 0, 1, 1], [], []>} : vector<1x16xbf16>, vector<16x64xbf16>, vector<1x64xf32> -> vector<1x64xf32>
      %c0_35 = arith.constant 0 : index
      %c0_36 = arith.constant 0 : index
      %38 = vector.load %arg8[%c0_35, %c0_36] : memref<1x64xf32, #tpu.memory_space<vmem>>, vector<1x64xf32>
      %39 = arith.addf %37, %38 : vector<1x64xf32>
      %40 = arith.negf %39 : vector<1x64xf32>
      %41 = math.exp %40 : vector<1x64xf32>
      %cst_37 = arith.constant 1.000000e+00 : f32
      %42 = vector.broadcast %cst_37 : f32 to vector<1x64xf32>
      %43 = arith.addf %42, %41 : vector<1x64xf32>
      %44 = arith.divf %42, %43 : vector<1x64xf32>
      %45 = vector.shape_cast %44 : vector<1x64xf32> to vector<1x1x64xf32>
      %c0_38 = arith.constant 0 : index
      %c0_39 = arith.constant 0 : index
      %c0_40 = arith.constant 0 : index
      %46 = vector.load %arg9[%c0_38, %c0_39, %c0_40] : memref<1x1x64xf32, #tpu.memory_space<vmem>>, vector<1x1x64xf32>
      tpu.vector_store %arg9[%c0_38, %c0_39, %c0_40], %45 {strides = array<i32>} : memref<1x1x64xf32, #tpu.memory_space<vmem>>, vector<1x1x64xf32>,
    } else {
    }
    return
  }
  func.func @transform_0(%arg0: i32, %arg1: i32) -> (i32, i32, i32) {
    %c0_i32 = arith.constant 0 : i32
    %c0_i32_0 = arith.constant 0 : i32
    return %arg0, %arg1, %c0_i32 : i32, i32, i32
  }
  func.func @transform_1(%arg0: i32, %arg1: i32) -> (i32, i32, i32) {
    %c0_i32 = arith.constant 0 : i32
    %c0_i32_0 = arith.constant 0 : i32
    return %arg0, %arg1, %c0_i32 : i32, i32, i32
  }
  func.func @transform_2(%arg0: i32, %arg1: i32) -> (i32, i32) {
    %c0_i32 = arith.constant 0 : i32
    %c0_i32_0 = arith.constant 0 : i32
    %c0_i32_1 = arith.constant 0 : i32
    return %c0_i32, %c0_i32_0 : i32, i32
  }
  func.func @transform_3(%arg0: i32, %arg1: i32) -> (i32, i32) {
    %c0_i32 = arith.constant 0 : i32
    %c0_i32_0 = arith.constant 0 : i32
    %c0_i32_1 = arith.constant 0 : i32
    return %c0_i32, %c0_i32_0 : i32, i32
  }
  func.func @transform_4(%arg0: i32, %arg1: i32) -> (i32, i32) {
    %c0_i32 = arith.constant 0 : i32
    %c0_i32_0 = arith.constant 0 : i32
    %c0_i32_1 = arith.constant 0 : i32
    return %c0_i32, %c0_i32_0 : i32, i32
  }
  func.func @transform_5(%arg0: i32, %arg1: i32) -> (i32, i32) {
    %c0_i32 = arith.constant 0 : i32
    %c0_i32_0 = arith.constant 0 : i32
    %c0_i32_1 = arith.constant 0 : i32
    return %c0_i32, %c0_i32_0 : i32, i32
  }
  func.func @transform_6(%arg0: i32, %arg1: i32) -> (i32, i32) {
    %c0_i32 = arith.constant 0 : i32
    %c0_i32_0 = arith.constant 0 : i32
    %c0_i32_1 = arith.constant 0 : i32
    return %c0_i32, %c0_i32_0 : i32, i32
  }
  func.func @transform_7(%arg0: i32, %arg1: i32) -> (i32, i32, i32) {
    %c0_i32 = arith.constant 0 : i32
    %c0_i32_0 = arith.constant 0 : i32
    %c0_i32_1 = arith.constant 0 : i32
    return %arg0, %c0_i32, %c0_i32_0 : i32, i32, i32
  }
}

module attributes {stable_mosaic.version = 11 : i64} {
  func.func @_mm_kernel(%arg0: i32, %arg1: memref<32x18xbf16, #tpu.memory_space<vmem>>, %arg2: memref<18x128xbf16, #tpu.memory_space<vmem>>, %arg3: memref<1x128xf32, #tpu.memory_space<vmem>>, %arg4: memref<32x128xbf16, #tpu.memory_space<vmem>>) attributes {dimension_semantics = [#tpu.dimension_semantics<parallel>], iteration_bounds = array<i64: 1>, scalar_prefetch = 0 : i64, scratch_operands = 0 : i64, tpu.core_type = #tpu.core_type<tc>, window_params = [{transform_indices = @transform_0, window_bounds = array<i64: 32, 18>}, {pipeline_mode = #tpu.pipeline_mode<synchronous>, transform_indices = @transform_1, window_bounds = array<i64: 18, 128>}, {pipeline_mode = #tpu.pipeline_mode<synchronous>, transform_indices = @transform_2, window_bounds = array<i64: 1, 128>}, {transform_indices = @transform_3, window_bounds = array<i64: 32, 128>}]} {
    %c0 = arith.constant 0 : index
    %c0_0 = arith.constant 0 : index
    %0 = vector.load %arg1[%c0, %c0_0] : memref<32x18xbf16, #tpu.memory_space<vmem>>, vector<32x18xbf16>
    %c0_1 = arith.constant 0 : index
    %c0_2 = arith.constant 0 : index
    %1 = vector.load %arg2[%c0_1, %c0_2] : memref<18x128xbf16, #tpu.memory_space<vmem>>, vector<18x128xbf16>
    %cst = arith.constant dense<0.000000e+00> : vector<32x128xf32>
    %2 = tpu.matmul %0, %1, %cst {dimension_numbers = #tpu.dot_dimension_numbers<[1], [0], [0], [1], [0, 0, 1, 1], [], []>} : vector<32x18xbf16>, vector<18x128xbf16>, vector<32x128xf32> -> vector<32x128xf32>
    %c0_3 = arith.constant 0 : index
    %c0_4 = arith.constant 0 : index
    %3 = vector.load %arg3[%c0_3, %c0_4] : memref<1x128xf32, #tpu.memory_space<vmem>>, vector<1x128xf32>
    %4 = vector.broadcast %3 : vector<1x128xf32> to vector<32x128xf32>
    %5 = arith.addf %2, %4 : vector<32x128xf32>
    %6 = arith.negf %5 : vector<32x128xf32>
    %7 = math.exp %6 : vector<32x128xf32>
    %cst_5 = arith.constant 1.000000e+00 : f32
    %8 = vector.broadcast %cst_5 : f32 to vector<32x128xf32>
    %9 = arith.addf %8, %7 : vector<32x128xf32>
    %10 = arith.divf %8, %9 : vector<32x128xf32>
    %11 = arith.truncf %10 : vector<32x128xf32> to vector<32x128xbf16>
    %c0_6 = arith.constant 0 : index
    %c0_7 = arith.constant 0 : index
    %12 = vector.load %arg4[%c0_6, %c0_7] : memref<32x128xbf16, #tpu.memory_space<vmem>>, vector<32x128xbf16>
    tpu.vector_store %arg4[%c0_6, %c0_7], %11 {strides = array<i32>} : memref<32x128xbf16, #tpu.memory_space<vmem>>, vector<32x128xbf16>,
    return
  }
  func.func @transform_0(%arg0: i32) -> (i32, i32) {
    %c0_i32 = arith.constant 0 : i32
    %c0_i32_0 = arith.constant 0 : i32
    return %arg0, %c0_i32 : i32, i32
  }
  func.func @transform_1(%arg0: i32) -> (i32, i32) {
    %c0_i32 = arith.constant 0 : i32
    %c0_i32_0 = arith.constant 0 : i32
    %c0_i32_1 = arith.constant 0 : i32
    return %c0_i32, %c0_i32_0 : i32, i32
  }
  func.func @transform_2(%arg0: i32) -> (i32, i32) {
    %c0_i32 = arith.constant 0 : i32
    %c0_i32_0 = arith.constant 0 : i32
    %c0_i32_1 = arith.constant 0 : i32
    return %c0_i32, %c0_i32_0 : i32, i32
  }
  func.func @transform_3(%arg0: i32) -> (i32, i32) {
    %c0_i32 = arith.constant 0 : i32
    %c0_i32_0 = arith.constant 0 : i32
    return %arg0, %c0_i32 : i32, i32
  }
}

module attributes {stable_mosaic.version = 11 : i64} {
  func.func @_fusion_kernel(%arg0: i32, %arg1: i32, %arg2: memref<1x4x128xbf16, #tpu.memory_space<vmem>>, %arg3: memref<1x1x128xbf16, #tpu.memory_space<vmem>>, %arg4: memref<1x4x128xbf16, #tpu.memory_space<vmem>>, %arg5: memref<1x4x128xbf16, #tpu.memory_space<vmem>>, %arg6: memref<1x1x128xbf16, #tpu.memory_space<vmem>>, %arg7: memref<1x4x128xbf16, #tpu.memory_space<vmem>>, %arg8: memref<1x4x128xbf16, #tpu.memory_space<vmem>>) attributes {dimension_semantics = [#tpu.dimension_semantics<parallel>, #tpu.dimension_semantics<parallel>], iteration_bounds = array<i64: 2, 1>, scalar_prefetch = 0 : i64, scratch_operands = 0 : i64, tpu.core_type = #tpu.core_type<tc>, window_params = [{transform_indices = @transform_0, window_bounds = array<i64: 1, 4, 128>}, {transform_indices = @transform_1, window_bounds = array<i64: 1, 1, 128>}, {transform_indices = @transform_2, window_bounds = array<i64: 1, 4, 128>}, {transform_indices = @transform_3, window_bounds = array<i64: 1, 4, 128>}, {transform_indices = @transform_4, window_bounds = array<i64: 1, 1, 128>}, {transform_indices = @transform_5, window_bounds = array<i64: 1, 4, 128>}, {transform_indices = @transform_6, window_bounds = array<i64: 1, 4, 128>}]} {
    %c0 = arith.constant 0 : index
    %c0_0 = arith.constant 0 : index
    %c0_1 = arith.constant 0 : index
    %0 = vector.load %arg2[%c0, %c0_0, %c0_1] : memref<1x4x128xbf16, #tpu.memory_space<vmem>>, vector<1x4x128xbf16>
    %1 = arith.extf %0 : vector<1x4x128xbf16> to vector<1x4x128xf32>
    %c0_2 = arith.constant 0 : index
    %c0_3 = arith.constant 0 : index
    %c0_4 = arith.constant 0 : index
    %2 = vector.load %arg3[%c0_2, %c0_3, %c0_4] : memref<1x1x128xbf16, #tpu.memory_space<vmem>>, vector<1x1x128xbf16>
    %3 = arith.extf %2 : vector<1x1x128xbf16> to vector<1x1x128xf32>
    %4 = vector.broadcast %3 : vector<1x1x128xf32> to vector<1x4x128xf32>
    %5 = arith.mulf %1, %4 : vector<1x4x128xf32>
    %c0_5 = arith.constant 0 : index
    %c0_6 = arith.constant 0 : index
    %c0_7 = arith.constant 0 : index
    %6 = vector.load %arg4[%c0_5, %c0_6, %c0_7] : memref<1x4x128xbf16, #tpu.memory_space<vmem>>, vector<1x4x128xbf16>
    %7 = arith.extf %6 : vector<1x4x128xbf16> to vector<1x4x128xf32>
    %8 = arith.mulf %5, %7 : vector<1x4x128xf32>
    %c0_8 = arith.constant 0 : index
    %c0_9 = arith.constant 0 : index
    %c0_10 = arith.constant 0 : index
    %9 = vector.load %arg5[%c0_8, %c0_9, %c0_10] : memref<1x4x128xbf16, #tpu.memory_space<vmem>>, vector<1x4x128xbf16>
    %10 = arith.extf %9 : vector<1x4x128xbf16> to vector<1x4x128xf32>
    %c0_11 = arith.constant 0 : index
    %c0_12 = arith.constant 0 : index
    %c0_13 = arith.constant 0 : index
    %11 = vector.load %arg6[%c0_11, %c0_12, %c0_13] : memref<1x1x128xbf16, #tpu.memory_space<vmem>>, vector<1x1x128xbf16>
    %12 = arith.extf %11 : vector<1x1x128xbf16> to vector<1x1x128xf32>
    %13 = vector.broadcast %12 : vector<1x1x128xf32> to vector<1x4x128xf32>
    %14 = arith.mulf %10, %13 : vector<1x4x128xf32>
    %c0_14 = arith.constant 0 : index
    %c0_15 = arith.constant 0 : index
    %c0_16 = arith.constant 0 : index
    %15 = vector.load %arg7[%c0_14, %c0_15, %c0_16] : memref<1x4x128xbf16, #tpu.memory_space<vmem>>, vector<1x4x128xbf16>
    %16 = arith.extf %15 : vector<1x4x128xbf16> to vector<1x4x128xf32>
    %17 = arith.mulf %14, %16 : vector<1x4x128xf32>
    %18 = arith.addf %8, %17 : vector<1x4x128xf32>
    %19 = arith.truncf %18 : vector<1x4x128xf32> to vector<1x4x128xbf16>
    %c0_17 = arith.constant 0 : index
    %c0_18 = arith.constant 0 : index
    %c0_19 = arith.constant 0 : index
    %20 = vector.load %arg8[%c0_17, %c0_18, %c0_19] : memref<1x4x128xbf16, #tpu.memory_space<vmem>>, vector<1x4x128xbf16>
    tpu.vector_store %arg8[%c0_17, %c0_18, %c0_19], %19 {strides = array<i32>} : memref<1x4x128xbf16, #tpu.memory_space<vmem>>, vector<1x4x128xbf16>,
    return
  }
  func.func @transform_0(%arg0: i32, %arg1: i32) -> (i32, i32, i32) {
    %c0_i32 = arith.constant 0 : i32
    %c0_i32_0 = arith.constant 0 : i32
    return %arg0, %arg1, %c0_i32 : i32, i32, i32
  }
  func.func @transform_1(%arg0: i32, %arg1: i32) -> (i32, i32, i32) {
    %c0_i32 = arith.constant 0 : i32
    %c0_i32_0 = arith.constant 0 : i32
    %c0_i32_1 = arith.constant 0 : i32
    return %arg0, %c0_i32, %c0_i32_0 : i32, i32, i32
  }
  func.func @transform_2(%arg0: i32, %arg1: i32) -> (i32, i32, i32) {
    %c0_i32 = arith.constant 0 : i32
    %c0_i32_0 = arith.constant 0 : i32
    return %arg0, %arg1, %c0_i32 : i32, i32, i32
  }
  func.func @transform_3(%arg0: i32, %arg1: i32) -> (i32, i32, i32) {
    %c0_i32 = arith.constant 0 : i32
    %c0_i32_0 = arith.constant 0 : i32
    return %arg0, %arg1, %c0_i32 : i32, i32, i32
  }
  func.func @transform_4(%arg0: i32, %arg1: i32) -> (i32, i32, i32) {
    %c0_i32 = arith.constant 0 : i32
    %c0_i32_0 = arith.constant 0 : i32
    %c0_i32_1 = arith.constant 0 : i32
    return %arg0, %c0_i32, %c0_i32_0 : i32, i32, i32
  }
  func.func @transform_5(%arg0: i32, %arg1: i32) -> (i32, i32, i32) {
    %c0_i32 = arith.constant 0 : i32
    %c0_i32_0 = arith.constant 0 : i32
    return %arg0, %arg1, %c0_i32 : i32, i32, i32
  }
  func.func @transform_6(%arg0: i32, %arg1: i32) -> (i32, i32, i32) {
    %c0_i32 = arith.constant 0 : i32
    %c0_i32_0 = arith.constant 0 : i32
    return %arg0, %arg1, %c0_i32 : i32, i32, i32
  }
}

module attributes {stable_mosaic.version = 11 : i64} {
  func.func @_mm_kernel(%arg0: i32, %arg1: memref<128x288xbf16, #tpu.memory_space<vmem>>, %arg2: memref<288x32xbf16, #tpu.memory_space<vmem>>, %arg3: memref<1x32xf32, #tpu.memory_space<vmem>>, %arg4: memref<128x32xbf16, #tpu.memory_space<vmem>>) attributes {dimension_semantics = [#tpu.dimension_semantics<parallel>], iteration_bounds = array<i64: 1>, scalar_prefetch = 0 : i64, scratch_operands = 0 : i64, tpu.core_type = #tpu.core_type<tc>, window_params = [{transform_indices = @transform_0, window_bounds = array<i64: 128, 288>}, {pipeline_mode = #tpu.pipeline_mode<synchronous>, transform_indices = @transform_1, window_bounds = array<i64: 288, 32>}, {pipeline_mode = #tpu.pipeline_mode<synchronous>, transform_indices = @transform_2, window_bounds = array<i64: 1, 32>}, {transform_indices = @transform_3, window_bounds = array<i64: 128, 32>}]} {
    %c0 = arith.constant 0 : index
    %c0_0 = arith.constant 0 : index
    %0 = vector.load %arg1[%c0, %c0_0] : memref<128x288xbf16, #tpu.memory_space<vmem>>, vector<128x288xbf16>
    %c0_1 = arith.constant 0 : index
    %c0_2 = arith.constant 0 : index
    %1 = vector.load %arg2[%c0_1, %c0_2] : memref<288x32xbf16, #tpu.memory_space<vmem>>, vector<288x32xbf16>
    %cst = arith.constant dense<0.000000e+00> : vector<128x32xf32>
    %2 = tpu.matmul %0, %1, %cst {dimension_numbers = #tpu.dot_dimension_numbers<[1], [0], [0], [1], [0, 0, 1, 1], [], []>} : vector<128x288xbf16>, vector<288x32xbf16>, vector<128x32xf32> -> vector<128x32xf32>
    %c0_3 = arith.constant 0 : index
    %c0_4 = arith.constant 0 : index
    %3 = vector.load %arg3[%c0_3, %c0_4] : memref<1x32xf32, #tpu.memory_space<vmem>>, vector<1x32xf32>
    %4 = vector.broadcast %3 : vector<1x32xf32> to vector<128x32xf32>
    %5 = arith.addf %2, %4 : vector<128x32xf32>
    %cst_5 = arith.constant 0.000000e+00 : f32
    %6 = vector.broadcast %cst_5 : f32 to vector<128x32xf32>
    %7 = arith.maximumf %5, %6 : vector<128x32xf32>
    %8 = arith.truncf %7 : vector<128x32xf32> to vector<128x32xbf16>
    %c0_6 = arith.constant 0 : index
    %c0_7 = arith.constant 0 : index
    %9 = vector.load %arg4[%c0_6, %c0_7] : memref<128x32xbf16, #tpu.memory_space<vmem>>, vector<128x32xbf16>
    tpu.vector_store %arg4[%c0_6, %c0_7], %8 {strides = array<i32>} : memref<128x32xbf16, #tpu.memory_space<vmem>>, vector<128x32xbf16>,
    return
  }
  func.func @transform_0(%arg0: i32) -> (i32, i32) {
    %c0_i32 = arith.constant 0 : i32
    %c0_i32_0 = arith.constant 0 : i32
    return %arg0, %c0_i32 : i32, i32
  }
  func.func @transform_1(%arg0: i32) -> (i32, i32) {
    %c0_i32 = arith.constant 0 : i32
    %c0_i32_0 = arith.constant 0 : i32
    %c0_i32_1 = arith.constant 0 : i32
    return %c0_i32, %c0_i32_0 : i32, i32
  }
  func.func @transform_2(%arg0: i32) -> (i32, i32) {
    %c0_i32 = arith.constant 0 : i32
    %c0_i32_0 = arith.constant 0 : i32
    %c0_i32_1 = arith.constant 0 : i32
    return %c0_i32, %c0_i32_0 : i32, i32
  }
  func.func @transform_3(%arg0: i32) -> (i32, i32) {
    %c0_i32 = arith.constant 0 : i32
    %c0_i32_0 = arith.constant 0 : i32
    return %arg0, %c0_i32 : i32, i32
  }
}

module attributes {stable_mosaic.version = 11 : i64} {
  func.func @_mm_kernel(%arg0: i32, %arg1: memref<128x128xbf16, #tpu.memory_space<vmem>>, %arg2: memref<128x32xbf16, #tpu.memory_space<vmem>>, %arg3: memref<1x32xf32, #tpu.memory_space<vmem>>, %arg4: memref<128x32xbf16, #tpu.memory_space<vmem>>) attributes {dimension_semantics = [#tpu.dimension_semantics<parallel>], iteration_bounds = array<i64: 1>, scalar_prefetch = 0 : i64, scratch_operands = 0 : i64, tpu.core_type = #tpu.core_type<tc>, window_params = [{transform_indices = @transform_0, window_bounds = array<i64: 128, 128>}, {pipeline_mode = #tpu.pipeline_mode<synchronous>, transform_indices = @transform_1, window_bounds = array<i64: 128, 32>}, {pipeline_mode = #tpu.pipeline_mode<synchronous>, transform_indices = @transform_2, window_bounds = array<i64: 1, 32>}, {transform_indices = @transform_3, window_bounds = array<i64: 128, 32>}]} {
    %c0 = arith.constant 0 : index
    %c0_0 = arith.constant 0 : index
    %0 = vector.load %arg1[%c0, %c0_0] : memref<128x128xbf16, #tpu.memory_space<vmem>>, vector<128x128xbf16>
    %c0_1 = arith.constant 0 : index
    %c0_2 = arith.constant 0 : index
    %1 = vector.load %arg2[%c0_1, %c0_2] : memref<128x32xbf16, #tpu.memory_space<vmem>>, vector<128x32xbf16>
    %cst = arith.constant dense<0.000000e+00> : vector<128x32xf32>
    %2 = tpu.matmul %0, %1, %cst {dimension_numbers = #tpu.dot_dimension_numbers<[1], [0], [0], [1], [0, 0, 1, 1], [], []>} : vector<128x128xbf16>, vector<128x32xbf16>, vector<128x32xf32> -> vector<128x32xf32>
    %c0_3 = arith.constant 0 : index
    %c0_4 = arith.constant 0 : index
    %3 = vector.load %arg3[%c0_3, %c0_4] : memref<1x32xf32, #tpu.memory_space<vmem>>, vector<1x32xf32>
    %4 = vector.broadcast %3 : vector<1x32xf32> to vector<128x32xf32>
    %5 = arith.addf %2, %4 : vector<128x32xf32>
    %cst_5 = arith.constant 0.000000e+00 : f32
    %6 = vector.broadcast %cst_5 : f32 to vector<128x32xf32>
    %7 = arith.maximumf %5, %6 : vector<128x32xf32>
    %8 = arith.truncf %7 : vector<128x32xf32> to vector<128x32xbf16>
    %c0_6 = arith.constant 0 : index
    %c0_7 = arith.constant 0 : index
    %9 = vector.load %arg4[%c0_6, %c0_7] : memref<128x32xbf16, #tpu.memory_space<vmem>>, vector<128x32xbf16>
    tpu.vector_store %arg4[%c0_6, %c0_7], %8 {strides = array<i32>} : memref<128x32xbf16, #tpu.memory_space<vmem>>, vector<128x32xbf16>,
    return
  }
  func.func @transform_0(%arg0: i32) -> (i32, i32) {
    %c0_i32 = arith.constant 0 : i32
    %c0_i32_0 = arith.constant 0 : i32
    return %arg0, %c0_i32 : i32, i32
  }
  func.func @transform_1(%arg0: i32) -> (i32, i32) {
    %c0_i32 = arith.constant 0 : i32
    %c0_i32_0 = arith.constant 0 : i32
    %c0_i32_1 = arith.constant 0 : i32
    return %c0_i32, %c0_i32_0 : i32, i32
  }
  func.func @transform_2(%arg0: i32) -> (i32, i32) {
    %c0_i32 = arith.constant 0 : i32
    %c0_i32_0 = arith.constant 0 : i32
    %c0_i32_1 = arith.constant 0 : i32
    return %c0_i32, %c0_i32_0 : i32, i32
  }
  func.func @transform_3(%arg0: i32) -> (i32, i32) {
    %c0_i32 = arith.constant 0 : i32
    %c0_i32_0 = arith.constant 0 : i32
    return %arg0, %c0_i32 : i32, i32
  }
}

module attributes {stable_mosaic.version = 11 : i64} {
  func.func @_mm_kernel(%arg0: i32, %arg1: memref<256x72xbf16, #tpu.memory_space<vmem>>, %arg2: memref<72x8xbf16, #tpu.memory_space<vmem>>, %arg3: memref<1x8xf32, #tpu.memory_space<vmem>>, %arg4: memref<256x8xbf16, #tpu.memory_space<vmem>>) attributes {dimension_semantics = [#tpu.dimension_semantics<parallel>], iteration_bounds = array<i64: 2>, scalar_prefetch = 0 : i64, scratch_operands = 0 : i64, tpu.core_type = #tpu.core_type<tc>, window_params = [{transform_indices = @transform_0, window_bounds = array<i64: 256, 72>}, {pipeline_mode = #tpu.pipeline_mode<synchronous>, transform_indices = @transform_1, window_bounds = array<i64: 72, 8>}, {pipeline_mode = #tpu.pipeline_mode<synchronous>, transform_indices = @transform_2, window_bounds = array<i64: 1, 8>}, {transform_indices = @transform_3, window_bounds = array<i64: 256, 8>}]} {
    %c0 = arith.constant 0 : index
    %c0_0 = arith.constant 0 : index
    %0 = vector.load %arg1[%c0, %c0_0] : memref<256x72xbf16, #tpu.memory_space<vmem>>, vector<256x72xbf16>
    %c0_1 = arith.constant 0 : index
    %c0_2 = arith.constant 0 : index
    %1 = vector.load %arg2[%c0_1, %c0_2] : memref<72x8xbf16, #tpu.memory_space<vmem>>, vector<72x8xbf16>
    %cst = arith.constant dense<0.000000e+00> : vector<256x8xf32>
    %2 = tpu.matmul %0, %1, %cst {dimension_numbers = #tpu.dot_dimension_numbers<[1], [0], [0], [1], [0, 0, 1, 1], [], []>} : vector<256x72xbf16>, vector<72x8xbf16>, vector<256x8xf32> -> vector<256x8xf32>
    %c0_3 = arith.constant 0 : index
    %c0_4 = arith.constant 0 : index
    %3 = vector.load %arg3[%c0_3, %c0_4] : memref<1x8xf32, #tpu.memory_space<vmem>>, vector<1x8xf32>
    %4 = vector.broadcast %3 : vector<1x8xf32> to vector<256x8xf32>
    %5 = arith.addf %2, %4 : vector<256x8xf32>
    %cst_5 = arith.constant 0.000000e+00 : f32
    %6 = vector.broadcast %cst_5 : f32 to vector<256x8xf32>
    %7 = arith.maximumf %5, %6 : vector<256x8xf32>
    %8 = arith.truncf %7 : vector<256x8xf32> to vector<256x8xbf16>
    %c0_6 = arith.constant 0 : index
    %c0_7 = arith.constant 0 : index
    %9 = vector.load %arg4[%c0_6, %c0_7] : memref<256x8xbf16, #tpu.memory_space<vmem>>, vector<256x8xbf16>
    tpu.vector_store %arg4[%c0_6, %c0_7], %8 {strides = array<i32>} : memref<256x8xbf16, #tpu.memory_space<vmem>>, vector<256x8xbf16>,
    return
  }
  func.func @transform_0(%arg0: i32) -> (i32, i32) {
    %c0_i32 = arith.constant 0 : i32
    %c0_i32_0 = arith.constant 0 : i32
    return %arg0, %c0_i32 : i32, i32
  }
  func.func @transform_1(%arg0: i32) -> (i32, i32) {
    %c0_i32 = arith.constant 0 : i32
    %c0_i32_0 = arith.constant 0 : i32
    %c0_i32_1 = arith.constant 0 : i32
    return %c0_i32, %c0_i32_0 : i32, i32
  }
  func.func @transform_2(%arg0: i32) -> (i32, i32) {
    %c0_i32 = arith.constant 0 : i32
    %c0_i32_0 = arith.constant 0 : i32
    %c0_i32_1 = arith.constant 0 : i32
    return %c0_i32, %c0_i32_0 : i32, i32
  }
  func.func @transform_3(%arg0: i32) -> (i32, i32) {
    %c0_i32 = arith.constant 0 : i32
    %c0_i32_0 = arith.constant 0 : i32
    return %arg0, %c0_i32 : i32, i32
  }
}

module attributes {stable_mosaic.version = 11 : i64} {
  func.func @_mm_kernel(%arg0: i32, %arg1: memref<256x936xbf16, #tpu.memory_space<vmem>>, %arg2: memref<936x32xbf16, #tpu.memory_space<vmem>>, %arg3: memref<1x32xf32, #tpu.memory_space<vmem>>, %arg4: memref<256x32xbf16, #tpu.memory_space<vmem>>) attributes {dimension_semantics = [#tpu.dimension_semantics<parallel>], iteration_bounds = array<i64: 2>, scalar_prefetch = 0 : i64, scratch_operands = 0 : i64, tpu.core_type = #tpu.core_type<tc>, window_params = [{transform_indices = @transform_0, window_bounds = array<i64: 256, 936>}, {pipeline_mode = #tpu.pipeline_mode<synchronous>, transform_indices = @transform_1, window_bounds = array<i64: 936, 32>}, {pipeline_mode = #tpu.pipeline_mode<synchronous>, transform_indices = @transform_2, window_bounds = array<i64: 1, 32>}, {transform_indices = @transform_3, window_bounds = array<i64: 256, 32>}]} {
    %c0 = arith.constant 0 : index
    %c0_0 = arith.constant 0 : index
    %0 = vector.load %arg1[%c0, %c0_0] : memref<256x936xbf16, #tpu.memory_space<vmem>>, vector<256x936xbf16>
    %c0_1 = arith.constant 0 : index
    %c0_2 = arith.constant 0 : index
    %1 = vector.load %arg2[%c0_1, %c0_2] : memref<936x32xbf16, #tpu.memory_space<vmem>>, vector<936x32xbf16>
    %cst = arith.constant dense<0.000000e+00> : vector<256x32xf32>
    %2 = tpu.matmul %0, %1, %cst {dimension_numbers = #tpu.dot_dimension_numbers<[1], [0], [0], [1], [0, 0, 1, 1], [], []>} : vector<256x936xbf16>, vector<936x32xbf16>, vector<256x32xf32> -> vector<256x32xf32>
    %c0_3 = arith.constant 0 : index
    %c0_4 = arith.constant 0 : index
    %3 = vector.load %arg3[%c0_3, %c0_4] : memref<1x32xf32, #tpu.memory_space<vmem>>, vector<1x32xf32>
    %4 = vector.broadcast %3 : vector<1x32xf32> to vector<256x32xf32>
    %5 = arith.addf %2, %4 : vector<256x32xf32>
    %6 = arith.truncf %5 : vector<256x32xf32> to vector<256x32xbf16>
    %c0_5 = arith.constant 0 : index
    %c0_6 = arith.constant 0 : index
    %7 = vector.load %arg4[%c0_5, %c0_6] : memref<256x32xbf16, #tpu.memory_space<vmem>>, vector<256x32xbf16>
    tpu.vector_store %arg4[%c0_5, %c0_6], %6 {strides = array<i32>} : memref<256x32xbf16, #tpu.memory_space<vmem>>, vector<256x32xbf16>,
    return
  }
  func.func @transform_0(%arg0: i32) -> (i32, i32) {
    %c0_i32 = arith.constant 0 : i32
    %c0_i32_0 = arith.constant 0 : i32
    return %arg0, %c0_i32 : i32, i32
  }
  func.func @transform_1(%arg0: i32) -> (i32, i32) {
    %c0_i32 = arith.constant 0 : i32
    %c0_i32_0 = arith.constant 0 : i32
    %c0_i32_1 = arith.constant 0 : i32
    return %c0_i32, %c0_i32_0 : i32, i32
  }
  func.func @transform_2(%arg0: i32) -> (i32, i32) {
    %c0_i32 = arith.constant 0 : i32
    %c0_i32_0 = arith.constant 0 : i32
    %c0_i32_1 = arith.constant 0 : i32
    return %c0_i32, %c0_i32_0 : i32, i32
  }
  func.func @transform_3(%arg0: i32) -> (i32, i32) {
    %c0_i32 = arith.constant 0 : i32
    %c0_i32_0 = arith.constant 0 : i32
    return %arg0, %c0_i32 : i32, i32
  }
}

module attributes {stable_mosaic.version = 11 : i64} {
  func.func @_mm_kernel(%arg0: i32, %arg1: memref<256x288xbf16, #tpu.memory_space<vmem>>, %arg2: memref<288x128xbf16, #tpu.memory_space<vmem>>, %arg3: memref<1x128xf32, #tpu.memory_space<vmem>>, %arg4: memref<256x128xf32, #tpu.memory_space<vmem>>) attributes {dimension_semantics = [#tpu.dimension_semantics<parallel>], iteration_bounds = array<i64: 2>, scalar_prefetch = 0 : i64, scratch_operands = 0 : i64, tpu.core_type = #tpu.core_type<tc>, window_params = [{transform_indices = @transform_0, window_bounds = array<i64: 256, 288>}, {pipeline_mode = #tpu.pipeline_mode<synchronous>, transform_indices = @transform_1, window_bounds = array<i64: 288, 128>}, {pipeline_mode = #tpu.pipeline_mode<synchronous>, transform_indices = @transform_2, window_bounds = array<i64: 1, 128>}, {transform_indices = @transform_3, window_bounds = array<i64: 256, 128>}]} {
    %c0 = arith.constant 0 : index
    %c0_0 = arith.constant 0 : index
    %0 = vector.load %arg1[%c0, %c0_0] : memref<256x288xbf16, #tpu.memory_space<vmem>>, vector<256x288xbf16>
    %c0_1 = arith.constant 0 : index
    %c0_2 = arith.constant 0 : index
    %1 = vector.load %arg2[%c0_1, %c0_2] : memref<288x128xbf16, #tpu.memory_space<vmem>>, vector<288x128xbf16>
    %cst = arith.constant dense<0.000000e+00> : vector<256x128xf32>
    %2 = tpu.matmul %0, %1, %cst {dimension_numbers = #tpu.dot_dimension_numbers<[1], [0], [0], [1], [0, 0, 1, 1], [], []>} : vector<256x288xbf16>, vector<288x128xbf16>, vector<256x128xf32> -> vector<256x128xf32>
    %c0_3 = arith.constant 0 : index
    %c0_4 = arith.constant 0 : index
    %3 = vector.load %arg3[%c0_3, %c0_4] : memref<1x128xf32, #tpu.memory_space<vmem>>, vector<1x128xf32>
    %4 = vector.broadcast %3 : vector<1x128xf32> to vector<256x128xf32>
    %5 = arith.addf %2, %4 : vector<256x128xf32>
    %6 = math.tanh %5 : vector<256x128xf32>
    %cst_5 = arith.constant 5.000000e-01 : f32
    %7 = vector.broadcast %cst_5 : f32 to vector<256x128xf32>
    %8 = arith.mulf %6, %7 : vector<256x128xf32>
    %cst_6 = arith.constant 5.000000e-01 : f32
    %9 = vector.broadcast %cst_6 : f32 to vector<256x128xf32>
    %10 = arith.addf %8, %9 : vector<256x128xf32>
    %c0_7 = arith.constant 0 : index
    %c0_8 = arith.constant 0 : index
    %11 = vector.load %arg4[%c0_7, %c0_8] : memref<256x128xf32, #tpu.memory_space<vmem>>, vector<256x128xf32>
    tpu.vector_store %arg4[%c0_7, %c0_8], %10 {strides = array<i32>} : memref<256x128xf32, #tpu.memory_space<vmem>>, vector<256x128xf32>,
    return
  }
  func.func @transform_0(%arg0: i32) -> (i32, i32) {
    %c0_i32 = arith.constant 0 : i32
    %c0_i32_0 = arith.constant 0 : i32
    return %arg0, %c0_i32 : i32, i32
  }
  func.func @transform_1(%arg0: i32) -> (i32, i32) {
    %c0_i32 = arith.constant 0 : i32
    %c0_i32_0 = arith.constant 0 : i32
    %c0_i32_1 = arith.constant 0 : i32
    return %c0_i32, %c0_i32_0 : i32, i32
  }
  func.func @transform_2(%arg0: i32) -> (i32, i32) {
    %c0_i32 = arith.constant 0 : i32
    %c0_i32_0 = arith.constant 0 : i32
    %c0_i32_1 = arith.constant 0 : i32
    return %c0_i32, %c0_i32_0 : i32, i32
  }
  func.func @transform_3(%arg0: i32) -> (i32, i32) {
    %c0_i32 = arith.constant 0 : i32
    %c0_i32_0 = arith.constant 0 : i32
    return %arg0, %c0_i32 : i32, i32
  }
}

</mosaic_0001>

<bundles_post_ra>
// kernel: tile.93
= control target key start
LH: loop header
LB: loop body
LE: loop exit
PB: predicated region body
PF: predicated region fallthrough
CT: control target
= control target key end

     0   :  { %s22_s0 = inlined_call_operand.vmem [shape: f32[32], index: 0, kind: input, shape index: {}]   ;;  %s23_s1 = inlined_call_operand.vmem [shape: f32[4,32], index: 1, kind: output, shape index: {}]  }
   0x1   :  { %v4_v0 = vld [vmem:[%s22_s0] ss:$0 sm:$0xff] }
   0x2   :  { %5 = vst [vmem:[%s23_s1] sm:$0xf] %v4_v0 }

// kernel: tile.94
= control target key start
LH: loop header
LB: loop body
LE: loop exit
PB: predicated region body
PF: predicated region fallthrough
CT: control target
= control target key end

     0   :  { %vm7_vm0 = vcmask 261120   ;;  %s37_s8 = smov 32   ;;  %s38_s9 = smov 64   ;;  %vm13_vm1 = vcmask 1048320   ;;  %vm19_vm2 = vcmask 785920   ;;  %vm25_vm3 = vcmask 523520   ;;  %s55_s0 = inlined_call_operand.vmem [shape: f32[4,32], index: 0, kind: input, shape index: {}]   ;;  %s56_s1 = inlined_call_operand.vmem [shape: f32[1,128], index: 1, kind: output, shape index: {}]  }
   0x1   :  { %v4_v0 = vld [vmem:[%s55_s0] sm:$0xf]  ;;  %s36_s0 = smov 96  }
   0x2   :  { %5 = vst [vmem:[#allocation1] sm:$0xf] %v4_v0 }
   0x9   :  { %v10_v1 = vld [vmem:[#allocation1 + $0x3] sm:$0x1]   ;;  %v22_v2 = vld [vmem:[#allocation1 + $0x1] sm:$0x1]   ;;  %v6_v3 = vld [vmem:[#allocation1] sm:$0x1]  }
   0xa   :  { %11 = vrot.lane.b32.xlu0 %v10_v1, %s36_s0  ;;  %23 = vrot.lane.b32.xlu1 %v22_v2, %s37_s8  ;;  %v16_v4 = vld [vmem:[#allocation1 + $0x2] sm:$0x1]   ;;  %8 = vst.msk [vmem:[#allocation0] sm:$0x1] %vm7_vm0, %v6_v3  }
   0xe   :  { %17 = vrot.lane.b32.xlu0 %v16_v4, %s38_s9 }
  0x7c   :  { %v12_v5 = vpop.permute.xlu0 %11   ;;  %v24_v6 = vpop.permute.xlu1 %23  }
  0x7d   :  { %14 = vst.msk [vmem:[#allocation0] sm:$0x1] %vm13_vm1, %v12_v5  }
  0x80   :  { %v18_v7 = vpop.permute.xlu0 %17  }
  0x81   :  { %20 = vst.msk [vmem:[#allocation0] sm:$0x1] %vm19_vm2, %v18_v7  }
  0x82   :  { %26 = vst.msk [vmem:[#allocation0] sm:$0x1] %vm25_vm3, %v24_v6  }
  0x89   :  { %v30_v8 = vld [vmem:[#allocation0] sm:$0x1] }
  0x8a   :  { %32 = vst [vmem:[%s56_s1] sm:$0x1] %v30_v8 }

// kernel: tile.143
= control target key start
LH: loop header
LB: loop body
LE: loop exit
PB: predicated region body
PF: predicated region fallthrough
CT: control target
= control target key end

     0   :  { %s22_s0 = inlined_call_operand.vmem [shape: f32[16], index: 0, kind: input, shape index: {}]   ;;  %s23_s1 = inlined_call_operand.vmem [shape: f32[4,16], index: 1, kind: output, shape index: {}]  }
   0x1   :  { %v4_v0 = vld [vmem:[%s22_s0] ss:$0 sm:$0xff] }
   0x2   :  { %5 = vst [vmem:[%s23_s1] sm:$0xf] %v4_v0 }

// kernel: tile.144
= control target key start
LH: loop header
LB: loop body
LE: loop exit
PB: predicated region body
PF: predicated region fallthrough
CT: control target
= control target key end

     0   :  { %vm7_vm0 = vcmask 130048   ;;  %s37_s8 = smov 16   ;;  %s38_s9 = smov 32   ;;  %vm13_vm1 = vcmask 523648   ;;  %vm19_vm2 = vcmask 392448   ;;  %vm25_vm3 = vcmask 261248   ;;  %s55_s0 = inlined_call_operand.vmem [shape: f32[4,16], index: 0, kind: input, shape index: {}]   ;;  %s56_s1 = inlined_call_operand.vmem [shape: f32[1,64], index: 1, kind: output, shape index: {}]  }
   0x1   :  { %v4_v0 = vld [vmem:[%s55_s0] sm:$0xf]  ;;  %s36_s0 = smov 48  }
   0x2   :  { %5 = vst [vmem:[#allocation1] sm:$0xf] %v4_v0 }
   0x9   :  { %v10_v1 = vld [vmem:[#allocation1 + $0x3] sm:$0x1]   ;;  %v22_v2 = vld [vmem:[#allocation1 + $0x1] sm:$0x1]   ;;  %v6_v3 = vld [vmem:[#allocation1] sm:$0x1]  }
   0xa   :  { %11 = vrot.lane.b32.xlu0 %v10_v1, %s36_s0  ;;  %23 = vrot.lane.b32.xlu1 %v22_v2, %s37_s8  ;;  %v16_v4 = vld [vmem:[#allocation1 + $0x2] sm:$0x1]   ;;  %8 = vst.msk [vmem:[#allocation0] sm:$0x1] %vm7_vm0, %v6_v3  }
   0xe   :  { %17 = vrot.lane.b32.xlu0 %v16_v4, %s38_s9 }
  0x7c   :  { %v12_v5 = vpop.permute.xlu0 %11   ;;  %v24_v6 = vpop.permute.xlu1 %23  }
  0x7d   :  { %14 = vst.msk [vmem:[#allocation0] sm:$0x1] %vm13_vm1, %v12_v5  }
  0x80   :  { %v18_v7 = vpop.permute.xlu0 %17  }
  0x81   :  { %20 = vst.msk [vmem:[#allocation0] sm:$0x1] %vm19_vm2, %v18_v7  }
  0x82   :  { %26 = vst.msk [vmem:[#allocation0] sm:$0x1] %vm25_vm3, %v24_v6  }
  0x89   :  { %v30_v8 = vld [vmem:[#allocation0] sm:$0x1] }
  0x8a   :  { %32 = vst [vmem:[%s56_s1] sm:$0x1] %v30_v8 }

// kernel: tile.158
= control target key start
LH: loop header
LB: loop body
LE: loop exit
PB: predicated region body
PF: predicated region fallthrough
CT: control target
= control target key end

     0   :  { %s22_s0 = inlined_call_operand.vmem [shape: f32[8], index: 0, kind: input, shape index: {}]   ;;  %s23_s1 = inlined_call_operand.vmem [shape: f32[4,8], index: 1, kind: output, shape index: {}]  }
   0x1   :  { %v4_v0 = vld [vmem:[%s22_s0] ss:$0 sm:$0xff] }
   0x2   :  { %5 = vst [vmem:[%s23_s1] sm:$0xf] %v4_v0 }

// kernel: tile.159
= control target key start
LH: loop header
LB: loop body
LE: loop exit
PB: predicated region body
PF: predicated region fallthrough
CT: control target
= control target key end

     0   :  { %vm7_vm0 = vcmask 64512   ;;  %s37_s8 = smov 8   ;;  %s38_s9 = smov 16   ;;  %vm13_vm1 = vcmask 261312   ;;  %vm19_vm2 = vcmask 195712   ;;  %vm25_vm3 = vcmask 130112   ;;  %s55_s0 = inlined_call_operand.vmem [shape: f32[4,8], index: 0, kind: input, shape index: {}]   ;;  %s56_s1 = inlined_call_operand.vmem [shape: f32[1,32], index: 1, kind: output, shape index: {}]  }
   0x1   :  { %v4_v0 = vld [vmem:[%s55_s0] sm:$0xf]  ;;  %s36_s0 = smov 24  }
   0x2   :  { %5 = vst [vmem:[#allocation1] sm:$0xf] %v4_v0 }
   0x9   :  { %v10_v1 = vld [vmem:[#allocation1 + $0x3] sm:$0x1]   ;;  %v22_v2 = vld [vmem:[#allocation1 + $0x1] sm:$0x1]   ;;  %v6_v3 = vld [vmem:[#allocation1] sm:$0x1]  }
   0xa   :  { %11 = vrot.lane.b32.xlu0 %v10_v1, %s36_s0  ;;  %23 = vrot.lane.b32.xlu1 %v22_v2, %s37_s8  ;;  %v16_v4 = vld [vmem:[#allocation1 + $0x2] sm:$0x1]   ;;  %8 = vst.msk [vmem:[#allocation0] sm:$0x1] %vm7_vm0, %v6_v3  }
   0xe   :  { %17 = vrot.lane.b32.xlu0 %v16_v4, %s38_s9 }
  0x7c   :  { %v12_v5 = vpop.permute.xlu0 %11   ;;  %v24_v6 = vpop.permute.xlu1 %23  }
  0x7d   :  { %14 = vst.msk [vmem:[#allocation0] sm:$0x1] %vm13_vm1, %v12_v5  }
  0x80   :  { %v18_v7 = vpop.permute.xlu0 %17  }
  0x81   :  { %20 = vst.msk [vmem:[#allocation0] sm:$0x1] %vm19_vm2, %v18_v7  }
  0x82   :  { %26 = vst.msk [vmem:[#allocation0] sm:$0x1] %vm25_vm3, %v24_v6  }
  0x89   :  { %v30_v8 = vld [vmem:[#allocation0] sm:$0x1] }
  0x8a   :  { %32 = vst [vmem:[%s56_s1] sm:$0x1] %v30_v8 }

</bundles_post_ra>
